<compile_context>
chip_gen: v6e
topology: v6e:2x2x1
jax: 0.10.0
libtpu: 0.0.40
codegen_flags: <defaults>
</compile_context>

<pallas_src>
import math

import jax
import jax.numpy as jnp
import numpy as np
from jax import lax
from jax.experimental import pallas as pl
from jax.experimental.pallas import tpu as pltpu


# ----------------------------------------------------------------------------
# SamePad2d padding amounts (mirrors the PyTorch module exactly, including its
# H/W naming cross-wiring; identical to symmetric SAME padding for square HW).
# ----------------------------------------------------------------------------
def _same_pad_amounts(H, W, kernel_size, stride):
    in_width = H                       # SamePad2d: input.size(2)
    in_height = W                      # SamePad2d: input.size(3)
    out_width = math.ceil(float(in_width) / float(stride))
    out_height = math.ceil(float(in_height) / float(stride))
    pad_along_width = (out_width - 1) * stride + kernel_size - in_width
    pad_along_height = (out_height - 1) * stride + kernel_size - in_height
    pad_left = pad_along_width // 2
    pad_right = pad_along_width - pad_left
    pad_top = pad_along_height // 2
    pad_bottom = pad_along_height - pad_top
    # F.pad(x, (pad_left, pad_right, pad_top, pad_bottom)):
    #   dim 2 (H) gets (pad_top, pad_bottom); dim 3 (W) gets (pad_left, pad_right)
    return (pad_top, pad_bottom), (pad_left, pad_right)


# ----------------------------------------------------------------------------
# Pallas kernel factory
# ----------------------------------------------------------------------------
def _make_rpn_kernel(n_streams, rows_per_step, stride, Wo, A, n_head,
                     compute_dtype):
    k = 3

    def kernel(*refs):
        rows = refs[:n_streams]                       # each ref: [Wp, C]
        ws_ref, bs_ref, wh_ref, bh_ref = refs[n_streams:n_streams + 4]
        o_ref = refs[n_streams + 4]                   # [TH, Wo, n_head]

        # Load each input row once (reused by up to 3 output rows).
        row_vals = [r[...] for r in rows]
        w_head = wh_ref[...]                          # [512, n_head]
        b_head = bh_ref[...]                          # [1, n_head]  (f32)
        b_shared = bs_ref[...]                        # [1, 512]     (f32)

        # Column mask for the "FG-BG diff" columns; hoisted out of the loop
        # (broadcast_in_dim is not CSE'd by JAX).
        col = lax.broadcasted_iota(jnp.int32, (Wo, n_head), 1)
        diff_cols = jnp.logical_and(col >= 2 * A, col < 4 * A)

        for i in range(rows_per_step):
            # ---- shared 3x3 conv for output row i: 9 accumulating matmuls
            acc = jnp.zeros((Wo, 512), jnp.float32)
            for kh in range(k):
                xr = row_vals[i * stride + kh]        # [Wp, C]
                for kw in range(k):
                    xs = xr[kw:kw + (Wo - 1) * stride + 1:stride, :]  # [Wo, C]
                    acc = acc + jnp.dot(xs, ws_ref[kh * k + kw],
                                        preferred_element_type=jnp.float32)
            shared = jnp.maximum(acc + b_shared, 0.0).astype(compute_dtype)

            # ---- fused head: [logits | (FG-BG diff) | bbox | zero pad]
            head = jnp.dot(shared, w_head,
                           preferred_element_type=jnp.float32) + b_head

            # 2-way softmax == sigmoid of the logit difference.
            probs = 1.0 / (1.0 + jnp.exp(-head))
            o_ref[i] = jnp.where(diff_cols, probs, head)

    return kernel


# ----------------------------------------------------------------------------
# Wrapper: padding / layout glue, pallas_call, output slicing & reshape
# ----------------------------------------------------------------------------
def rpn_forward(x, params, anchors_per_location, anchor_stride, *,
                rows_per_step=4, compute_dtype=jnp.bfloat16):
    """x: [B, Cin, H, W] float32 (NCHW, matching the PyTorch module)."""
    B, C, H, W = x.shape
    A = anchors_per_location
    s = anchor_stride
    k = 3

    (pt, pb), (pw_lo, pw_hi) = _same_pad_amounts(H, W, k, s)
    Hp = H + pt + pb
    Wp = W + pw_lo + pw_hi
    Ho = (Hp - k) // s + 1
    Wo = (Wp - k) // s + 1

    TH = max(1, min(rows_per_step, Ho))               # output rows per step
    n_tiles = (Ho + TH - 1) // TH
    Ho_pad = n_tiles * TH
    # Extra bottom zero-rows so the last row-tile's input window is in bounds.
    extra_h = max(0, (Ho_pad - 1) * s + k - Hp)
    n_streams = (TH - 1) * s + k                      # input rows per step

    w_shared = params["w_shared"]                     # [9, C, 512]
    b_shared = params["b_shared"]                     # [1, 512]   (f32)
    w_head = params["w_head"]                         # [512, NH]
    b_head = params["b_head"]                         # [1, NH]    (f32)
    NH = w_head.shape[1]

    # NCHW -> NHWC, SAME padding, optional bf16 cast (f32 accumulation kept).
    x_nhwc = jnp.transpose(x, (0, 2, 3, 1))
    xp = jnp.pad(x_nhwc, ((0, 0), (pt, pb + extra_h), (pw_lo, pw_hi), (0, 0)))
    xp = xp.astype(compute_dtype)
    ws = w_shared.astype(compute_dtype)
    wh = w_head.astype(compute_dtype)

    kernel = _make_rpn_kernel(n_streams, TH, s, Wo, A, NH, compute_dtype)

    # One single-row stream per needed input row offset j: row = t*TH*s + j.
    row_specs = [
        pl.BlockSpec((None, None, Wp, C),
                     (lambda b, t, j=j: (b, t * TH * s + j, 0, 0)))
        for j in range(n_streams)
    ]
    in_specs = row_specs + [
        pl.BlockSpec((9, C, 512), lambda b, t: (0, 0, 0)),   # w_shared taps
        pl.BlockSpec((1, 512), lambda b, t: (0, 0)),         # b_shared
        pl.BlockSpec((512, NH), lambda b, t: (0, 0)),        # fused head W
        pl.BlockSpec((1, NH), lambda b, t: (0, 0)),          # fused head b
    ]
    out_spec = pl.BlockSpec((None, TH, Wo, NH), lambda b, t: (b, t, 0, 0))

    out = pl.pallas_call(
        kernel,
        out_shape=jax.ShapeDtypeStruct((B, Ho_pad, Wo, NH), jnp.float32),
        grid=(B, n_tiles),
        in_specs=in_specs,
        out_specs=out_spec,
        compiler_params=pltpu.CompilerParams(
            dimension_semantics=("parallel", "parallel"),
            vmem_limit_bytes=32 * 1024 * 1024),
    )(*([xp] * n_streams), ws, b_shared, wh, b_head)

    out = out[:, :Ho]                                 # drop padded row tiles
    rpn_class_logits = out[..., 0:2 * A].reshape(B, Ho * Wo * A, 2)
    rpn_class = out[..., 2 * A:4 * A].reshape(B, Ho * Wo * A, 2)
    rpn_bbox = out[..., 4 * A:8 * A].reshape(B, Ho * Wo * A, 4)
    return [rpn_class_logits, rpn_class, rpn_bbox]


# ----------------------------------------------------------------------------
# Parameters: PyTorch Conv2d layouts -> fused matmul layouts
# ----------------------------------------------------------------------------
def make_torch_params(key, depth, anchors_per_location):
    """Deterministic parameters in the PyTorch Conv2d layouts."""
    A = anchors_per_location
    k0, k1, k2, k3, k4, k5 = jax.random.split(key, 6)
    w_shared = 0.05 * jax.random.normal(k0, (512, depth, 3, 3), jnp.float32)
    b_shared = 0.05 * jax.random.normal(k1, (512,), jnp.float32)
    w_class = 0.05 * jax.random.normal(k2, (2 * A, 512, 1, 1), jnp.float32)
    b_class = 0.05 * jax.random.normal(k3, (2 * A,), jnp.float32)
    w_bbox = 0.05 * jax.random.normal(k4, (4 * A, 512, 1, 1), jnp.float32)
    b_bbox = 0.05 * jax.random.normal(k5, (4 * A,), jnp.float32)
    return (w_shared, b_shared, w_class, b_class, w_bbox, b_bbox)


def convert_params(torch_layout, anchors_per_location):
    """Build the fused, lane-dense weights the kernel expects."""
    w_s, b_s, w_c, b_c, w_b, b_b = torch_layout
    A = anchors_per_location
    C = w_s.shape[1]
    NH = max(128, ((8 * A + 127) // 128) * 128)       # lane-dense head width

    # 3x3 conv as 9 taps of [Cin, 512]; tap index = kh*3 + kw.
    w_shared = jnp.transpose(w_s, (2, 3, 1, 0)).reshape(9, C, 512)

    w_class = w_c.reshape(2 * A, 512).T               # [512, 2A]
    w_bbox = w_b.reshape(4 * A, 512).T                # [512, 4A]
    partner = np.arange(2 * A) ^ 1                    # swap (2a, 2a+1) pairs
    w_diff = w_class - w_class[:, partner]
    b_diff = b_c - b_c[partner]

    # Fused head columns: [logits (2A) | FG-BG diff (2A) | bbox (4A) | zeros].
    w_head = jnp.zeros((512, NH), jnp.float32)
    w_head = w_head.at[:, 0:2 * A].set(w_class)
    w_head = w_head.at[:, 2 * A:4 * A].set(w_diff)
    w_head = w_head.at[:, 4 * A:8 * A].set(w_bbox)
    b_head = jnp.zeros((NH,), jnp.float32)
    b_head = b_head.at[0:2 * A].set(b_c)
    b_head = b_head.at[2 * A:4 * A].set(b_diff)
    b_head = b_head.at[4 * A:8 * A].set(b_b)

    return {
        "w_shared": w_shared,
        "b_shared": b_s.reshape(1, 512),
        "w_head": w_head,
        "b_head": b_head.reshape(1, NH),
    }


# ----------------------------------------------------------------------------
# Pure-JAX reference (mirrors the PyTorch forward) for validation.
# ----------------------------------------------------------------------------
def rpn_reference(x, torch_layout, anchors_per_location, anchor_stride):
    w_s, b_s, w_c, b_c, w_b, b_b = torch_layout
    B = x.shape[0]
    s = anchor_stride
    (pt, pb), (pw_lo, pw_hi) = _same_pad_amounts(x.shape[2], x.shape[3], 3, s)
    xp = jnp.pad(x, ((0, 0), (0, 0), (pt, pb), (pw_lo, pw_hi)))
    dn = ("NCHW", "OIHW", "NCHW")
    shared = lax.conv_general_dilated(xp, w_s, (s, s), "VALID",
                                      dimension_numbers=dn)
    shared = jax.nn.relu(shared + b_s[None, :, None, None])
    logits = lax.conv_general_dilated(shared, w_c, (1, 1), "VALID",
                                      dimension_numbers=dn)
    logits = logits + b_c[None, :, None, None]
    logits = jnp.transpose(logits, (0, 2, 3, 1)).reshape(B, -1, 2)
    probs = jax.nn.softmax(logits, axis=2)
    bbox = lax.conv_general_dilated(shared, w_b, (1, 1), "VALID",
                                    dimension_numbers=dn)
    bbox = bbox + b_b[None, :, None, None]
    bbox = jnp.transpose(bbox, (0, 2, 3, 1)).reshape(B, -1, 4)
    return [logits, probs, bbox]


if __name__ == "__main__":
    B, depth, H, W = 2, 8, 16, 16
    anchors_per_location = 3
    anchor_stride = 1

    key = jax.random.PRNGKey(0)
    kx, kp = jax.random.split(key)
    x = jax.random.normal(kx, (B, depth, H, W), jnp.float32)

    torch_layout = make_torch_params(kp, depth, anchors_per_location)
    params = convert_params(torch_layout, anchors_per_location)
    refs = rpn_reference(x, torch_layout, anchors_per_location, anchor_stride)

    # f32 compute path: tight tolerance against the pure-JAX reference.
    outs32 = rpn_forward(x, params, anchors_per_location, anchor_stride,
                         compute_dtype=jnp.float32)
    outs32 = jax.block_until_ready(outs32)
    for o, r in zip(outs32, refs):
        assert o.shape == r.shape and o.dtype == r.dtype
        np.testing.assert_allclose(np.asarray(o), np.asarray(r),
                                   rtol=2e-3, atol=2e-3)

    # bf16 fast path (v6e/v7x MXU peak, f32 accumulation): looser tolerance.
    outs16 = rpn_forward(x, params, anchors_per_location, anchor_stride,
                         compute_dtype=jnp.bfloat16)
    outs16 = jax.block_until_ready(outs16)
    for o, r in zip(outs16, refs):
        assert o.shape == r.shape and o.dtype == r.dtype
        np.testing.assert_allclose(np.asarray(o), np.asarray(r),
                                   rtol=2e-2, atol=2e-2)

    print("KERNEL_OK")
</pallas_src>

<mosaic_0001>
module attributes {stable_mosaic.version = 11 : i64} {
  func.func @kernel(%arg0: i32, %arg1: i32, %arg2: memref<1x1x18x8xf32, #tpu.memory_space<vmem>>, %arg3: memref<1x1x18x8xf32, #tpu.memory_space<vmem>>, %arg4: memref<1x1x18x8xf32, #tpu.memory_space<vmem>>, %arg5: memref<1x1x18x8xf32, #tpu.memory_space<vmem>>, %arg6: memref<1x1x18x8xf32, #tpu.memory_space<vmem>>, %arg7: memref<1x1x18x8xf32, #tpu.memory_space<vmem>>, %arg8: memref<9x8x512xf32, #tpu.memory_space<vmem>>, %arg9: memref<1x512xf32, #tpu.memory_space<vmem>>, %arg10: memref<512x128xf32, #tpu.memory_space<vmem>>, %arg11: memref<1x128xf32, #tpu.memory_space<vmem>>, %arg12: memref<1x4x16x128xf32, #tpu.memory_space<vmem>>) attributes {dimension_semantics = [#tpu.dimension_semantics<parallel>, #tpu.dimension_semantics<parallel>], iteration_bounds = array<i64: 2, 4>, scalar_prefetch = 0 : i64, scratch_operands = 0 : i64, tpu.core_type = #tpu.core_type<tc>, window_params = [{transform_indices = @transform_0, window_bounds = array<i64: 1, 1, 18, 8>}, {transform_indices = @transform_1, window_bounds = array<i64: 1, 1, 18, 8>}, {transform_indices = @transform_2, window_bounds = array<i64: 1, 1, 18, 8>}, {transform_indices = @transform_3, window_bounds = array<i64: 1, 1, 18, 8>}, {transform_indices = @transform_4, window_bounds = array<i64: 1, 1, 18, 8>}, {transform_indices = @transform_5, window_bounds = array<i64: 1, 1, 18, 8>}, {pipeline_mode = #tpu.pipeline_mode<synchronous>, transform_indices = @transform_6, window_bounds = array<i64: 9, 8, 512>}, {pipeline_mode = #tpu.pipeline_mode<synchronous>, transform_indices = @transform_7, window_bounds = array<i64: 1, 512>}, {pipeline_mode = #tpu.pipeline_mode<synchronous>, transform_indices = @transform_8, window_bounds = array<i64: 512, 128>}, {pipeline_mode = #tpu.pipeline_mode<synchronous>, transform_indices = @transform_9, window_bounds = array<i64: 1, 128>}, {transform_indices = @transform_10, window_bounds = array<i64: 1, 4, 16, 128>}]} {
    %c0 = arith.constant 0 : index
    %c0_0 = arith.constant 0 : index
    %c0_1 = arith.constant 0 : index
    %c0_2 = arith.constant 0 : index
    %0 = vector.load %arg2[%c0, %c0_0, %c0_1, %c0_2] : memref<1x1x18x8xf32, #tpu.memory_space<vmem>>, vector<1x1x18x8xf32>
    %1 = vector.shape_cast %0 : vector<1x1x18x8xf32> to vector<18x8xf32>
    %c0_3 = arith.constant 0 : index
    %c0_4 = arith.constant 0 : index
    %c0_5 = arith.constant 0 : index
    %c0_6 = arith.constant 0 : index
    %2 = vector.load %arg3[%c0_3, %c0_4, %c0_5, %c0_6] : memref<1x1x18x8xf32, #tpu.memory_space<vmem>>, vector<1x1x18x8xf32>
    %3 = vector.shape_cast %2 : vector<1x1x18x8xf32> to vector<18x8xf32>
    %c0_7 = arith.constant 0 : index
    %c0_8 = arith.constant 0 : index
    %c0_9 = arith.constant 0 : index
    %c0_10 = arith.constant 0 : index
    %4 = vector.load %arg4[%c0_7, %c0_8, %c0_9, %c0_10] : memref<1x1x18x8xf32, #tpu.memory_space<vmem>>, vector<1x1x18x8xf32>
    %5 = vector.shape_cast %4 : vector<1x1x18x8xf32> to vector<18x8xf32>
    %c0_11 = arith.constant 0 : index
    %c0_12 = arith.constant 0 : index
    %c0_13 = arith.constant 0 : index
    %c0_14 = arith.constant 0 : index
    %6 = vector.load %arg5[%c0_11, %c0_12, %c0_13, %c0_14] : memref<1x1x18x8xf32, #tpu.memory_space<vmem>>, vector<1x1x18x8xf32>
    %7 = vector.shape_cast %6 : vector<1x1x18x8xf32> to vector<18x8xf32>
    %c0_15 = arith.constant 0 : index
    %c0_16 = arith.constant 0 : index
    %c0_17 = arith.constant 0 : index
    %c0_18 = arith.constant 0 : index
    %8 = vector.load %arg6[%c0_15, %c0_16, %c0_17, %c0_18] : memref<1x1x18x8xf32, #tpu.memory_space<vmem>>, vector<1x1x18x8xf32>
    %9 = vector.shape_cast %8 : vector<1x1x18x8xf32> to vector<18x8xf32>
    %c0_19 = arith.constant 0 : index
    %c0_20 = arith.constant 0 : index
    %c0_21 = arith.constant 0 : index
    %c0_22 = arith.constant 0 : index
    %10 = vector.load %arg7[%c0_19, %c0_20, %c0_21, %c0_22] : memref<1x1x18x8xf32, #tpu.memory_space<vmem>>, vector<1x1x18x8xf32>
    %11 = vector.shape_cast %10 : vector<1x1x18x8xf32> to vector<18x8xf32>
    %c0_23 = arith.constant 0 : index
    %c0_24 = arith.constant 0 : index
    %12 = vector.load %arg10[%c0_23, %c0_24] : memref<512x128xf32, #tpu.memory_space<vmem>>, vector<512x128xf32>
    %c0_25 = arith.constant 0 : index
    %c0_26 = arith.constant 0 : index
    %13 = vector.load %arg11[%c0_25, %c0_26] : memref<1x128xf32, #tpu.memory_space<vmem>>, vector<1x128xf32>
    %c0_27 = arith.constant 0 : index
    %c0_28 = arith.constant 0 : index
    %14 = vector.load %arg9[%c0_27, %c0_28] : memref<1x512xf32, #tpu.memory_space<vmem>>, vector<1x512xf32>
    %15 = tpu.iota {dimensions = array<i32: 1>} : vector<16x128xi32>
    %c6_i32 = arith.constant 6 : i32
    %16 = vector.broadcast %c6_i32 : i32 to vector<16x128xi32>
    %17 = arith.cmpi sge, %15, %16 : vector<16x128xi32>
    %c12_i32 = arith.constant 12 : i32
    %18 = vector.broadcast %c12_i32 : i32 to vector<16x128xi32>
    %19 = arith.cmpi slt, %15, %18 : vector<16x128xi32>
    %20 = arith.andi %17, %19 : vector<16x128xi1>
    %cst = arith.constant 0.000000e+00 : f32
    %21 = vector.broadcast %cst : f32 to vector<16x512xf32>
    %22 = vector.extract_strided_slice %1 {offsets = [0, 0], sizes = [16, 8], strides = [1, 1]} : vector<18x8xf32> to vector<16x8xf32>
    %c0_29 = arith.constant 0 : index
    %c0_30 = arith.constant 0 : index
    %c0_31 = arith.constant 0 : index
    %23 = vector.load %arg8[%c0_29, %c0_30, %c0_31] : memref<9x8x512xf32, #tpu.memory_space<vmem>>, vector<1x8x512xf32>
    %24 = vector.shape_cast %23 : vector<1x8x512xf32> to vector<8x512xf32>
    %cst_32 = arith.constant dense<0.000000e+00> : vector<16x512xf32>
    %25 = tpu.matmul %22, %24, %cst_32 {dimension_numbers = #tpu.dot_dimension_numbers<[1], [0], [0], [1], [0, 0, 1, 1], [], []>} : vector<16x8xf32>, vector<8x512xf32>, vector<16x512xf32> -> vector<16x512xf32>
    %26 = arith.addf %21, %25 : vector<16x512xf32>
    %27 = vector.extract_strided_slice %1 {offsets = [1, 0], sizes = [16, 8], strides = [1, 1]} : vector<18x8xf32> to vector<16x8xf32>
    %c1 = arith.constant 1 : index
    %c0_33 = arith.constant 0 : index
    %c0_34 = arith.constant 0 : index
    %28 = vector.load %arg8[%c1, %c0_33, %c0_34] : memref<9x8x512xf32, #tpu.memory_space<vmem>>, vector<1x8x512xf32>
    %29 = vector.shape_cast %28 : vector<1x8x512xf32> to vector<8x512xf32>
    %cst_35 = arith.constant dense<0.000000e+00> : vector<16x512xf32>
    %30 = tpu.matmul %27, %29, %cst_35 {dimension_numbers = #tpu.dot_dimension_numbers<[1], [0], [0], [1], [0, 0, 1, 1], [], []>} : vector<16x8xf32>, vector<8x512xf32>, vector<16x512xf32> -> vector<16x512xf32>
    %31 = arith.addf %26, %30 : vector<16x512xf32>
    %32 = vector.extract_strided_slice %1 {offsets = [2, 0], sizes = [16, 8], strides = [1, 1]} : vector<18x8xf32> to vector<16x8xf32>
    %c2 = arith.constant 2 : index
    %c0_36 = arith.constant 0 : index
    %c0_37 = arith.constant 0 : index
    %33 = vector.load %arg8[%c2, %c0_36, %c0_37] : memref<9x8x512xf32, #tpu.memory_space<vmem>>, vector<1x8x512xf32>
    %34 = vector.shape_cast %33 : vector<1x8x512xf32> to vector<8x512xf32>
    %cst_38 = arith.constant dense<0.000000e+00> : vector<16x512xf32>
    %35 = tpu.matmul %32, %34, %cst_38 {dimension_numbers = #tpu.dot_dimension_numbers<[1], [0], [0], [1], [0, 0, 1, 1], [], []>} : vector<16x8xf32>, vector<8x512xf32>, vector<16x512xf32> -> vector<16x512xf32>
    %36 = arith.addf %31, %35 : vector<16x512xf32>
    %37 = vector.extract_strided_slice %3 {offsets = [0, 0], sizes = [16, 8], strides = [1, 1]} : vector<18x8xf32> to vector<16x8xf32>
    %c3 = arith.constant 3 : index
    %c0_39 = arith.constant 0 : index
    %c0_40 = arith.constant 0 : index
    %38 = vector.load %arg8[%c3, %c0_39, %c0_40] : memref<9x8x512xf32, #tpu.memory_space<vmem>>, vector<1x8x512xf32>
    %39 = vector.shape_cast %38 : vector<1x8x512xf32> to vector<8x512xf32>
    %cst_41 = arith.constant dense<0.000000e+00> : vector<16x512xf32>
    %40 = tpu.matmul %37, %39, %cst_41 {dimension_numbers = #tpu.dot_dimension_numbers<[1], [0], [0], [1], [0, 0, 1, 1], [], []>} : vector<16x8xf32>, vector<8x512xf32>, vector<16x512xf32> -> vector<16x512xf32>
    %41 = arith.addf %36, %40 : vector<16x512xf32>
    %42 = vector.extract_strided_slice %3 {offsets = [1, 0], sizes = [16, 8], strides = [1, 1]} : vector<18x8xf32> to vector<16x8xf32>
    %c4 = arith.constant 4 : index
    %c0_42 = arith.constant 0 : index
    %c0_43 = arith.constant 0 : index
    %43 = vector.load %arg8[%c4, %c0_42, %c0_43] : memref<9x8x512xf32, #tpu.memory_space<vmem>>, vector<1x8x512xf32>
    %44 = vector.shape_cast %43 : vector<1x8x512xf32> to vector<8x512xf32>
    %cst_44 = arith.constant dense<0.000000e+00> : vector<16x512xf32>
    %45 = tpu.matmul %42, %44, %cst_44 {dimension_numbers = #tpu.dot_dimension_numbers<[1], [0], [0], [1], [0, 0, 1, 1], [], []>} : vector<16x8xf32>, vector<8x512xf32>, vector<16x512xf32> -> vector<16x512xf32>
    %46 = arith.addf %41, %45 : vector<16x512xf32>
    %47 = vector.extract_strided_slice %3 {offsets = [2, 0], sizes = [16, 8], strides = [1, 1]} : vector<18x8xf32> to vector<16x8xf32>
    %c5 = arith.constant 5 : index
    %c0_45 = arith.constant 0 : index
    %c0_46 = arith.constant 0 : index
    %48 = vector.load %arg8[%c5, %c0_45, %c0_46] : memref<9x8x512xf32, #tpu.memory_space<vmem>>, vector<1x8x512xf32>
    %49 = vector.shape_cast %48 : vector<1x8x512xf32> to vector<8x512xf32>
    %cst_47 = arith.constant dense<0.000000e+00> : vector<16x512xf32>
    %50 = tpu.matmul %47, %49, %cst_47 {dimension_numbers = #tpu.dot_dimension_numbers<[1], [0], [0], [1], [0, 0, 1, 1], [], []>} : vector<16x8xf32>, vector<8x512xf32>, vector<16x512xf32> -> vector<16x512xf32>
    %51 = arith.addf %46, %50 : vector<16x512xf32>
    %52 = vector.extract_strided_slice %5 {offsets = [0, 0], sizes = [16, 8], strides = [1, 1]} : vector<18x8xf32> to vector<16x8xf32>
    %c6 = arith.constant 6 : index
    %c0_48 = arith.constant 0 : index
    %c0_49 = arith.constant 0 : index
    %53 = vector.load %arg8[%c6, %c0_48, %c0_49] : memref<9x8x512xf32, #tpu.memory_space<vmem>>, vector<1x8x512xf32>
    %54 = vector.shape_cast %53 : vector<1x8x512xf32> to vector<8x512xf32>
    %cst_50 = arith.constant dense<0.000000e+00> : vector<16x512xf32>
    %55 = tpu.matmul %52, %54, %cst_50 {dimension_numbers = #tpu.dot_dimension_numbers<[1], [0], [0], [1], [0, 0, 1, 1], [], []>} : vector<16x8xf32>, vector<8x512xf32>, vector<16x512xf32> -> vector<16x512xf32>
    %56 = arith.addf %51, %55 : vector<16x512xf32>
    %57 = vector.extract_strided_slice %5 {offsets = [1, 0], sizes = [16, 8], strides = [1, 1]} : vector<18x8xf32> to vector<16x8xf32>
    %c7 = arith.constant 7 : index
    %c0_51 = arith.constant 0 : index
    %c0_52 = arith.constant 0 : index
    %58 = vector.load %arg8[%c7, %c0_51, %c0_52] : memref<9x8x512xf32, #tpu.memory_space<vmem>>, vector<1x8x512xf32>
    %59 = vector.shape_cast %58 : vector<1x8x512xf32> to vector<8x512xf32>
    %cst_53 = arith.constant dense<0.000000e+00> : vector<16x512xf32>
    %60 = tpu.matmul %57, %59, %cst_53 {dimension_numbers = #tpu.dot_dimension_numbers<[1], [0], [0], [1], [0, 0, 1, 1], [], []>} : vector<16x8xf32>, vector<8x512xf32>, vector<16x512xf32> -> vector<16x512xf32>
    %61 = arith.addf %56, %60 : vector<16x512xf32>
    %62 = vector.extract_strided_slice %5 {offsets = [2, 0], sizes = [16, 8], strides = [1, 1]} : vector<18x8xf32> to vector<16x8xf32>
    %c8 = arith.constant 8 : index
    %c0_54 = arith.constant 0 : index
    %c0_55 = arith.constant 0 : index
    %63 = vector.load %arg8[%c8, %c0_54, %c0_55] : memref<9x8x512xf32, #tpu.memory_space<vmem>>, vector<1x8x512xf32>
    %64 = vector.shape_cast %63 : vector<1x8x512xf32> to vector<8x512xf32>
    %cst_56 = arith.constant dense<0.000000e+00> : vector<16x512xf32>
    %65 = tpu.matmul %62, %64, %cst_56 {dimension_numbers = #tpu.dot_dimension_numbers<[1], [0], [0], [1], [0, 0, 1, 1], [], []>} : vector<16x8xf32>, vector<8x512xf32>, vector<16x512xf32> -> vector<16x512xf32>
    %66 = arith.addf %61, %65 : vector<16x512xf32>
    %67 = vector.broadcast %14 : vector<1x512xf32> to vector<16x512xf32>
    %68 = arith.addf %66, %67 : vector<16x512xf32>
    %cst_57 = arith.constant 0.000000e+00 : f32
    %69 = vector.broadcast %cst_57 : f32 to vector<16x512xf32>
    %70 = arith.maximumf %68, %69 : vector<16x512xf32>
    %cst_58 = arith.constant dense<0.000000e+00> : vector<16x128xf32>
    %71 = tpu.matmul %70, %12, %cst_58 {dimension_numbers = #tpu.dot_dimension_numbers<[1], [0], [0], [1], [0, 0, 1, 1], [], []>} : vector<16x512xf32>, vector<512x128xf32>, vector<16x128xf32> -> vector<16x128xf32>
    %72 = vector.broadcast %13 : vector<1x128xf32> to vector<16x128xf32>
    %73 = arith.addf %71, %72 : vector<16x128xf32>
    %cst_59 = arith.constant 0.000000e+00 : f32
    %74 = vector.broadcast %cst_59 : f32 to vector<16x128xf32>
    %75 = arith.subf %74, %73 : vector<16x128xf32>
    %76 = math.exp %75 : vector<16x128xf32>
    %cst_60 = arith.constant 1.000000e+00 : f32
    %77 = vector.broadcast %cst_60 : f32 to vector<16x128xf32>
    %78 = arith.addf %77, %76 : vector<16x128xf32>
    %cst_61 = arith.constant 1.000000e+00 : f32
    %79 = vector.broadcast %cst_61 : f32 to vector<16x128xf32>
    %80 = arith.divf %79, %78 : vector<16x128xf32>
    %81 = arith.select %20, %80, %73 : vector<16x128xi1>, vector<16x128xf32>
    %c0_62 = arith.constant 0 : index
    %c0_63 = arith.constant 0 : index
    %c0_64 = arith.constant 0 : index
    %c0_65 = arith.constant 0 : index
    %82 = vector.load %arg12[%c0_62, %c0_63, %c0_64, %c0_65] : memref<1x4x16x128xf32, #tpu.memory_space<vmem>>, vector<1x1x16x128xf32>
    %83 = vector.shape_cast %82 : vector<1x1x16x128xf32> to vector<16x128xf32>
    %84 = vector.shape_cast %81 : vector<16x128xf32> to vector<1x1x16x128xf32>
    tpu.vector_store %arg12[%c0_62, %c0_63, %c0_64, %c0_65], %84 {strides = array<i32>} : memref<1x4x16x128xf32, #tpu.memory_space<vmem>>, vector<1x1x16x128xf32>,
    %cst_66 = arith.constant 0.000000e+00 : f32
    %85 = vector.broadcast %cst_66 : f32 to vector<16x512xf32>
    %86 = vector.extract_strided_slice %3 {offsets = [0, 0], sizes = [16, 8], strides = [1, 1]} : vector<18x8xf32> to vector<16x8xf32>
    %c0_67 = arith.constant 0 : index
    %c0_68 = arith.constant 0 : index
    %c0_69 = arith.constant 0 : index
    %87 = vector.load %arg8[%c0_67, %c0_68, %c0_69] : memref<9x8x512xf32, #tpu.memory_space<vmem>>, vector<1x8x512xf32>
    %88 = vector.shape_cast %87 : vector<1x8x512xf32> to vector<8x512xf32>
    %cst_70 = arith.constant dense<0.000000e+00> : vector<16x512xf32>
    %89 = tpu.matmul %86, %88, %cst_70 {dimension_numbers = #tpu.dot_dimension_numbers<[1], [0], [0], [1], [0, 0, 1, 1], [], []>} : vector<16x8xf32>, vector<8x512xf32>, vector<16x512xf32> -> vector<16x512xf32>
    %90 = arith.addf %85, %89 : vector<16x512xf32>
    %91 = vector.extract_strided_slice %3 {offsets = [1, 0], sizes = [16, 8], strides = [1, 1]} : vector<18x8xf32> to vector<16x8xf32>
    %c1_71 = arith.constant 1 : index
    %c0_72 = arith.constant 0 : index
    %c0_73 = arith.constant 0 : index
    %92 = vector.load %arg8[%c1_71, %c0_72, %c0_73] : memref<9x8x512xf32, #tpu.memory_space<vmem>>, vector<1x8x512xf32>
    %93 = vector.shape_cast %92 : vector<1x8x512xf32> to vector<8x512xf32>
    %cst_74 = arith.constant dense<0.000000e+00> : vector<16x512xf32>
    %94 = tpu.matmul %91, %93, %cst_74 {dimension_numbers = #tpu.dot_dimension_numbers<[1], [0], [0], [1], [0, 0, 1, 1], [], []>} : vector<16x8xf32>, vector<8x512xf32>, vector<16x512xf32> -> vector<16x512xf32>
    %95 = arith.addf %90, %94 : vector<16x512xf32>
    %96 = vector.extract_strided_slice %3 {offsets = [2, 0], sizes = [16, 8], strides = [1, 1]} : vector<18x8xf32> to vector<16x8xf32>
    %c2_75 = arith.constant 2 : index
    %c0_76 = arith.constant 0 : index
    %c0_77 = arith.constant 0 : index
    %97 = vector.load %arg8[%c2_75, %c0_76, %c0_77] : memref<9x8x512xf32, #tpu.memory_space<vmem>>, vector<1x8x512xf32>
    %98 = vector.shape_cast %97 : vector<1x8x512xf32> to vector<8x512xf32>
    %cst_78 = arith.constant dense<0.000000e+00> : vector<16x512xf32>
    %99 = tpu.matmul %96, %98, %cst_78 {dimension_numbers = #tpu.dot_dimension_numbers<[1], [0], [0], [1], [0, 0, 1, 1], [], []>} : vector<16x8xf32>, vector<8x512xf32>, vector<16x512xf32> -> vector<16x512xf32>
    %100 = arith.addf %95, %99 : vector<16x512xf32>
    %101 = vector.extract_strided_slice %5 {offsets = [0, 0], sizes = [16, 8], strides = [1, 1]} : vector<18x8xf32> to vector<16x8xf32>
    %c3_79 = arith.constant 3 : index
    %c0_80 = arith.constant 0 : index
    %c0_81 = arith.constant 0 : index
    %102 = vector.load %arg8[%c3_79, %c0_80, %c0_81] : memref<9x8x512xf32, #tpu.memory_space<vmem>>, vector<1x8x512xf32>
    %103 = vector.shape_cast %102 : vector<1x8x512xf32> to vector<8x512xf32>
    %cst_82 = arith.constant dense<0.000000e+00> : vector<16x512xf32>
    %104 = tpu.matmul %101, %103, %cst_82 {dimension_numbers = #tpu.dot_dimension_numbers<[1], [0], [0], [1], [0, 0, 1, 1], [], []>} : vector<16x8xf32>, vector<8x512xf32>, vector<16x512xf32> -> vector<16x512xf32>
    %105 = arith.addf %100, %104 : vector<16x512xf32>
    %106 = vector.extract_strided_slice %5 {offsets = [1, 0], sizes = [16, 8], strides = [1, 1]} : vector<18x8xf32> to vector<16x8xf32>
    %c4_83 = arith.constant 4 : index
    %c0_84 = arith.constant 0 : index
    %c0_85 = arith.constant 0 : index
    %107 = vector.load %arg8[%c4_83, %c0_84, %c0_85] : memref<9x8x512xf32, #tpu.memory_space<vmem>>, vector<1x8x512xf32>
    %108 = vector.shape_cast %107 : vector<1x8x512xf32> to vector<8x512xf32>
    %cst_86 = arith.constant dense<0.000000e+00> : vector<16x512xf32>
    %109 = tpu.matmul %106, %108, %cst_86 {dimension_numbers = #tpu.dot_dimension_numbers<[1], [0], [0], [1], [0, 0, 1, 1], [], []>} : vector<16x8xf32>, vector<8x512xf32>, vector<16x512xf32> -> vector<16x512xf32>
    %110 = arith.addf %105, %109 : vector<16x512xf32>
    %111 = vector.extract_strided_slice %5 {offsets = [2, 0], sizes = [16, 8], strides = [1, 1]} : vector<18x8xf32> to vector<16x8xf32>
    %c5_87 = arith.constant 5 : index
    %c0_88 = arith.constant 0 : index
    %c0_89 = arith.constant 0 : index
    %112 = vector.load %arg8[%c5_87, %c0_88, %c0_89] : memref<9x8x512xf32, #tpu.memory_space<vmem>>, vector<1x8x512xf32>
    %113 = vector.shape_cast %112 : vector<1x8x512xf32> to vector<8x512xf32>
    %cst_90 = arith.constant dense<0.000000e+00> : vector<16x512xf32>
    %114 = tpu.matmul %111, %113, %cst_90 {dimension_numbers = #tpu.dot_dimension_numbers<[1], [0], [0], [1], [0, 0, 1, 1], [], []>} : vector<16x8xf32>, vector<8x512xf32>, vector<16x512xf32> -> vector<16x512xf32>
    %115 = arith.addf %110, %114 : vector<16x512xf32>
    %116 = vector.extract_strided_slice %7 {offsets = [0, 0], sizes = [16, 8], strides = [1, 1]} : vector<18x8xf32> to vector<16x8xf32>
    %c6_91 = arith.constant 6 : index
    %c0_92 = arith.constant 0 : index
    %c0_93 = arith.constant 0 : index
    %117 = vector.load %arg8[%c6_91, %c0_92, %c0_93] : memref<9x8x512xf32, #tpu.memory_space<vmem>>, vector<1x8x512xf32>
    %118 = vector.shape_cast %117 : vector<1x8x512xf32> to vector<8x512xf32>
    %cst_94 = arith.constant dense<0.000000e+00> : vector<16x512xf32>
    %119 = tpu.matmul %116, %118, %cst_94 {dimension_numbers = #tpu.dot_dimension_numbers<[1], [0], [0], [1], [0, 0, 1, 1], [], []>} : vector<16x8xf32>, vector<8x512xf32>, vector<16x512xf32> -> vector<16x512xf32>
    %120 = arith.addf %115, %119 : vector<16x512xf32>
    %121 = vector.extract_strided_slice %7 {offsets = [1, 0], sizes = [16, 8], strides = [1, 1]} : vector<18x8xf32> to vector<16x8xf32>
    %c7_95 = arith.constant 7 : index
    %c0_96 = arith.constant 0 : index
    %c0_97 = arith.constant 0 : index
    %122 = vector.load %arg8[%c7_95, %c0_96, %c0_97] : memref<9x8x512xf32, #tpu.memory_space<vmem>>, vector<1x8x512xf32>
    %123 = vector.shape_cast %122 : vector<1x8x512xf32> to vector<8x512xf32>
    %cst_98 = arith.constant dense<0.000000e+00> : vector<16x512xf32>
    %124 = tpu.matmul %121, %123, %cst_98 {dimension_numbers = #tpu.dot_dimension_numbers<[1], [0], [0], [1], [0, 0, 1, 1], [], []>} : vector<16x8xf32>, vector<8x512xf32>, vector<16x512xf32> -> vector<16x512xf32>
    %125 = arith.addf %120, %124 : vector<16x512xf32>
    %126 = vector.extract_strided_slice %7 {offsets = [2, 0], sizes = [16, 8], strides = [1, 1]} : vector<18x8xf32> to vector<16x8xf32>
    %c8_99 = arith.constant 8 : index
    %c0_100 = arith.constant 0 : index
    %c0_101 = arith.constant 0 : index
    %127 = vector.load %arg8[%c8_99, %c0_100, %c0_101] : memref<9x8x512xf32, #tpu.memory_space<vmem>>, vector<1x8x512xf32>
    %128 = vector.shape_cast %127 : vector<1x8x512xf32> to vector<8x512xf32>
    %cst_102 = arith.constant dense<0.000000e+00> : vector<16x512xf32>
    %129 = tpu.matmul %126, %128, %cst_102 {dimension_numbers = #tpu.dot_dimension_numbers<[1], [0], [0], [1], [0, 0, 1, 1], [], []>} : vector<16x8xf32>, vector<8x512xf32>, vector<16x512xf32> -> vector<16x512xf32>
    %130 = arith.addf %125, %129 : vector<16x512xf32>
    %131 = vector.broadcast %14 : vector<1x512xf32> to vector<16x512xf32>
    %132 = arith.addf %130, %131 : vector<16x512xf32>
    %cst_103 = arith.constant 0.000000e+00 : f32
    %133 = vector.broadcast %cst_103 : f32 to vector<16x512xf32>
    %134 = arith.maximumf %132, %133 : vector<16x512xf32>
    %cst_104 = arith.constant dense<0.000000e+00> : vector<16x128xf32>
    %135 = tpu.matmul %134, %12, %cst_104 {dimension_numbers = #tpu.dot_dimension_numbers<[1], [0], [0], [1], [0, 0, 1, 1], [], []>} : vector<16x512xf32>, vector<512x128xf32>, vector<16x128xf32> -> vector<16x128xf32>
    %136 = vector.broadcast %13 : vector<1x128xf32> to vector<16x128xf32>
    %137 = arith.addf %135, %136 : vector<16x128xf32>
    %cst_105 = arith.constant 0.000000e+00 : f32
    %138 = vector.broadcast %cst_105 : f32 to vector<16x128xf32>
    %139 = arith.subf %138, %137 : vector<16x128xf32>
    %140 = math.exp %139 : vector<16x128xf32>
    %cst_106 = arith.constant 1.000000e+00 : f32
    %141 = vector.broadcast %cst_106 : f32 to vector<16x128xf32>
    %142 = arith.addf %141, %140 : vector<16x128xf32>
    %cst_107 = arith.constant 1.000000e+00 : f32
    %143 = vector.broadcast %cst_107 : f32 to vector<16x128xf32>
    %144 = arith.divf %143, %142 : vector<16x128xf32>
    %145 = arith.select %20, %144, %137 : vector<16x128xi1>, vector<16x128xf32>
    %c0_108 = arith.constant 0 : index
    %c1_109 = arith.constant 1 : index
    %c0_110 = arith.constant 0 : index
    %c0_111 = arith.constant 0 : index
    %146 = vector.load %arg12[%c0_108, %c1_109, %c0_110, %c0_111] : memref<1x4x16x128xf32, #tpu.memory_space<vmem>>, vector<1x1x16x128xf32>
    %147 = vector.shape_cast %146 : vector<1x1x16x128xf32> to vector<16x128xf32>
    %148 = vector.shape_cast %145 : vector<16x128xf32> to vector<1x1x16x128xf32>
    tpu.vector_store %arg12[%c0_108, %c1_109, %c0_110, %c0_111], %148 {strides = array<i32>} : memref<1x4x16x128xf32, #tpu.memory_space<vmem>>, vector<1x1x16x128xf32>,
    %cst_112 = arith.constant 0.000000e+00 : f32
    %149 = vector.broadcast %cst_112 : f32 to vector<16x512xf32>
    %150 = vector.extract_strided_slice %5 {offsets = [0, 0], sizes = [16, 8], strides = [1, 1]} : vector<18x8xf32> to vector<16x8xf32>
    %c0_113 = arith.constant 0 : index
    %c0_114 = arith.constant 0 : index
    %c0_115 = arith.constant 0 : index
    %151 = vector.load %arg8[%c0_113, %c0_114, %c0_115] : memref<9x8x512xf32, #tpu.memory_space<vmem>>, vector<1x8x512xf32>
    %152 = vector.shape_cast %151 : vector<1x8x512xf32> to vector<8x512xf32>
    %cst_116 = arith.constant dense<0.000000e+00> : vector<16x512xf32>
    %153 = tpu.matmul %150, %152, %cst_116 {dimension_numbers = #tpu.dot_dimension_numbers<[1], [0], [0], [1], [0, 0, 1, 1], [], []>} : vector<16x8xf32>, vector<8x512xf32>, vector<16x512xf32> -> vector<16x512xf32>
    %154 = arith.addf %149, %153 : vector<16x512xf32>
    %155 = vector.extract_strided_slice %5 {offsets = [1, 0], sizes = [16, 8], strides = [1, 1]} : vector<18x8xf32> to vector<16x8xf32>
    %c1_117 = arith.constant 1 : index
    %c0_118 = arith.constant 0 : index
    %c0_119 = arith.constant 0 : index
    %156 = vector.load %arg8[%c1_117, %c0_118, %c0_119] : memref<9x8x512xf32, #tpu.memory_space<vmem>>, vector<1x8x512xf32>
    %157 = vector.shape_cast %156 : vector<1x8x512xf32> to vector<8x512xf32>
    %cst_120 = arith.constant dense<0.000000e+00> : vector<16x512xf32>
    %158 = tpu.matmul %155, %157, %cst_120 {dimension_numbers = #tpu.dot_dimension_numbers<[1], [0], [0], [1], [0, 0, 1, 1], [], []>} : vector<16x8xf32>, vector<8x512xf32>, vector<16x512xf32> -> vector<16x512xf32>
    %159 = arith.addf %154, %158 : vector<16x512xf32>
    %160 = vector.extract_strided_slice %5 {offsets = [2, 0], sizes = [16, 8], strides = [1, 1]} : vector<18x8xf32> to vector<16x8xf32>
    %c2_121 = arith.constant 2 : index
    %c0_122 = arith.constant 0 : index
    %c0_123 = arith.constant 0 : index
    %161 = vector.load %arg8[%c2_121, %c0_122, %c0_123] : memref<9x8x512xf32, #tpu.memory_space<vmem>>, vector<1x8x512xf32>
    %162 = vector.shape_cast %161 : vector<1x8x512xf32> to vector<8x512xf32>
    %cst_124 = arith.constant dense<0.000000e+00> : vector<16x512xf32>
    %163 = tpu.matmul %160, %162, %cst_124 {dimension_numbers = #tpu.dot_dimension_numbers<[1], [0], [0], [1], [0, 0, 1, 1], [], []>} : vector<16x8xf32>, vector<8x512xf32>, vector<16x512xf32> -> vector<16x512xf32>
    %164 = arith.addf %159, %163 : vector<16x512xf32>
    %165 = vector.extract_strided_slice %7 {offsets = [0, 0], sizes = [16, 8], strides = [1, 1]} : vector<18x8xf32> to vector<16x8xf32>
    %c3_125 = arith.constant 3 : index
    %c0_126 = arith.constant 0 : index
    %c0_127 = arith.constant 0 : index
    %166 = vector.load %arg8[%c3_125, %c0_126, %c0_127] : memref<9x8x512xf32, #tpu.memory_space<vmem>>, vector<1x8x512xf32>
    %167 = vector.shape_cast %166 : vector<1x8x512xf32> to vector<8x512xf32>
    %cst_128 = arith.constant dense<0.000000e+00> : vector<16x512xf32>
    %168 = tpu.matmul %165, %167, %cst_128 {dimension_numbers = #tpu.dot_dimension_numbers<[1], [0], [0], [1], [0, 0, 1, 1], [], []>} : vector<16x8xf32>, vector<8x512xf32>, vector<16x512xf32> -> vector<16x512xf32>
    %169 = arith.addf %164, %168 : vector<16x512xf32>
    %170 = vector.extract_strided_slice %7 {offsets = [1, 0], sizes = [16, 8], strides = [1, 1]} : vector<18x8xf32> to vector<16x8xf32>
    %c4_129 = arith.constant 4 : index
    %c0_130 = arith.constant 0 : index
    %c0_131 = arith.constant 0 : index
    %171 = vector.load %arg8[%c4_129, %c0_130, %c0_131] : memref<9x8x512xf32, #tpu.memory_space<vmem>>, vector<1x8x512xf32>
    %172 = vector.shape_cast %171 : vector<1x8x512xf32> to vector<8x512xf32>
    %cst_132 = arith.constant dense<0.000000e+00> : vector<16x512xf32>
    %173 = tpu.matmul %170, %172, %cst_132 {dimension_numbers = #tpu.dot_dimension_numbers<[1], [0], [0], [1], [0, 0, 1, 1], [], []>} : vector<16x8xf32>, vector<8x512xf32>, vector<16x512xf32> -> vector<16x512xf32>
    %174 = arith.addf %169, %173 : vector<16x512xf32>
    %175 = vector.extract_strided_slice %7 {offsets = [2, 0], sizes = [16, 8], strides = [1, 1]} : vector<18x8xf32> to vector<16x8xf32>
    %c5_133 = arith.constant 5 : index
    %c0_134 = arith.constant 0 : index
    %c0_135 = arith.constant 0 : index
    %176 = vector.load %arg8[%c5_133, %c0_134, %c0_135] : memref<9x8x512xf32, #tpu.memory_space<vmem>>, vector<1x8x512xf32>
    %177 = vector.shape_cast %176 : vector<1x8x512xf32> to vector<8x512xf32>
    %cst_136 = arith.constant dense<0.000000e+00> : vector<16x512xf32>
    %178 = tpu.matmul %175, %177, %cst_136 {dimension_numbers = #tpu.dot_dimension_numbers<[1], [0], [0], [1], [0, 0, 1, 1], [], []>} : vector<16x8xf32>, vector<8x512xf32>, vector<16x512xf32> -> vector<16x512xf32>
    %179 = arith.addf %174, %178 : vector<16x512xf32>
    %180 = vector.extract_strided_slice %9 {offsets = [0, 0], sizes = [16, 8], strides = [1, 1]} : vector<18x8xf32> to vector<16x8xf32>
    %c6_137 = arith.constant 6 : index
    %c0_138 = arith.constant 0 : index
    %c0_139 = arith.constant 0 : index
    %181 = vector.load %arg8[%c6_137, %c0_138, %c0_139] : memref<9x8x512xf32, #tpu.memory_space<vmem>>, vector<1x8x512xf32>
    %182 = vector.shape_cast %181 : vector<1x8x512xf32> to vector<8x512xf32>
    %cst_140 = arith.constant dense<0.000000e+00> : vector<16x512xf32>
    %183 = tpu.matmul %180, %182, %cst_140 {dimension_numbers = #tpu.dot_dimension_numbers<[1], [0], [0], [1], [0, 0, 1, 1], [], []>} : vector<16x8xf32>, vector<8x512xf32>, vector<16x512xf32> -> vector<16x512xf32>
    %184 = arith.addf %179, %183 : vector<16x512xf32>
    %185 = vector.extract_strided_slice %9 {offsets = [1, 0], sizes = [16, 8], strides = [1, 1]} : vector<18x8xf32> to vector<16x8xf32>
    %c7_141 = arith.constant 7 : index
    %c0_142 = arith.constant 0 : index
    %c0_143 = arith.constant 0 : index
    %186 = vector.load %arg8[%c7_141, %c0_142, %c0_143] : memref<9x8x512xf32, #tpu.memory_space<vmem>>, vector<1x8x512xf32>
    %187 = vector.shape_cast %186 : vector<1x8x512xf32> to vector<8x512xf32>
    %cst_144 = arith.constant dense<0.000000e+00> : vector<16x512xf32>
    %188 = tpu.matmul %185, %187, %cst_144 {dimension_numbers = #tpu.dot_dimension_numbers<[1], [0], [0], [1], [0, 0, 1, 1], [], []>} : vector<16x8xf32>, vector<8x512xf32>, vector<16x512xf32> -> vector<16x512xf32>
    %189 = arith.addf %184, %188 : vector<16x512xf32>
    %190 = vector.extract_strided_slice %9 {offsets = [2, 0], sizes = [16, 8], strides = [1, 1]} : vector<18x8xf32> to vector<16x8xf32>
    %c8_145 = arith.constant 8 : index
    %c0_146 = arith.constant 0 : index
    %c0_147 = arith.constant 0 : index
    %191 = vector.load %arg8[%c8_145, %c0_146, %c0_147] : memref<9x8x512xf32, #tpu.memory_space<vmem>>, vector<1x8x512xf32>
    %192 = vector.shape_cast %191 : vector<1x8x512xf32> to vector<8x512xf32>
    %cst_148 = arith.constant dense<0.000000e+00> : vector<16x512xf32>
    %193 = tpu.matmul %190, %192, %cst_148 {dimension_numbers = #tpu.dot_dimension_numbers<[1], [0], [0], [1], [0, 0, 1, 1], [], []>} : vector<16x8xf32>, vector<8x512xf32>, vector<16x512xf32> -> vector<16x512xf32>
    %194 = arith.addf %189, %193 : vector<16x512xf32>
    %195 = vector.broadcast %14 : vector<1x512xf32> to vector<16x512xf32>
    %196 = arith.addf %194, %195 : vector<16x512xf32>
    %cst_149 = arith.constant 0.000000e+00 : f32
    %197 = vector.broadcast %cst_149 : f32 to vector<16x512xf32>
    %198 = arith.maximumf %196, %197 : vector<16x512xf32>
    %cst_150 = arith.constant dense<0.000000e+00> : vector<16x128xf32>
    %199 = tpu.matmul %198, %12, %cst_150 {dimension_numbers = #tpu.dot_dimension_numbers<[1], [0], [0], [1], [0, 0, 1, 1], [], []>} : vector<16x512xf32>, vector<512x128xf32>, vector<16x128xf32> -> vector<16x128xf32>
    %200 = vector.broadcast %13 : vector<1x128xf32> to vector<16x128xf32>
    %201 = arith.addf %199, %200 : vector<16x128xf32>
    %cst_151 = arith.constant 0.000000e+00 : f32
    %202 = vector.broadcast %cst_151 : f32 to vector<16x128xf32>
    %203 = arith.subf %202, %201 : vector<16x128xf32>
    %204 = math.exp %203 : vector<16x128xf32>
    %cst_152 = arith.constant 1.000000e+00 : f32
    %205 = vector.broadcast %cst_152 : f32 to vector<16x128xf32>
    %206 = arith.addf %205, %204 : vector<16x128xf32>
    %cst_153 = arith.constant 1.000000e+00 : f32
    %207 = vector.broadcast %cst_153 : f32 to vector<16x128xf32>
    %208 = arith.divf %207, %206 : vector<16x128xf32>
    %209 = arith.select %20, %208, %201 : vector<16x128xi1>, vector<16x128xf32>
    %c0_154 = arith.constant 0 : index
    %c2_155 = arith.constant 2 : index
    %c0_156 = arith.constant 0 : index
    %c0_157 = arith.constant 0 : index
    %210 = vector.load %arg12[%c0_154, %c2_155, %c0_156, %c0_157] : memref<1x4x16x128xf32, #tpu.memory_space<vmem>>, vector<1x1x16x128xf32>
    %211 = vector.shape_cast %210 : vector<1x1x16x128xf32> to vector<16x128xf32>
    %212 = vector.shape_cast %209 : vector<16x128xf32> to vector<1x1x16x128xf32>
    tpu.vector_store %arg12[%c0_154, %c2_155, %c0_156, %c0_157], %212 {strides = array<i32>} : memref<1x4x16x128xf32, #tpu.memory_space<vmem>>, vector<1x1x16x128xf32>,
    %cst_158 = arith.constant 0.000000e+00 : f32
    %213 = vector.broadcast %cst_158 : f32 to vector<16x512xf32>
    %214 = vector.extract_strided_slice %7 {offsets = [0, 0], sizes = [16, 8], strides = [1, 1]} : vector<18x8xf32> to vector<16x8xf32>
    %c0_159 = arith.constant 0 : index
    %c0_160 = arith.constant 0 : index
    %c0_161 = arith.constant 0 : index
    %215 = vector.load %arg8[%c0_159, %c0_160, %c0_161] : memref<9x8x512xf32, #tpu.memory_space<vmem>>, vector<1x8x512xf32>
    %216 = vector.shape_cast %215 : vector<1x8x512xf32> to vector<8x512xf32>
    %cst_162 = arith.constant dense<0.000000e+00> : vector<16x512xf32>
    %217 = tpu.matmul %214, %216, %cst_162 {dimension_numbers = #tpu.dot_dimension_numbers<[1], [0], [0], [1], [0, 0, 1, 1], [], []>} : vector<16x8xf32>, vector<8x512xf32>, vector<16x512xf32> -> vector<16x512xf32>
    %218 = arith.addf %213, %217 : vector<16x512xf32>
    %219 = vector.extract_strided_slice %7 {offsets = [1, 0], sizes = [16, 8], strides = [1, 1]} : vector<18x8xf32> to vector<16x8xf32>
    %c1_163 = arith.constant 1 : index
    %c0_164 = arith.constant 0 : index
    %c0_165 = arith.constant 0 : index
    %220 = vector.load %arg8[%c1_163, %c0_164, %c0_165] : memref<9x8x512xf32, #tpu.memory_space<vmem>>, vector<1x8x512xf32>
    %221 = vector.shape_cast %220 : vector<1x8x512xf32> to vector<8x512xf32>
    %cst_166 = arith.constant dense<0.000000e+00> : vector<16x512xf32>
    %222 = tpu.matmul %219, %221, %cst_166 {dimension_numbers = #tpu.dot_dimension_numbers<[1], [0], [0], [1], [0, 0, 1, 1], [], []>} : vector<16x8xf32>, vector<8x512xf32>, vector<16x512xf32> -> vector<16x512xf32>
    %223 = arith.addf %218, %222 : vector<16x512xf32>
    %224 = vector.extract_strided_slice %7 {offsets = [2, 0], sizes = [16, 8], strides = [1, 1]} : vector<18x8xf32> to vector<16x8xf32>
    %c2_167 = arith.constant 2 : index
    %c0_168 = arith.constant 0 : index
    %c0_169 = arith.constant 0 : index
    %225 = vector.load %arg8[%c2_167, %c0_168, %c0_169] : memref<9x8x512xf32, #tpu.memory_space<vmem>>, vector<1x8x512xf32>
    %226 = vector.shape_cast %225 : vector<1x8x512xf32> to vector<8x512xf32>
    %cst_170 = arith.constant dense<0.000000e+00> : vector<16x512xf32>
    %227 = tpu.matmul %224, %226, %cst_170 {dimension_numbers = #tpu.dot_dimension_numbers<[1], [0], [0], [1], [0, 0, 1, 1], [], []>} : vector<16x8xf32>, vector<8x512xf32>, vector<16x512xf32> -> vector<16x512xf32>
    %228 = arith.addf %223, %227 : vector<16x512xf32>
    %229 = vector.extract_strided_slice %9 {offsets = [0, 0], sizes = [16, 8], strides = [1, 1]} : vector<18x8xf32> to vector<16x8xf32>
    %c3_171 = arith.constant 3 : index
    %c0_172 = arith.constant 0 : index
    %c0_173 = arith.constant 0 : index
    %230 = vector.load %arg8[%c3_171, %c0_172, %c0_173] : memref<9x8x512xf32, #tpu.memory_space<vmem>>, vector<1x8x512xf32>
    %231 = vector.shape_cast %230 : vector<1x8x512xf32> to vector<8x512xf32>
    %cst_174 = arith.constant dense<0.000000e+00> : vector<16x512xf32>
    %232 = tpu.matmul %229, %231, %cst_174 {dimension_numbers = #tpu.dot_dimension_numbers<[1], [0], [0], [1], [0, 0, 1, 1], [], []>} : vector<16x8xf32>, vector<8x512xf32>, vector<16x512xf32> -> vector<16x512xf32>
    %233 = arith.addf %228, %232 : vector<16x512xf32>
    %234 = vector.extract_strided_slice %9 {offsets = [1, 0], sizes = [16, 8], strides = [1, 1]} : vector<18x8xf32> to vector<16x8xf32>
    %c4_175 = arith.constant 4 : index
    %c0_176 = arith.constant 0 : index
    %c0_177 = arith.constant 0 : index
    %235 = vector.load %arg8[%c4_175, %c0_176, %c0_177] : memref<9x8x512xf32, #tpu.memory_space<vmem>>, vector<1x8x512xf32>
    %236 = vector.shape_cast %235 : vector<1x8x512xf32> to vector<8x512xf32>
    %cst_178 = arith.constant dense<0.000000e+00> : vector<16x512xf32>
    %237 = tpu.matmul %234, %236, %cst_178 {dimension_numbers = #tpu.dot_dimension_numbers<[1], [0], [0], [1], [0, 0, 1, 1], [], []>} : vector<16x8xf32>, vector<8x512xf32>, vector<16x512xf32> -> vector<16x512xf32>
    %238 = arith.addf %233, %237 : vector<16x512xf32>
    %239 = vector.extract_strided_slice %9 {offsets = [2, 0], sizes = [16, 8], strides = [1, 1]} : vector<18x8xf32> to vector<16x8xf32>
    %c5_179 = arith.constant 5 : index
    %c0_180 = arith.constant 0 : index
    %c0_181 = arith.constant 0 : index
    %240 = vector.load %arg8[%c5_179, %c0_180, %c0_181] : memref<9x8x512xf32, #tpu.memory_space<vmem>>, vector<1x8x512xf32>
    %241 = vector.shape_cast %240 : vector<1x8x512xf32> to vector<8x512xf32>
    %cst_182 = arith.constant dense<0.000000e+00> : vector<16x512xf32>
    %242 = tpu.matmul %239, %241, %cst_182 {dimension_numbers = #tpu.dot_dimension_numbers<[1], [0], [0], [1], [0, 0, 1, 1], [], []>} : vector<16x8xf32>, vector<8x512xf32>, vector<16x512xf32> -> vector<16x512xf32>
    %243 = arith.addf %238, %242 : vector<16x512xf32>
    %244 = vector.extract_strided_slice %11 {offsets = [0, 0], sizes = [16, 8], strides = [1, 1]} : vector<18x8xf32> to vector<16x8xf32>
    %c6_183 = arith.constant 6 : index
    %c0_184 = arith.constant 0 : index
    %c0_185 = arith.constant 0 : index
    %245 = vector.load %arg8[%c6_183, %c0_184, %c0_185] : memref<9x8x512xf32, #tpu.memory_space<vmem>>, vector<1x8x512xf32>
    %246 = vector.shape_cast %245 : vector<1x8x512xf32> to vector<8x512xf32>
    %cst_186 = arith.constant dense<0.000000e+00> : vector<16x512xf32>
    %247 = tpu.matmul %244, %246, %cst_186 {dimension_numbers = #tpu.dot_dimension_numbers<[1], [0], [0], [1], [0, 0, 1, 1], [], []>} : vector<16x8xf32>, vector<8x512xf32>, vector<16x512xf32> -> vector<16x512xf32>
    %248 = arith.addf %243, %247 : vector<16x512xf32>
    %249 = vector.extract_strided_slice %11 {offsets = [1, 0], sizes = [16, 8], strides = [1, 1]} : vector<18x8xf32> to vector<16x8xf32>
    %c7_187 = arith.constant 7 : index
    %c0_188 = arith.constant 0 : index
    %c0_189 = arith.constant 0 : index
    %250 = vector.load %arg8[%c7_187, %c0_188, %c0_189] : memref<9x8x512xf32, #tpu.memory_space<vmem>>, vector<1x8x512xf32>
    %251 = vector.shape_cast %250 : vector<1x8x512xf32> to vector<8x512xf32>
    %cst_190 = arith.constant dense<0.000000e+00> : vector<16x512xf32>
    %252 = tpu.matmul %249, %251, %cst_190 {dimension_numbers = #tpu.dot_dimension_numbers<[1], [0], [0], [1], [0, 0, 1, 1], [], []>} : vector<16x8xf32>, vector<8x512xf32>, vector<16x512xf32> -> vector<16x512xf32>
    %253 = arith.addf %248, %252 : vector<16x512xf32>
    %254 = vector.extract_strided_slice %11 {offsets = [2, 0], sizes = [16, 8], strides = [1, 1]} : vector<18x8xf32> to vector<16x8xf32>
    %c8_191 = arith.constant 8 : index
    %c0_192 = arith.constant 0 : index
    %c0_193 = arith.constant 0 : index
    %255 = vector.load %arg8[%c8_191, %c0_192, %c0_193] : memref<9x8x512xf32, #tpu.memory_space<vmem>>, vector<1x8x512xf32>
    %256 = vector.shape_cast %255 : vector<1x8x512xf32> to vector<8x512xf32>
    %cst_194 = arith.constant dense<0.000000e+00> : vector<16x512xf32>
    %257 = tpu.matmul %254, %256, %cst_194 {dimension_numbers = #tpu.dot_dimension_numbers<[1], [0], [0], [1], [0, 0, 1, 1], [], []>} : vector<16x8xf32>, vector<8x512xf32>, vector<16x512xf32> -> vector<16x512xf32>
    %258 = arith.addf %253, %257 : vector<16x512xf32>
    %259 = vector.broadcast %14 : vector<1x512xf32> to vector<16x512xf32>
    %260 = arith.addf %258, %259 : vector<16x512xf32>
    %cst_195 = arith.constant 0.000000e+00 : f32
    %261 = vector.broadcast %cst_195 : f32 to vector<16x512xf32>
    %262 = arith.maximumf %260, %261 : vector<16x512xf32>
    %cst_196 = arith.constant dense<0.000000e+00> : vector<16x128xf32>
    %263 = tpu.matmul %262, %12, %cst_196 {dimension_numbers = #tpu.dot_dimension_numbers<[1], [0], [0], [1], [0, 0, 1, 1], [], []>} : vector<16x512xf32>, vector<512x128xf32>, vector<16x128xf32> -> vector<16x128xf32>
    %264 = vector.broadcast %13 : vector<1x128xf32> to vector<16x128xf32>
    %265 = arith.addf %263, %264 : vector<16x128xf32>
    %cst_197 = arith.constant 0.000000e+00 : f32
    %266 = vector.broadcast %cst_197 : f32 to vector<16x128xf32>
    %267 = arith.subf %266, %265 : vector<16x128xf32>
    %268 = math.exp %267 : vector<16x128xf32>
    %cst_198 = arith.constant 1.000000e+00 : f32
    %269 = vector.broadcast %cst_198 : f32 to vector<16x128xf32>
    %270 = arith.addf %269, %268 : vector<16x128xf32>
    %cst_199 = arith.constant 1.000000e+00 : f32
    %271 = vector.broadcast %cst_199 : f32 to vector<16x128xf32>
    %272 = arith.divf %271, %270 : vector<16x128xf32>
    %273 = arith.select %20, %272, %265 : vector<16x128xi1>, vector<16x128xf32>
    %c0_200 = arith.constant 0 : index
    %c3_201 = arith.constant 3 : index
    %c0_202 = arith.constant 0 : index
    %c0_203 = arith.constant 0 : index
    %274 = vector.load %arg12[%c0_200, %c3_201, %c0_202, %c0_203] : memref<1x4x16x128xf32, #tpu.memory_space<vmem>>, vector<1x1x16x128xf32>
    %275 = vector.shape_cast %274 : vector<1x1x16x128xf32> to vector<16x128xf32>
    %276 = vector.shape_cast %273 : vector<16x128xf32> to vector<1x1x16x128xf32>
    tpu.vector_store %arg12[%c0_200, %c3_201, %c0_202, %c0_203], %276 {strides = array<i32>} : memref<1x4x16x128xf32, #tpu.memory_space<vmem>>, vector<1x1x16x128xf32>,
    return
  }
  func.func @transform_0(%arg0: i32, %arg1: i32) -> (i32, i32, i32, i32) {
    %c4_i32 = arith.constant 4 : i32
    %0 = arith.muli %arg1, %c4_i32 : i32
    %c1_i32 = arith.constant 1 : i32
    %1 = arith.muli %0, %c1_i32 : i32
    %c0_i32 = arith.constant 0 : i32
    %2 = arith.addi %1, %c0_i32 : i32
    %c0_i32_0 = arith.constant 0 : i32
    %c0_i32_1 = arith.constant 0 : i32
    %c0_i32_2 = arith.constant 0 : i32
    return %arg0, %2, %c0_i32_0, %c0_i32_1 : i32, i32, i32, i32
  }
  func.func @transform_1(%arg0: i32, %arg1: i32) -> (i32, i32, i32, i32) {
    %c4_i32 = arith.constant 4 : i32
    %0 = arith.muli %arg1, %c4_i32 : i32
    %c1_i32 = arith.constant 1 : i32
    %1 = arith.muli %0, %c1_i32 : i32
    %c1_i32_0 = arith.constant 1 : i32
    %2 = arith.addi %1, %c1_i32_0 : i32
    %c0_i32 = arith.constant 0 : i32
    %c0_i32_1 = arith.constant 0 : i32
    %c0_i32_2 = arith.constant 0 : i32
    return %arg0, %2, %c0_i32, %c0_i32_1 : i32, i32, i32, i32
  }
  func.func @transform_2(%arg0: i32, %arg1: i32) -> (i32, i32, i32, i32) {
    %c4_i32 = arith.constant 4 : i32
    %0 = arith.muli %arg1, %c4_i32 : i32
    %c1_i32 = arith.constant 1 : i32
    %1 = arith.muli %0, %c1_i32 : i32
    %c2_i32 = arith.constant 2 : i32
    %2 = arith.addi %1, %c2_i32 : i32
    %c0_i32 = arith.constant 0 : i32
    %c0_i32_0 = arith.constant 0 : i32
    %c0_i32_1 = arith.constant 0 : i32
    return %arg0, %2, %c0_i32, %c0_i32_0 : i32, i32, i32, i32
  }
  func.func @transform_3(%arg0: i32, %arg1: i32) -> (i32, i32, i32, i32) {
    %c4_i32 = arith.constant 4 : i32
    %0 = arith.muli %arg1, %c4_i32 : i32
    %c1_i32 = arith.constant 1 : i32
    %1 = arith.muli %0, %c1_i32 : i32
    %c3_i32 = arith.constant 3 : i32
    %2 = arith.addi %1, %c3_i32 : i32
    %c0_i32 = arith.constant 0 : i32
    %c0_i32_0 = arith.constant 0 : i32
    %c0_i32_1 = arith.constant 0 : i32
    return %arg0, %2, %c0_i32, %c0_i32_0 : i32, i32, i32, i32
  }
  func.func @transform_4(%arg0: i32, %arg1: i32) -> (i32, i32, i32, i32) {
    %c4_i32 = arith.constant 4 : i32
    %0 = arith.muli %arg1, %c4_i32 : i32
    %c1_i32 = arith.constant 1 : i32
    %1 = arith.muli %0, %c1_i32 : i32
    %c4_i32_0 = arith.constant 4 : i32
    %2 = arith.addi %1, %c4_i32_0 : i32
    %c0_i32 = arith.constant 0 : i32
    %c0_i32_1 = arith.constant 0 : i32
    %c0_i32_2 = arith.constant 0 : i32
    return %arg0, %2, %c0_i32, %c0_i32_1 : i32, i32, i32, i32
  }
  func.func @transform_5(%arg0: i32, %arg1: i32) -> (i32, i32, i32, i32) {
    %c4_i32 = arith.constant 4 : i32
    %0 = arith.muli %arg1, %c4_i32 : i32
    %c1_i32 = arith.constant 1 : i32
    %1 = arith.muli %0, %c1_i32 : i32
    %c5_i32 = arith.constant 5 : i32
    %2 = arith.addi %1, %c5_i32 : i32
    %c0_i32 = arith.constant 0 : i32
    %c0_i32_0 = arith.constant 0 : i32
    %c0_i32_1 = arith.constant 0 : i32
    return %arg0, %2, %c0_i32, %c0_i32_0 : i32, i32, i32, i32
  }
  func.func @transform_6(%arg0: i32, %arg1: i32) -> (i32, i32, i32) {
    %c0_i32 = arith.constant 0 : i32
    %c0_i32_0 = arith.constant 0 : i32
    %c0_i32_1 = arith.constant 0 : i32
    %c0_i32_2 = arith.constant 0 : i32
    return %c0_i32, %c0_i32_0, %c0_i32_1 : i32, i32, i32
  }
  func.func @transform_7(%arg0: i32, %arg1: i32) -> (i32, i32) {
    %c0_i32 = arith.constant 0 : i32
    %c0_i32_0 = arith.constant 0 : i32
    %c0_i32_1 = arith.constant 0 : i32
    return %c0_i32, %c0_i32_0 : i32, i32
  }
  func.func @transform_8(%arg0: i32, %arg1: i32) -> (i32, i32) {
    %c0_i32 = arith.constant 0 : i32
    %c0_i32_0 = arith.constant 0 : i32
    %c0_i32_1 = arith.constant 0 : i32
    return %c0_i32, %c0_i32_0 : i32, i32
  }
  func.func @transform_9(%arg0: i32, %arg1: i32) -> (i32, i32) {
    %c0_i32 = arith.constant 0 : i32
    %c0_i32_0 = arith.constant 0 : i32
    %c0_i32_1 = arith.constant 0 : i32
    return %c0_i32, %c0_i32_0 : i32, i32
  }
  func.func @transform_10(%arg0: i32, %arg1: i32) -> (i32, i32, i32, i32) {
    %c0_i32 = arith.constant 0 : i32
    %c0_i32_0 = arith.constant 0 : i32
    %c0_i32_1 = arith.constant 0 : i32
    return %arg0, %arg1, %c0_i32, %c0_i32_0 : i32, i32, i32, i32
  }
}

</mosaic_0001>

<bundles_post_ra>
// kernel: tpu_custom_call.1
= control target key start
LH: loop header
LB: loop body
LE: loop exit
PB: predicated region body
PF: predicated region fallthrough
CT: control target
= control target key end

     0   :  { %s11181_s0 = inlined_call_operand.vmem [shape: f32[2,18,18,8], index: 0, kind: input, shape index: {}]   ;;  %s11182_s1 = inlined_call_operand.vmem [shape: f32[2,18,18,8], index: 1, kind: input, shape index: {}]   ;;  %s11183_s2 = inlined_call_operand.vmem [shape: f32[2,18,18,8], index: 2, kind: input, shape index: {}]   ;;  %s11184_s3 = inlined_call_operand.vmem [shape: f32[2,18,18,8], index: 3, kind: input, shape index: {}]   ;;  %s11185_s4 = inlined_call_operand.vmem [shape: f32[2,18,18,8], index: 4, kind: input, shape index: {}]   ;;  %s11186_s5 = inlined_call_operand.vmem [shape: f32[2,18,18,8], index: 5, kind: input, shape index: {}]   ;;  %s11187_s6 = inlined_call_operand.vmem [shape: f32[9,8,512], index: 6, kind: input, shape index: {}]   ;;  %s11188_s7 = inlined_call_operand.vmem [shape: f32[1,512], index: 7, kind: input, shape index: {}]   ;;  %s11189_s8 = inlined_call_operand.vmem [shape: f32[512,128], index: 8, kind: input, shape index: {}]   ;;  %s11190_s9 = inlined_call_operand.vmem [shape: f32[1,128], index: 9, kind: input, shape index: {}]   ;;  %s11191_s10 = inlined_call_operand.hbm [shape: f32[2,16,16,128], index: 10, kind: output, shape index: {}]  }
   0x1   :  { %11480 = sst [smem:[#allocation131_spill]] %s11181_s0 }
   0x2   :  { %15 = vsyncpa [#allocation3], 0 }
   0x3   :  { %17 = vsyncpa [#allocation3 + $0x1], 0  ;;  %s8717_s13 = smov 0   ;;  %s8719_s14 = smov 0  }
   0x4   :  { %s8721_s15 = smov 0   ;;  %s8723_s16 = smov 0  }
   0x5   :  { %s8725_s17 = smov 0   ;;  %s8727_s18 = smov 0  }
   0x6   :  { %s8729_s19 = smov 0   ;;  %s8731_s20 = smov 0  }
   0x7 LB: > { %11481 = sst [smem:[#allocation5_spill]] %s8648_s18  ;;  %s7761_s21 = sadd.s32 4294967295, %s8656_s20   ;;  %s8656_s20 = sphi %s8731_s20, %s23_s20   ;;  %s8652_s19 = sphi %s8729_s19, %s12010_s19   ;;  %s8648_s18 = sphi %s8727_s18, %s12005_s18   ;;  %s8644_s17 = sphi %s8725_s17, %s12004_s17   ;;  %s8640_s16 = sphi %s8723_s16, %s12003_s16   ;;  %s8636_s15 = sphi %s8721_s15, %s12009_s15   ;;  %s8632_s14 = sphi %s8719_s14, %s12008_s14   ;;  %s8628_s13 = sphi %s8717_s13, %s12007_s13  }
   0x8   : > { %11482 = sst [smem:[#allocation6_spill]] %s8652_s19  ;;  %s7762_s22 = sadd.s32 4294967294, %s8656_s20  }
   0x9   : > { %s32_s23 = sadd.s32 1, %s8648_s18  ;;  %s35_s24 = sadd.s32 1, %s8652_s19 }
   0xa   : > { %p33_p0 = scmp.ge.s32.totalorder %s32_s23, 4  ;;  %p328_p1 = scmp.ne.s32.totalorder %s8636_s15, %s8632_s14 }
   0xb   : > { %p329_p2 = scmp.eq.s32.totalorder %s7761_s21, 7  ;;  %p334_p5 = scmp.ne.s32.totalorder %s8632_s14, %s8628_s13 }
   0xc   : > { %s12012_s23 = smov (%p33_p0, %s32_s23), 0  ;;  %s12014_s24 = smov (!%p33_p0, %s35_s24), %s8652_s19 }
   0xd   : > { %11483 = sst [smem:[#allocation7_spill]] %s12012_s23  ;;  %s314_s25 = ssub.s32 %s8648_s18, %s12012_s23 }
   0xe   : > { %p8768_p3 = por %p329_p2, %p328_p1  ;;  %p37_p4 = scmp.ge.s32.totalorder %s12014_s24, 2 }
   0xf   : > { %p335_p6 = scmp.eq.s32.totalorder %s7762_s22, 7  ;;  %p7777_p7 = scmp.ge.s32.totalorder %s8656_s20, 1 }
  0x10   : > { %s12016_s24 = smov (%p37_p4, %s12014_s24), 0  ;;  %p459_p9 = scmp.lt.s32.totalorder %s8656_s20, 9 }
  0x11   : > { %11485 = sst [smem:[#allocation8_spill]] %s12016_s24  ;;  %p8777_p8 = por %p335_p6, %p334_p5 }
  0x12   : > { %s313_s28 = ssub.s32 %s8652_s19, %s12016_s24  ;;  %s318_s29 = sadd.s32 1, %s8636_s15 }
  0x13   : > { %s315_s30 = sor.u32 %s314_s25, %s313_s28  ;;  %p460_p10 = pnand %p7777_p7, %p459_p9 }
  0x14   : > { %p316_p11 = scmp.eq.s32.totalorder %s315_s30, 0 }
  0x15   : > { %463 = sbr.rel (%p460_p10) target bundleno = 1382 (0x566), region = 60 }
  0x16   : > { %s8786_s11 = scalar_select %p316_p11, %s8636_s15, %s318_s29  }
  0x18   : > { %11487 = sst [smem:[#allocation9_spill]] %s8786_s11 }
  0x1a   : > { %v8791_v0 = vld [vmem:[%s11187_s6 + $0x28] sm:$0xff]  ;;  %v8796_v1 = vld [vmem:[%s11187_s6 + $0x20] sm:$0xff]  ;;  %v8801_v2 = vld [vmem:[%s11187_s6 + $0x38] sm:$0xff]  ;;  %s8804_s28 = sshll.u32 %s8640_s16, 2  ;;  %p558_p12 = scmp.lt.s32.totalorder %s8644_s17, 1  ;;  %v11196_v5 = vmov 0.0  }
  0x1b   : > { %11488 = vst [vmem:[#allocation10_spill] sm:$0xff] %v8796_v1  ;;  %776 = vmatprep.subr.mxu0 %v8791_v0  ;;  %853 = vmatprep.subr.mxu1 %v8801_v2  ;;  %v8812_v3 = vld [vmem:[%s11187_s6 + $0x30] sm:$0xff]  ;;  %v8817_v4 = vld [vmem:[%s11187_s6 + $0x8] sm:$0xff]  ;;  %p560_p13 = scmp.lt.s32.totalorder %s8804_s28, 17  ;;  %v8826_v6 = vld [vmem:[%s11187_s6 + $0x18] sm:$0xff]  ;;  %s11492_s0 = sld [smem:[#allocation131_spill]] }
  0x1c   : > { %11489 = vst [vmem:[#allocation11_spill] sm:$0xff] %v8812_v3  ;;  %11490 = vst [vmem:[#allocation12_spill] sm:$0xff] %v8817_v4  ;;  %777 = vmatpush1.msra.mxu0 %v8796_v1  ;;  %810 = vmatprep.mubr.f32.mxu0 %v11196_v5  ;;  %s559_s24 = scalar_select %p558_p12, %s8644_s17, 1  ;;  %vm735_vm0 = vcmask 1046528   ;;  %vm741_vm1 = vcmask 64512   ;;  %v8843_v13 = vld [vmem:[%s11187_s6] sm:$0xff] }
  0x1d   : > { %11491 = vst [vmem:[#allocation13_spill] sm:$0xff] %v8826_v6  ;;  %854 = vmatpush1.msra.mxu1 %v8812_v3  ;;  %887 = vmatprep.mubr.f32.mxu1 %v11196_v5  ;;  %s561_s25 = scalar_select %p560_p13, %s8804_s28, 17  ;;  %11493 = vst [vmem:[#allocation14_spill] sm:$0xff] %v8843_v13  ;;  %v8848_v14 = vld [vmem:[%s11187_s6 + $0x10] sm:$0xff]  ;;  %v8856_v16 = vld [vmem:[%s11187_s6 + $0x48] sm:$0xff]  ;;  %vm1063_vm2 = vcmask 1045504  }
  0x1e   : > { %934 = vmatprep.subr.mxu0 %v8817_v4  ;;  %s8832_s29 = smul.u32 54, %s559_s24  ;;  %1011 = vmatprep.subr.mxu1 %v8826_v6  ;;  %s569_s24 = sadd.s32 1, %s8804_s28  ;;  %11494 = vst [vmem:[#allocation15_spill] sm:$0xff] %v8848_v14  ;;  %11495 = vst [vmem:[#allocation16_spill] sm:$0xff] %v8856_v16  ;;  %v8861_v17 = vld [vmem:[%s11187_s6 + $0x58] sm:$0xff]  ;;  %v8877_v19 = vld [vmem:[%s11187_s6 + $0x40] sm:$0xff] }
  0x1f   : > { %s8382_s30 = smul.u32 3, %s561_s25  ;;  %11496 = vst [vmem:[#allocation17_spill] sm:$0xff] %v8861_v17  ;;  %p572_p0 = scmp.lt.s32.totalorder %s569_s24, 17  ;;  %11497 = vst [vmem:[#allocation18_spill] sm:$0xff] %v8877_v19  ;;  %v8882_v20 = vld [vmem:[%s11187_s6 + $0x50] sm:$0xff]  ;;  %v8889_v21 = vld [vmem:[%s11187_s6 + $0x68] sm:$0xff] }
  0x20   : > { %11498 = vst [vmem:[#allocation19_spill] sm:$0xff] %v8882_v20  ;;  %11499 = vst [vmem:[#allocation20_spill] sm:$0xff] %v8889_v21  ;;  %v8894_v22 = vld [vmem:[%s11187_s6 + $0x78] sm:$0xff]  ;;  %v8911_v27 = vld [vmem:[%s11187_s6 + $0x60] sm:$0xff] }
  0x21   : > { %s564_s23 = sadd.s32 %s8832_s29, %s8382_s30  ;;  %s12018_s24 = smov (!%p572_p0, %s569_s24), 17  ;;  %11500 = vst [vmem:[#allocation21_spill] sm:$0xff] %v8894_v22  ;;  %11501 = vst [vmem:[#allocation22_spill] sm:$0xff] %v8911_v27  ;;  %v8916_v28 = vld [vmem:[%s11187_s6 + $0x70] sm:$0xff]  ;;  %v8923_v29 = vld [vmem:[%s11187_s6 + $0x88] sm:$0xff] }
  0x22   : > { %s7780_s12 = sshll.u32 %s564_s23, 3  ;;  %s8384_s18 = smul.u32 3, %s12018_s24  ;;  %11502 = vst [vmem:[#allocation23_spill] sm:$0xff] %v8916_v28  ;;  %11503 = vst [vmem:[#allocation24_spill] sm:$0xff] %v8923_v29  ;;  %v8928_v30 = vld [vmem:[%s11187_s6 + $0x98] sm:$0xff]  ;;  %v8950_v33 = vld [vmem:[%s11187_s6 + $0x80] sm:$0xff] }
  0x23   : > { %s566_s22 = scalar_lea.vmem %s11492_s0, %s7780_s12  ;;  %11504 = vst [vmem:[#allocation25_spill] sm:$0xff] %v8928_v30  ;;  %11506 = vst [vmem:[#allocation27_spill] sm:$0xff] %v8950_v33  ;;  %v8955_v34 = vld [vmem:[%s11187_s6 + $0x90] sm:$0xff]  ;;  %v8966_v36 = vld [vmem:[%s11187_s6 + $0xa8] sm:$0xff] }
  0x24   : > { %v634_v7 = vld [vmem:[%s566_s22] sm:$0xff]  ;;  %v635_v8 = vld [vmem:[%s566_s22 + $0x8] sm:$0xff]  ;;  %v636_v9 = vld [vmem:[%s566_s22 + $0x10] sm:$0x3]  ;;  %s576_s24 = sadd.s32 %s8384_s18, %s8832_s29  ;;  %s582_s22 = sadd.s32 2, %s8804_s28  ;;  %11507 = vst [vmem:[#allocation28_spill] sm:$0xff] %v8955_v34 }
  0x25   : > { %v736_v10 = vrot.slane %v634_v7, 1  ;;  %v737_v11 = vrot.slane %v635_v8, 1  ;;  %v739_v12 = vrot.slane %v636_v9, 1  ;;  %v1064_v23 = vrot.slane %v634_v7, 2  ;;  %s7782_s30 = sshll.u32 %s576_s24, 3  ;;  %11509 = vst [vmem:[#allocation30_spill] sm:$0xff] %v8966_v36 }
  0x26   : > { %v1065_v24 = vrot.slane %v635_v8, 2  ;;  %v1067_v26 = vrot.slane %v636_v9, 2  ;;  %s578_s21 = scalar_lea.vmem %s11182_s1, %s7782_s30  ;;  %v8971_v37 = vld [vmem:[%s11187_s6 + $0xb8] sm:$0xff]  ;;  %p585_p1 = scmp.lt.s32.totalorder %s582_s22, 17  ;;  %v8993_v43 = vld [vmem:[%s11187_s6 + $0xa0] sm:$0xff]  ;;  %v8998_v44 = vld [vmem:[%s11187_s6 + $0xb0] sm:$0xff] }
  0x27   : > { %v738_v15 = vsel %vm735_vm0, %v736_v10, %v737_v11  ;;  %v740_v18 = vsel %vm735_vm0, %v737_v11, %v739_v12  ;;  %v8944_v32 = vld [vmem:[%s578_s21] sm:$0xff]  ;;  %v8957_v35 = vld [vmem:[%s578_s21 + $0x8] sm:$0xff]  ;;  %11510 = vst [vmem:[#allocation31_spill] sm:$0xff] %v8971_v37  ;;  %v639_v40 = vld [vmem:[%s578_s21 + $0x10] sm:$0x3] }
  0x28   : > { %7795 = vmatmul.mubr.msk.f32.vlgmr.msra.gmra.mxu0 %vm741_vm1, %v738_v15  ;;  %7797 = vmatmul.mubr.msk.f32.vlgmr.msra.gmra.mxu1 %vm741_vm1, %v738_v15  ;;  %v1066_v25 = vsel %vm1063_vm2, %v1064_v23, %v1065_v24  ;;  %v1068_v31 = vsel %vm1063_vm2, %v1065_v24, %v1067_v26  ;;  %11505 = vst [vmem:[#allocation26_spill] sm:$0xff] %v8944_v32  ;;  %11508 = vst [vmem:[#allocation29_spill] sm:$0xff] %v8957_v35  ;;  %v1414_v38 = vrot.slane %v8944_v32, 1  ;;  %s12020_s22 = smov (!%p585_p1, %s582_s22), 17  ;;  %v9007_v45 = vld [vmem:[%s11187_s6 + $0xc8] sm:$0xff]  ;;  %v9012_v46 = vld [vmem:[%s11187_s6 + $0xd8] sm:$0xff] }
  0x29   : > { %935 = vmatpush1.msra.mxu0 %v8843_v13  ;;  %1012 = vmatpush1.msra.mxu1 %v8848_v14  ;;  %v1415_v39 = vrot.slane %v8957_v35, 1  ;;  %v1417_v42 = vrot.slane %v639_v40, 1  ;;  %11512 = vst [vmem:[#allocation33_spill] sm:$0xff] %v8993_v43  ;;  %11513 = vst [vmem:[#allocation34_spill] sm:$0xff] %v8998_v44  ;;  %s8385_s11 = smul.u32 3, %s12020_s22  ;;  %v1590_v48 = vrot.slane %v8944_v32, 2 }
  0x2a   : > { %816 = vmatprep.mubr.f32.mxu0 %v11196_v5  ;;  %893 = vmatprep.mubr.f32.mxu1 %v11196_v5  ;;  %11514 = vst [vmem:[#allocation35_spill] sm:$0xff] %v9007_v45  ;;  %11515 = vst [vmem:[#allocation36_spill] sm:$0xff] %v9012_v46  ;;  %v1591_v49 = vrot.slane %v8957_v35, 2  ;;  %v1593_v51 = vrot.slane %v639_v40, 2  ;;  %v9038_v52 = vld [vmem:[%s11187_s6 + $0xc0] sm:$0xff]  ;;  %v9043_v53 = vld [vmem:[%s11187_s6 + $0xd0] sm:$0xff] }
  0x2b   : > { %1103 = vmatprep.subr.mxu0 %v8856_v16  ;;  %1180 = vmatprep.subr.mxu1 %v8861_v17  ;;  %v8988_v41 = vsel %vm735_vm0, %v1414_v38, %v1415_v39  ;;  %v9017_v47 = vsel %vm735_vm0, %v1415_v39, %v1417_v42  ;;  %s589_s22 = sadd.s32 %s8385_s11, %s8832_s29  ;;  %11518 = vst [vmem:[#allocation39_spill] sm:$0xff] %v9038_v52  ;;  %11519 = vst [vmem:[#allocation40_spill] sm:$0xff] %v9043_v53  ;;  %v9052_v54 = vld [vmem:[%s11187_s6 + $0xe8] sm:$0xff]  ;;  %v9057_v55 = vld [vmem:[%s11187_s6 + $0xf8] sm:$0xff]  ;;  %s8073_s11 = sshll.u32 %s8644_s17, 5 }
  0x2c   : > { %7796 = vmatmul.mubr.msk.f32.gmra.mxu0 %vm741_vm1, %v740_v18  ;;  %7798 = vmatmul.mubr.msk.f32.gmra.mxu1 %vm741_vm1, %v740_v18  ;;  %11511 = vst [vmem:[#allocation32_spill] sm:$0xff] %v8988_v41  ;;  %11516 = vst [vmem:[#allocation37_spill] sm:$0xff] %v9017_v47  ;;  %v9033_v50 = vsel %vm1063_vm2, %v1590_v48, %v1591_v49  ;;  %s7784_s23 = sshll.u32 %s589_s22, 3  ;;  %v9062_v56 = vsel %vm1063_vm2, %v1591_v49, %v1593_v51  ;;  %v9085_v58 = vld [vmem:[%s11187_s6 + $0xe0] sm:$0xff]  ;;  %v9090_v59 = vld [vmem:[%s11187_s6 + $0xf0] sm:$0xff]  ;;  %s595_s22 = sadd.s32 3, %s8804_s28 }
  0x2d   : > { %968 = vmatprep.mubr.f32.mxu0 %v11196_v5  ;;  %1045 = vmatprep.mubr.f32.mxu1 %v11196_v5  ;;  %11517 = vst [vmem:[#allocation38_spill] sm:$0xff] %v9033_v50  ;;  %11520 = vst [vmem:[#allocation41_spill] sm:$0xff] %v9052_v54  ;;  %s9069_s25 = scalar_lea.vmem %s11183_s2, %s7784_s23  ;;  %v9102_v61 = vld [vmem:[%s11187_s6 + $0x108] sm:$0xff]  ;;  %v9107_v62 = vld [vmem:[%s11187_s6 + $0x118] sm:$0xff]  ;;  %p598_p2 = scmp.lt.s32.totalorder %s595_s22, 17 }
  0x2e   : > { %11521 = vst [vmem:[#allocation42_spill] sm:$0xff] %v9057_v55  ;;  %11522 = vst [vmem:[#allocation43_spill] sm:$0xff] %v9062_v56  ;;  %v9080_v57 = vld [vmem:[%s9069_s25] sm:$0xff]  ;;  %v9093_v60 = vld [vmem:[%s9069_s25 + $0x8] sm:$0xff]  ;;  %s11352_s23 = sand.u32 1, %s8632_s14  }
  0x2f   : > { %11523 = vst [vmem:[#allocation44_spill] sm:$0xff] %v9080_v57  ;;  %11524 = vst [vmem:[#allocation45_spill] sm:$0xff] %v9085_v58  ;;  %v1940_v63 = vrot.slane %v9080_v57, 1  ;;  %v9130_v11 = vld [vmem:[%s11187_s6 + $0x100] sm:$0xff]  ;;  %v9135_v12 = vld [vmem:[%s11187_s6 + $0x110] sm:$0xff]  ;;  %v2116_v18 = vrot.slane %v9080_v57, 2 }
  0x30   : > { %7799 = vmatmul.mubr.msk.f32.vlgmr.msra.gmra.mxu0 %vm741_vm1, %v634_v7  ;;  %7801 = vmatmul.mubr.msk.f32.vlgmr.msra.gmra.mxu1 %vm741_vm1, %v634_v7  ;;  %11525 = vst [vmem:[#allocation46_spill] sm:$0xff] %v9090_v59  ;;  %11526 = vst [vmem:[#allocation47_spill] sm:$0xff] %v9093_v60  ;;  %v1941_v7 = vrot.slane %v9093_v60, 1  ;;  %v2117_v23 = vrot.slane %v9093_v60, 2  ;;  %v9180_v38 = vld [vmem:[%s11189_s8 + $0x1f8] sm:$0xff]  ;;  %v9198_v42 = vld [vmem:[%s11189_s8 + $0xf0] sm:$0xff] }
  0x31   : > { %1104 = vmatpush1.msra.mxu0 %v8877_v19  ;;  %1181 = vmatpush1.msra.mxu1 %v8882_v20  ;;  %11527 = vst [vmem:[#allocation48_spill] sm:$0xff] %v9102_v61  ;;  %11528 = vst [vmem:[#allocation49_spill] sm:$0xff] %v9107_v62  ;;  %v9186_v39 = vld [vmem:[%s11189_s8 + $0x78] sm:$0xff]  ;;  %v9204_v48 = vld [vmem:[%s11189_s8 + $0x1f0] sm:$0xff]  ;;  %s12022_s22 = smov (!%p598_p2, %s595_s22), 17  ;;  %s7778_s12 = sshll.u32 %s11352_s23, 6 }
  0x32   : > { %974 = vmatprep.mubr.f32.mxu0 %v11196_v5  ;;  %1051 = vmatprep.mubr.f32.mxu1 %v11196_v5  ;;  %v9125_v9 = vsel %vm735_vm0, %v1940_v63, %v1941_v7  ;;  %11530 = vst [vmem:[#allocation51_spill] sm:$0xff] %v9130_v11  ;;  %11531 = vst [vmem:[#allocation52_spill] sm:$0xff] %v9135_v12  ;;  %v9157_v24 = vsel %vm1063_vm2, %v2116_v18, %v2117_v23  ;;  %v9192_v40 = vld [vmem:[%s11189_s8 + $0x178] sm:$0xff]  ;;  %v9210_v49 = vld [vmem:[%s11189_s8 + $0x70] sm:$0xff]  ;;  %s8386_s21 = smul.u32 3, %s12022_s22  ;;  %s9975_s24 = scalar_lea.vmem [#allocation2], %s7778_s12 }
  0x33   : > { %1276 = vmatprep.subr.mxu0 %v8889_v21  ;;  %1353 = vmatprep.subr.mxu1 %v8894_v22  ;;  %11529 = vst [vmem:[#allocation50_spill] sm:$0xff] %v9125_v9  ;;  %11533 = vst [vmem:[#allocation54_spill] sm:$0xff] %v9157_v24  ;;  %v9216_v51 = vld [vmem:[%s11189_s8 + $0x170] sm:$0xff]  ;;  %v9222_v63 = vld [vmem:[%s11189_s8 + $0xe8] sm:$0xff]  ;;  %s608_s23 = sadd.s32 4, %s8804_s28 }
  0x34   : > { %7800 = vmatmul.mubr.msk.f32.gmra.mxu0 %vm741_vm1, %v635_v8  ;;  %7802 = vmatmul.mubr.msk.f32.gmra.mxu1 %vm741_vm1, %v635_v8  ;;  %v642_v8 = vld [vmem:[%s9069_s25 + $0x10] sm:$0x3]  ;;  %11536 = vst [vmem:[#allocation57_spill] sm:$0xff] %v9180_v38  ;;  %11537 = vst [vmem:[#allocation58_spill] sm:$0xff] %v9186_v39  ;;  %v9246_v18 = vld [vmem:[%s11189_s8 + $0xe0] sm:$0xff]  ;;  %s602_s19 = sadd.s32 %s8386_s21, %s8832_s29  ;;  %p611_p4 = scmp.lt.s32.totalorder %s608_s23, 17 }
  0x35   : > { %1137 = vmatprep.mubr.f32.mxu0 %v11196_v5  ;;  %1214 = vmatprep.mubr.f32.mxu1 %v11196_v5  ;;  %v1943_v10 = vrot.slane %v642_v8, 1  ;;  %11538 = vst [vmem:[#allocation59_spill] sm:$0xff] %v9192_v40  ;;  %11539 = vst [vmem:[#allocation60_spill] sm:$0xff] %v9198_v42  ;;  %v717_v6 = vld [vmem:[%s11188_s7] sm:$0xf]  ;;  %s7786_s30 = sshll.u32 %s602_s19, 3 }
  0x36   : > { %11540 = vst [vmem:[#allocation61_spill] sm:$0xff] %v9204_v48  ;;  %11541 = vst [vmem:[#allocation62_spill] sm:$0xff] %v9210_v49  ;;  %s9761_s18 = scalar_lea.vmem %s11184_s3, %s7786_s30  ;;  %s12024_s23 = smov (!%p611_p4, %s608_s23), 17 }
  0x37   : > { %v9144_v15 = vsel %vm735_vm0, %v1941_v7, %v1943_v10  ;;  %11542 = vst [vmem:[#allocation63_spill] sm:$0xff] %v9216_v51  ;;  %11543 = vst [vmem:[#allocation64_spill] sm:$0xff] %v9222_v63  ;;  %v9228_v7 = vld [vmem:[%s11189_s8 + $0x1e8] sm:$0xff]  ;;  %s8387_s0 = smul.u32 3, %s12024_s23 }
  0x38   : > { %7807 = vmatmul.mubr.msk.f32.vlgmr.msra.gmra.mxu0 %vm741_vm1, %v1066_v25  ;;  %7809 = vmatmul.mubr.msk.f32.vlgmr.msra.gmra.mxu1 %vm741_vm1, %v1066_v25  ;;  %11532 = vst [vmem:[#allocation53_spill] sm:$0xff] %v9144_v15  ;;  %v2119_v25 = vrot.slane %v642_v8, 2  ;;  %11544 = vst [vmem:[#allocation65_spill] sm:$0xff] %v9228_v7  ;;  %v9234_v8 = vld [vmem:[%s11189_s8 + $0x68] sm:$0xff] }
  0x39   : > { %1277 = vmatpush1.msra.mxu0 %v8911_v27  ;;  %1354 = vmatpush1.msra.mxu1 %v8916_v28  ;;  %11545 = vst [vmem:[#allocation66_spill] sm:$0xff] %v9234_v8  ;;  %v9240_v10 = vld [vmem:[%s11189_s8 + $0x168] sm:$0xff]  ;;  %11547 = vst [vmem:[#allocation68_spill] sm:$0xff] %v9246_v18  ;;  %s615_s22 = sadd.s32 %s8387_s0, %s8832_s29 }
  0x3a   : > { %1143 = vmatprep.mubr.f32.mxu0 %v11196_v5  ;;  %1220 = vmatprep.mubr.f32.mxu1 %v11196_v5  ;;  %v9166_v26 = vsel %vm1063_vm2, %v2117_v23, %v2119_v25  ;;  %11546 = vst [vmem:[#allocation67_spill] sm:$0xff] %v9240_v10  ;;  %v9252_v23 = vld [vmem:[%s11189_s8 + $0x1e0] sm:$0xff]  ;;  %s7788_s30 = sshll.u32 %s615_s22, 3 }
  0x3b   : > { %1453 = vmatprep.subr.mxu0 %v8923_v29  ;;  %1530 = vmatprep.subr.mxu1 %v8928_v30  ;;  %11534 = vst [vmem:[#allocation55_spill] sm:$0xff] %v9166_v26  ;;  %11548 = vst [vmem:[#allocation69_spill] sm:$0xff] %v9252_v23  ;;  %v9258_v25 = vld [vmem:[%s11189_s8 + $0x60] sm:$0xff]  ;;  %v11320_v29 = vlaneseq  ;;  %s617_s19 = scalar_lea.vmem %s11185_s4, %s7788_s30  ;;  %s8077_s30 = sshll.u32 %s8640_s16, 3 }
  0x3c   : > { %7808 = vmatmul.mubr.msk.f32.gmra.mxu0 %vm741_vm1, %v1068_v31  ;;  %7810 = vmatmul.mubr.msk.f32.gmra.mxu1 %vm741_vm1, %v1068_v31  ;;  %v9175_v31 = vld [vmem:[%s11189_s8 + $0xf8] sm:$0xff]  ;;  %11549 = vst [vmem:[#allocation70_spill] sm:$0xff] %v9258_v25  ;;  %s7568_s0 = sadd.s32 %s8077_s30, %s8073_s11  ;;  %s12001_s16 = sand.u32 1, %s8632_s14  }
  0x3d   : > { %1310 = vmatprep.mubr.f32.mxu0 %v11196_v5  ;;  %1387 = vmatprep.mubr.f32.mxu1 %v11196_v5  ;;  %11535 = vst [vmem:[#allocation56_spill] sm:$0xff] %v9175_v31  ;;  %v2289_v22 = vshrl.u32 %v11320_v29, 7  ;;  %s11130_s17 = scalar_lea.sflag [#allocation3], %s12001_s16 }
  0x3f   : > { %v2298_v17 = vsub.s32 2, %v2289_v22  ;;  %v2294_v16 = vsub.s32 1, %v2289_v22  ;;  %v2302_v14 = vsub.s32 3, %v2289_v22 }
  0x40   : > { %7815 = vmatmul.mubr.msk.f32.vlgmr.msra.gmra.mxu0 %vm741_vm1, %v8944_v32  ;;  %7817 = vmatmul.mubr.msk.f32.vlgmr.msra.gmra.mxu1 %vm741_vm1, %v8944_v32 }
  0x41   : > { %1454 = vmatpush1.msra.mxu0 %v8950_v33  ;;  %1531 = vmatpush1.msra.mxu1 %v8955_v34 }
  0x42   : > { %1316 = vmatprep.mubr.f32.mxu0 %v11196_v5  ;;  %1393 = vmatprep.mubr.f32.mxu1 %v11196_v5 }
  0x43   : > { %1629 = vmatprep.subr.mxu0 %v8966_v36  ;;  %1706 = vmatprep.subr.mxu1 %v8971_v37 }
  0x44   : > { %7816 = vmatmul.mubr.msk.f32.gmra.mxu0 %vm741_vm1, %v8957_v35  ;;  %7818 = vmatmul.mubr.msk.f32.gmra.mxu1 %vm741_vm1, %v8957_v35 }
  0x45   : > { %1487 = vmatprep.mubr.f32.mxu0 %v11196_v5  ;;  %1564 = vmatprep.mubr.f32.mxu1 %v11196_v5 }
  0x48   : > { %7823 = vmatmul.mubr.msk.f32.vlgmr.msra.gmra.mxu0 %vm741_vm1, %v8988_v41  ;;  %7825 = vmatmul.mubr.msk.f32.vlgmr.msra.gmra.mxu1 %vm741_vm1, %v8988_v41 }
  0x49   : > { %1630 = vmatpush1.msra.mxu0 %v8993_v43  ;;  %1707 = vmatpush1.msra.mxu1 %v8998_v44 }
  0x4a   : > { %1493 = vmatprep.mubr.f32.mxu0 %v11196_v5  ;;  %1570 = vmatprep.mubr.f32.mxu1 %v11196_v5 }
  0x4b   : > { %1802 = vmatprep.subr.mxu0 %v9007_v45  ;;  %1879 = vmatprep.subr.mxu1 %v9012_v46 }
  0x4c   : > { %7824 = vmatmul.mubr.msk.f32.gmra.mxu0 %vm741_vm1, %v9017_v47  ;;  %7826 = vmatmul.mubr.msk.f32.gmra.mxu1 %vm741_vm1, %v9017_v47  ;;  %v2290_v47 = vsub.s32 0, %v2289_v22  ;;  %v9622_v22 = vrot.slane %v717_v6, %v2294_v16 }
  0x4d   : > { %1663 = vmatprep.mubr.f32.mxu0 %v11196_v5  ;;  %1740 = vmatprep.mubr.f32.mxu1 %v11196_v5 }
  0x4e   : > { %11608 = vst [vmem:[#allocation129_spill] sm:$0xff] %v9622_v22 }
  0x50   : > { %7831 = vmatmul.mubr.msk.f32.vlgmr.msra.gmra.mxu0 %vm741_vm1, %v9033_v50  ;;  %7833 = vmatmul.mubr.msk.f32.vlgmr.msra.gmra.mxu1 %vm741_vm1, %v9033_v50 }
  0x51   : > { %1803 = vmatpush1.msra.mxu0 %v9038_v52  ;;  %1880 = vmatpush1.msra.mxu1 %v9043_v53 }
  0x52   : > { %1669 = vmatprep.mubr.f32.mxu0 %v11196_v5  ;;  %1746 = vmatprep.mubr.f32.mxu1 %v11196_v5 }
  0x53   : > { %1979 = vmatprep.subr.mxu0 %v9052_v54  ;;  %2056 = vmatprep.subr.mxu1 %v9057_v55 }
  0x54   : > { %7832 = vmatmul.mubr.msk.f32.gmra.mxu0 %vm741_vm1, %v9062_v56  ;;  %7834 = vmatmul.mubr.msk.f32.gmra.mxu1 %vm741_vm1, %v9062_v56 }
  0x55   : > { %1836 = vmatprep.mubr.f32.mxu0 %v11196_v5  ;;  %1913 = vmatprep.mubr.f32.mxu1 %v11196_v5 }
  0x58   : > { %7839 = vmatmul.mubr.msk.f32.vlgmr.msra.gmra.mxu0 %vm741_vm1, %v9080_v57  ;;  %7841 = vmatmul.mubr.msk.f32.vlgmr.msra.gmra.mxu1 %vm741_vm1, %v9080_v57 }
  0x59   : > { %1980 = vmatpush1.msra.mxu0 %v9085_v58  ;;  %2057 = vmatpush1.msra.mxu1 %v9090_v59 }
  0x5a   : > { %1842 = vmatprep.mubr.f32.mxu0 %v11196_v5  ;;  %1919 = vmatprep.mubr.f32.mxu1 %v11196_v5 }
  0x5b   : > { %2155 = vmatprep.subr.mxu0 %v9102_v61  ;;  %2232 = vmatprep.subr.mxu1 %v9107_v62 }
  0x5c   : > { %7840 = vmatmul.mubr.msk.f32.gmra.mxu0 %vm741_vm1, %v9093_v60  ;;  %7842 = vmatmul.mubr.msk.f32.gmra.mxu1 %vm741_vm1, %v9093_v60 }
  0x5d   : > { %2013 = vmatprep.mubr.f32.mxu0 %v11196_v5  ;;  %2090 = vmatprep.mubr.f32.mxu1 %v11196_v5 }
  0x60   : > { %7847 = vmatmul.mubr.msk.f32.vlgmr.msra.gmra.mxu0 %vm741_vm1, %v9125_v9  ;;  %7849 = vmatmul.mubr.msk.f32.vlgmr.msra.gmra.mxu1 %vm741_vm1, %v9125_v9 }
  0x61   : > { %2156 = vmatpush1.msra.mxu0 %v9130_v11  ;;  %2233 = vmatpush1.msra.mxu1 %v9135_v12 }
  0x62   : > { %2019 = vmatprep.mubr.f32.mxu0 %v11196_v5  ;;  %2096 = vmatprep.mubr.f32.mxu1 %v11196_v5 }
  0x63   : > { %8078 = vmatprep.subr.mxu0 %v9175_v31  ;;  %8116 = vmatprep.subr.mxu1 %v9180_v38 }
  0x64   : > { %7848 = vmatmul.mubr.msk.f32.gmra.mxu0 %vm741_vm1, %v9144_v15  ;;  %7850 = vmatmul.mubr.msk.f32.gmra.mxu1 %vm741_vm1, %v9144_v15 }
  0x65   : > { %2189 = vmatprep.mubr.f32.mxu0 %v11196_v5  ;;  %2266 = vmatprep.mubr.f32.mxu1 %v11196_v5 }
  0x68   : > { %7855 = vmatmul.mubr.msk.f32.vlgmr.msra.gmra.mxu0 %vm741_vm1, %v9157_v24  ;;  %7857 = vmatmul.mubr.msk.f32.vlgmr.msra.gmra.mxu1 %vm741_vm1, %v9157_v24 }
  0x69   : > { %2195 = vmatprep.mubr.f32.mxu0 %v11196_v5  ;;  %2272 = vmatprep.mubr.f32.mxu1 %v11196_v5  ;;  %v9264_v5 = vld [vmem:[%s11189_s8 + $0x160] sm:$0xff] }
  0x6a   : > { %8079 = vmatpush3.msra.mxu0 %v9186_v39  ;;  %8117 = vmatpush3.msra.mxu1 %v9192_v40  ;;  %11550 = vst [vmem:[#allocation71_spill] sm:$0xff] %v9264_v5 }
  0x6b   : > { %8080 = vmatprep.subr.mxu0 %v9198_v42  ;;  %8118 = vmatprep.subr.mxu1 %v9204_v48 }
  0x6c   : > { %7856 = vmatmul.mubr.msk.f32.gmra.mxu0 %vm741_vm1, %v9166_v26  ;;  %7858 = vmatmul.mubr.msk.f32.gmra.mxu1 %vm741_vm1, %v9166_v26 }
  0x6d   : > { %8081 = vmatpush3.msra.mxu0 %v9210_v49  ;;  %8119 = vmatpush3.msra.mxu1 %v9216_v51 }
  0x6e   : > { %8082 = vmatprep.subr.mxu0 %v9222_v63  ;;  %8120 = vmatprep.subr.mxu1 %v9228_v7 }
  0x6f   : > { %8083 = vmatpush3.msra.mxu0 %v9234_v8  ;;  %8121 = vmatpush3.msra.mxu1 %v9240_v10  ;;  %v9270_v10 = vld [vmem:[%s11189_s8 + $0xd8] sm:$0xff] }
  0x70   : > { %8084 = vmatprep.subr.mxu0 %v9246_v18  ;;  %8122 = vmatprep.subr.mxu1 %v9252_v23  ;;  %11551 = vst [vmem:[#allocation72_spill] sm:$0xff] %v9270_v10  ;;  %v9276_v18 = vld [vmem:[%s11189_s8 + $0x1d8] sm:$0xff] }
  0x71   : > { %8085 = vmatpush3.msra.mxu0 %v9258_v25  ;;  %8123 = vmatpush3.msra.mxu1 %v9264_v5  ;;  %11552 = vst [vmem:[#allocation73_spill] sm:$0xff] %v9276_v18  ;;  %v9282_v23 = vld [vmem:[%s11189_s8 + $0x58] sm:$0xff]  ;;  %v9294_v5 = vld [vmem:[%s11189_s8 + $0xd0] sm:$0xff] }
  0x72   : > { %8086 = vmatprep.subr.mxu0 %v9270_v10  ;;  %11553 = vst [vmem:[#allocation74_spill] sm:$0xff] %v9282_v23  ;;  %8124 = vmatprep.subr.mxu1 %v9276_v18  ;;  %v9288_v25 = vld [vmem:[%s11189_s8 + $0x158] sm:$0xff]  ;;  %11555 = vst [vmem:[#allocation76_spill] sm:$0xff] %v9294_v5  ;;  %v9300_v10 = vld [vmem:[%s11189_s8 + $0x1d0] sm:$0xff] }
  0x73   : > { %11554 = vst [vmem:[#allocation75_spill] sm:$0xff] %v9288_v25  ;;  %8087 = vmatpush3.msra.mxu0 %v9282_v23  ;;  %8125 = vmatpush3.msra.mxu1 %v9288_v25  ;;  %11556 = vst [vmem:[#allocation77_spill] sm:$0xff] %v9300_v10  ;;  %v9306_v18 = vld [vmem:[%s11189_s8 + $0x50] sm:$0xff]  ;;  %v9318_v25 = vld [vmem:[%s11189_s8 + $0xc8] sm:$0xff] }
  0x74   : > { %8088 = vmatprep.subr.mxu0 %v9294_v5  ;;  %11557 = vst [vmem:[#allocation78_spill] sm:$0xff] %v9306_v18  ;;  %8126 = vmatprep.subr.mxu1 %v9300_v10  ;;  %v9312_v23 = vld [vmem:[%s11189_s8 + $0x150] sm:$0xff]  ;;  %11559 = vst [vmem:[#allocation80_spill] sm:$0xff] %v9318_v25  ;;  %v9324_v5 = vld [vmem:[%s11189_s8 + $0x1c8] sm:$0xff] }
  0x75   : > { %11558 = vst [vmem:[#allocation79_spill] sm:$0xff] %v9312_v23  ;;  %8089 = vmatpush3.msra.mxu0 %v9306_v18  ;;  %8127 = vmatpush3.msra.mxu1 %v9312_v23  ;;  %11560 = vst [vmem:[#allocation81_spill] sm:$0xff] %v9324_v5  ;;  %v9330_v10 = vld [vmem:[%s11189_s8 + $0x48] sm:$0xff]  ;;  %v9342_v23 = vld [vmem:[%s11189_s8 + $0xc0] sm:$0xff] }
  0x76   : > { %8090 = vmatprep.subr.mxu0 %v9318_v25  ;;  %11561 = vst [vmem:[#allocation82_spill] sm:$0xff] %v9330_v10  ;;  %8128 = vmatprep.subr.mxu1 %v9324_v5  ;;  %v9336_v18 = vld [vmem:[%s11189_s8 + $0x148] sm:$0xff]  ;;  %11563 = vst [vmem:[#allocation84_spill] sm:$0xff] %v9342_v23  ;;  %v9348_v25 = vld [vmem:[%s11189_s8 + $0x1c0] sm:$0xff] }
  0x77   : > { %11562 = vst [vmem:[#allocation83_spill] sm:$0xff] %v9336_v18  ;;  %8091 = vmatpush3.msra.mxu0 %v9330_v10  ;;  %8129 = vmatpush3.msra.mxu1 %v9336_v18  ;;  %11564 = vst [vmem:[#allocation85_spill] sm:$0xff] %v9348_v25  ;;  %v9354_v5 = vld [vmem:[%s11189_s8 + $0x40] sm:$0xff]  ;;  %v9366_v18 = vld [vmem:[%s11189_s8 + $0xb8] sm:$0xff] }
  0x78   : > { %8092 = vmatprep.subr.mxu0 %v9342_v23  ;;  %11565 = vst [vmem:[#allocation86_spill] sm:$0xff] %v9354_v5  ;;  %8130 = vmatprep.subr.mxu1 %v9348_v25  ;;  %v9360_v10 = vld [vmem:[%s11189_s8 + $0x140] sm:$0xff]  ;;  %11567 = vst [vmem:[#allocation88_spill] sm:$0xff] %v9366_v18  ;;  %v9372_v23 = vld [vmem:[%s11189_s8 + $0x1b8] sm:$0xff] }
  0x79   : > { %11566 = vst [vmem:[#allocation87_spill] sm:$0xff] %v9360_v10  ;;  %8093 = vmatpush3.msra.mxu0 %v9354_v5  ;;  %8131 = vmatpush3.msra.mxu1 %v9360_v10  ;;  %11568 = vst [vmem:[#allocation89_spill] sm:$0xff] %v9372_v23  ;;  %v9378_v25 = vld [vmem:[%s11189_s8 + $0x38] sm:$0xff]  ;;  %v9390_v10 = vld [vmem:[%s11189_s8 + $0xb0] sm:$0xff] }
  0x7a   : > { %8094 = vmatprep.subr.mxu0 %v9366_v18  ;;  %11569 = vst [vmem:[#allocation90_spill] sm:$0xff] %v9378_v25  ;;  %8132 = vmatprep.subr.mxu1 %v9372_v23  ;;  %v9384_v5 = vld [vmem:[%s11189_s8 + $0x138] sm:$0xff]  ;;  %11571 = vst [vmem:[#allocation92_spill] sm:$0xff] %v9390_v10  ;;  %v9396_v18 = vld [vmem:[%s11189_s8 + $0x1b0] sm:$0xff] }
  0x7b   : > { %11570 = vst [vmem:[#allocation91_spill] sm:$0xff] %v9384_v5  ;;  %8095 = vmatpush3.msra.mxu0 %v9378_v25  ;;  %8133 = vmatpush3.msra.mxu1 %v9384_v5  ;;  %11572 = vst [vmem:[#allocation93_spill] sm:$0xff] %v9396_v18  ;;  %v9402_v23 = vld [vmem:[%s11189_s8 + $0x30] sm:$0xff]  ;;  %v9414_v5 = vld [vmem:[%s11189_s8 + $0xa8] sm:$0xff] }
  0x7c   : > { %8096 = vmatprep.subr.mxu0 %v9390_v10  ;;  %11573 = vst [vmem:[#allocation94_spill] sm:$0xff] %v9402_v23  ;;  %8134 = vmatprep.subr.mxu1 %v9396_v18  ;;  %v9408_v25 = vld [vmem:[%s11189_s8 + $0x130] sm:$0xff]  ;;  %11575 = vst [vmem:[#allocation96_spill] sm:$0xff] %v9414_v5  ;;  %v9420_v10 = vld [vmem:[%s11189_s8 + $0x1a8] sm:$0xff] }
  0x7d   : > { %11574 = vst [vmem:[#allocation95_spill] sm:$0xff] %v9408_v25  ;;  %8097 = vmatpush3.msra.mxu0 %v9402_v23  ;;  %8135 = vmatpush3.msra.mxu1 %v9408_v25  ;;  %11576 = vst [vmem:[#allocation97_spill] sm:$0xff] %v9420_v10  ;;  %v9426_v18 = vld [vmem:[%s11189_s8 + $0x28] sm:$0xff]  ;;  %v9438_v25 = vld [vmem:[%s11189_s8 + $0xa0] sm:$0xff] }
  0x7e   : > { %8098 = vmatprep.subr.mxu0 %v9414_v5  ;;  %11577 = vst [vmem:[#allocation98_spill] sm:$0xff] %v9426_v18  ;;  %8136 = vmatprep.subr.mxu1 %v9420_v10  ;;  %v9432_v23 = vld [vmem:[%s11189_s8 + $0x128] sm:$0xff]  ;;  %11579 = vst [vmem:[#allocation100_spill] sm:$0xff] %v9438_v25  ;;  %v9444_v5 = vld [vmem:[%s11189_s8 + $0x1a0] sm:$0xff] }
  0x7f   : > { %11578 = vst [vmem:[#allocation99_spill] sm:$0xff] %v9432_v23  ;;  %8099 = vmatpush3.msra.mxu0 %v9426_v18  ;;  %8137 = vmatpush3.msra.mxu1 %v9432_v23  ;;  %11580 = vst [vmem:[#allocation101_spill] sm:$0xff] %v9444_v5  ;;  %v9450_v10 = vld [vmem:[%s11189_s8 + $0x20] sm:$0xff]  ;;  %v9462_v23 = vld [vmem:[%s11189_s8 + $0x98] sm:$0xff] }
  0x80   : > { %8100 = vmatprep.subr.mxu0 %v9438_v25  ;;  %11581 = vst [vmem:[#allocation102_spill] sm:$0xff] %v9450_v10  ;;  %8138 = vmatprep.subr.mxu1 %v9444_v5  ;;  %v9456_v18 = vld [vmem:[%s11189_s8 + $0x120] sm:$0xff]  ;;  %11583 = vst [vmem:[#allocation104_spill] sm:$0xff] %v9462_v23  ;;  %v9468_v25 = vld [vmem:[%s11189_s8 + $0x198] sm:$0xff] }
  0x81   : > { %11582 = vst [vmem:[#allocation103_spill] sm:$0xff] %v9456_v18  ;;  %8101 = vmatpush3.msra.mxu0 %v9450_v10  ;;  %8139 = vmatpush3.msra.mxu1 %v9456_v18  ;;  %11584 = vst [vmem:[#allocation105_spill] sm:$0xff] %v9468_v25  ;;  %v9474_v5 = vld [vmem:[%s11189_s8 + $0x18] sm:$0xff]  ;;  %v9486_v18 = vld [vmem:[%s11189_s8 + $0x90] sm:$0xff] }
  0x82   : > { %8102 = vmatprep.subr.mxu0 %v9462_v23  ;;  %11585 = vst [vmem:[#allocation106_spill] sm:$0xff] %v9474_v5  ;;  %8140 = vmatprep.subr.mxu1 %v9468_v25  ;;  %v9480_v10 = vld [vmem:[%s11189_s8 + $0x118] sm:$0xff]  ;;  %11587 = vst [vmem:[#allocation108_spill] sm:$0xff] %v9486_v18  ;;  %v9493_v25 = vld [vmem:[%s11189_s8 + $0x190] sm:$0xff] }
  0x83   : > { %11586 = vst [vmem:[#allocation107_spill] sm:$0xff] %v9480_v10  ;;  %8103 = vmatpush3.msra.mxu0 %v9474_v5  ;;  %8141 = vmatpush3.msra.mxu1 %v9480_v10  ;;  %11588 = vst [vmem:[#allocation109_spill] sm:$0xff] %v9493_v25  ;;  %v9498_v23 = vld [vmem:[%s11189_s8 + $0x10] sm:$0xff]  ;;  %v9516_v10 = vld [vmem:[%s11189_s8 + $0x188] sm:$0xff] }
  0x84   : > { %8104 = vmatprep.subr.mxu0 %v9486_v18  ;;  %11589 = vst [vmem:[#allocation110_spill] sm:$0xff] %v9498_v23  ;;  %8142 = vmatprep.subr.mxu1 %v9493_v25  ;;  %v9504_v5 = vld [vmem:[%s11189_s8 + $0x110] sm:$0xff]  ;;  %v9510_v18 = vld [vmem:[%s11189_s8 + $0x88] sm:$0xff]  ;;  %11592 = vst [vmem:[#allocation113_spill] sm:$0xff] %v9516_v10 }
  0x85   : > { %11590 = vst [vmem:[#allocation111_spill] sm:$0xff] %v9504_v5  ;;  %8105 = vmatpush3.msra.mxu0 %v9498_v23  ;;  %11591 = vst [vmem:[#allocation112_spill] sm:$0xff] %v9510_v18  ;;  %8143 = vmatpush3.msra.mxu1 %v9504_v5  ;;  %v9522_v25 = vld [vmem:[%s11189_s8 + $0x8] sm:$0xff]  ;;  %v9534_v5 = vld [vmem:[%s11189_s8 + $0x80] sm:$0xff] }
  0x86   : > { %8106 = vmatprep.subr.mxu0 %v9510_v18  ;;  %11593 = vst [vmem:[#allocation114_spill] sm:$0xff] %v9522_v25  ;;  %8144 = vmatprep.subr.mxu1 %v9516_v10  ;;  %v9528_v23 = vld [vmem:[%s11189_s8 + $0x108] sm:$0xff]  ;;  %11595 = vst [vmem:[#allocation116_spill] sm:$0xff] %v9534_v5  ;;  %v9540_v18 = vld [vmem:[%s11189_s8 + $0x180] sm:$0xff] }
  0x87   : > { %11594 = vst [vmem:[#allocation115_spill] sm:$0xff] %v9528_v23  ;;  %8107 = vmatpush3.msra.mxu0 %v9522_v25  ;;  %8145 = vmatpush3.msra.mxu1 %v9528_v23  ;;  %11596 = vst [vmem:[#allocation117_spill] sm:$0xff] %v9540_v18  ;;  %v9546_v10 = vld [vmem:[%s11189_s8] sm:$0xff] }
  0x88   : > { %8108 = vmatprep.subr.mxu0 %v9534_v5  ;;  %11597 = vst [vmem:[#allocation118_spill] sm:$0xff] %v9546_v10  ;;  %8146 = vmatprep.subr.mxu1 %v9540_v18  ;;  %v9552_v25 = vld [vmem:[%s11189_s8 + $0x100] sm:$0xff] }
  0x89   : > { %11598 = vst [vmem:[#allocation119_spill] sm:$0xff] %v9552_v25  ;;  %8109 = vmatpush3.msra.mxu0 %v9546_v10  ;;  %8147 = vmatpush3.msra.mxu1 %v9552_v25 }
  0x8a   : > { %2534 = vmatprep.subr.mxu0 %v8791_v0  ;;  %2611 = vmatprep.subr.mxu1 %v8801_v2 }
  0xe8   : > { %v812_v5 = vpop.f32.mrf.mxu0  ;;  %v889_v23 = vpop.f32.mrf.mxu1 }
  0xea   : > { %v814_v8 = vpop.f32.mrf.mxu0  ;;  %v891_v7 = vpop.f32.mrf.mxu1 }
  0xec   : > { %v9558_v63 = vpop.f32.mrf.mxu0  ;;  %v9560_v18 = vpop.f32.mrf.mxu1 }
  0xee   : > { %v9562_v51 = vpop.f32.mrf.mxu0  ;;  %v9564_v49 = vpop.f32.mrf.mxu1 }
  0xf0   : > { %v970_v48 = vpop.f32.mrf.mxu0  ;;  %v1047_v10 = vpop.f32.mrf.mxu1 }
  0xf1   : > { %v971_v13 = vadd.f32 %v970_v48, %v812_v5  ;;  %v1048_v41 = vadd.f32 %v1047_v10, %v889_v23  ;;  %v9620_v5 = vrot.slane %v717_v6, %v2298_v17  ;;  %v9624_v48 = vrot.slane %v717_v6, %v2302_v14 }
  0xf2   : > { %v972_v42 = vpop.f32.mrf.mxu0  ;;  %v1049_v25 = vpop.f32.mrf.mxu1 }
  0xf3   : > { %v973_v1 = vadd.f32 %v972_v42, %v814_v8  ;;  %v1050_v29 = vadd.f32 %v1049_v25, %v891_v7  ;;  %11607 = vst [vmem:[#allocation128_spill] sm:$0xff] %v9620_v5  ;;  %11609 = vst [vmem:[#allocation130_spill] sm:$0xff] %v9624_v48 }
  0xf4   : > { %v9566_v40 = vpop.f32.mrf.mxu0  ;;  %v9568_v0 = vpop.f32.mrf.mxu1 }
  0xf6   : > { %v9570_v2 = vpop.f32.mrf.mxu0  ;;  %v9572_v39 = vpop.f32.mrf.mxu1 }
  0xf7   : > { %v1056_v17 = vadd.f32 %v9572_v39, %v9564_v49 }
  0xf8   : > { %v1139_v38 = vpop.f32.mrf.mxu0  ;;  %v1216_v31 = vpop.f32.mrf.mxu1 }
  0xfa   : > { %v1141_v12 = vpop.f32.mrf.mxu0  ;;  %v1218_v11 = vpop.f32.mrf.mxu1 }
  0xfb   : > { %v1228_v10 = vadd.f32 %v1141_v12, %v973_v1  ;;  %v1230_v23 = vadd.f32 %v1218_v11, %v1050_v29 }
  0xfc   : > { %v9574_v62 = vpop.f32.mrf.mxu0  ;;  %v9576_v61 = vpop.f32.mrf.mxu1 }
  0xfe   : > { %v9578_v59 = vpop.f32.mrf.mxu0  ;;  %v9580_v58 = vpop.f32.mrf.mxu1 }
  0xff   : > { %v1234_v11 = vadd.f32 %v9580_v58, %v1056_v17 }
 0x100   : > { %v1312_v26 = vpop.f32.mrf.mxu0  ;;  %v1389_v55 = vpop.f32.mrf.mxu1 }
 0x102   : > { %v1314_v54 = vpop.f32.mrf.mxu0  ;;  %v1391_v53 = vpop.f32.mrf.mxu1 }
 0x103   : > { %v1403_v14 = vadd.f32 %v1391_v53, %v1230_v23 }
 0x104   : > { %v9582_v52 = vpop.f32.mrf.mxu0  ;;  %v9584_v24 = vpop.f32.mrf.mxu1 }
 0x106   : > { %v9586_v15 = vpop.f32.mrf.mxu0  ;;  %v9588_v46 = vpop.f32.mrf.mxu1 }
 0x108   : > { %v1489_v45 = vpop.f32.mrf.mxu0  ;;  %v1566_v44 = vpop.f32.mrf.mxu1 }
 0x10a   : > { %v1491_v43 = vpop.f32.mrf.mxu0  ;;  %v1568_v9 = vpop.f32.mrf.mxu1 }
 0x10c   : > { %v9590_v60 = vpop.f32.mrf.mxu0  ;;  %v9592_v37 = vpop.f32.mrf.mxu1 }
 0x10e   : > { %v9594_v36 = vpop.f32.mrf.mxu0  ;;  %v9596_v34 = vpop.f32.mrf.mxu1 }
 0x10f   : > { %11599 = vst [vmem:[#allocation120_spill] sm:$0xff] %v9596_v34  ;;  %v9618_v34 = vrot.slane %v717_v6, %v2290_v47  ;;  %v979_v47 = vadd.f32 %v9570_v2, %v9562_v51  ;;  %v1401_v6 = vadd.f32 %v1314_v54, %v1228_v10 }
 0x110   : > { %v1665_v33 = vpop.f32.mrf.mxu0  ;;  %v1742_v57 = vpop.f32.mrf.mxu1 }
 0x111   : > { %11606 = vst [vmem:[#allocation127_spill] sm:$0xff] %v9618_v34 }
 0x112   : > { %v1667_v56 = vpop.f32.mrf.mxu0  ;;  %v1744_v30 = vpop.f32.mrf.mxu1 }
 0x114   : > { %v9598_v28 = vpop.f32.mrf.mxu0  ;;  %v9600_v27 = vpop.f32.mrf.mxu1 }
 0x115   : > { %11600 = vst [vmem:[#allocation121_spill] sm:$0xff] %v9598_v28  ;;  %11601 = vst [vmem:[#allocation122_spill] sm:$0xff] %v9600_v27 }
 0x116   : > { %v9602_v50 = vpop.f32.mrf.mxu0  ;;  %v9604_v35 = vpop.f32.mrf.mxu1 }
 0x117   : > { %11602 = vst [vmem:[#allocation123_spill] sm:$0xff] %v9602_v50  ;;  %11603 = vst [vmem:[#allocation124_spill] sm:$0xff] %v9604_v35  ;;  %v1227_v35 = vadd.f32 %v1139_v38, %v971_v13  ;;  %v1229_v50 = vadd.f32 %v1216_v31, %v1048_v41  ;;  %v977_v13 = vadd.f32 %v9566_v40, %v9558_v63 }
 0x118   : > { %v1838_v21 = vpop.f32.mrf.mxu0  ;;  %v1915_v20 = vpop.f32.mrf.mxu1  ;;  %v1054_v41 = vadd.f32 %v9568_v0, %v9560_v18  ;;  %v1578_v38 = vadd.f32 %v1491_v43, %v1401_v6  ;;  %v1580_v40 = vadd.f32 %v1568_v9, %v1403_v14 }
 0x11a   : > { %v1840_v19 = vpop.f32.mrf.mxu0  ;;  %v1917_v32 = vpop.f32.mrf.mxu1  ;;  %v1754_v54 = vadd.f32 %v1667_v56, %v1578_v38 }
 0x11c   : > { %v9610_v4 = vpop.f32.mrf.mxu0  ;;  %v9612_v3 = vpop.f32.mrf.mxu1  ;;  %v1927_v51 = vadd.f32 %v1840_v19, %v1754_v54  ;;  %v11611_v7 = vld [vmem:[#allocation121_spill] sm:$0xff]  ;;  %v11612_v56 = vld [vmem:[#allocation122_spill] sm:$0xff] }
 0x11d   : > { %11604 = vst [vmem:[#allocation125_spill] sm:$0xff] %v9610_v4  ;;  %11605 = vst [vmem:[#allocation126_spill] sm:$0xff] %v9612_v3  ;;  %v1400_v4 = vadd.f32 %v1312_v26, %v1227_v35  ;;  %v1402_v3 = vadd.f32 %v1389_v55, %v1229_v50  ;;  %v1231_v35 = vadd.f32 %v9574_v62, %v977_v13 }
 0x11e   : > { %v9614_v27 = vpop.f32.mrf.mxu0  ;;  %v9616_v28 = vpop.f32.mrf.mxu1  ;;  %v1233_v50 = vadd.f32 %v9576_v61, %v1054_v41  ;;  %v1232_v55 = vadd.f32 %v9578_v59, %v979_v47  ;;  %v1756_v59 = vadd.f32 %v1744_v30, %v1580_v40  ;;  %v11614_v18 = vld [vmem:[#allocation124_spill] sm:$0xff] }
 0x11f   : > { %v1577_v1 = vadd.f32 %v1489_v45, %v1400_v4  ;;  %v1579_v29 = vadd.f32 %v1566_v44, %v1402_v3  ;;  %v1404_v49 = vadd.f32 %v9582_v52, %v1231_v35  ;;  %v1407_v4 = vadd.f32 %v9588_v46, %v1234_v11 }
 0x120   : > { %v2015_v16 = vpop.f32.mrf.mxu0  ;;  %v2092_v31 = vpop.f32.mrf.mxu1  ;;  %v1406_v53 = vadd.f32 %v9584_v24, %v1233_v50  ;;  %v1405_v3 = vadd.f32 %v9586_v15, %v1232_v55  ;;  %v1929_v15 = vadd.f32 %v1917_v32, %v1756_v59 }
 0x121   : > { %v1753_v42 = vadd.f32 %v1665_v33, %v1577_v1  ;;  %v1755_v39 = vadd.f32 %v1742_v57, %v1579_v29  ;;  %v1581_v62 = vadd.f32 %v9590_v60, %v1404_v49  ;;  %v11610_v57 = vld [vmem:[#allocation120_spill] sm:$0xff] }
 0x122   : > { %v2017_v12 = vpop.f32.mrf.mxu0  ;;  %v2094_v26 = vpop.f32.mrf.mxu1  ;;  %v1583_v43 = vadd.f32 %v9592_v37, %v1406_v53  ;;  %v1582_v33 = vadd.f32 %v9594_v36, %v1405_v3  ;;  %v1584_v52 = vadd.f32 %v11610_v57, %v1407_v4 }
 0x123   : > { %v1926_v61 = vadd.f32 %v1838_v21, %v1753_v42  ;;  %v1928_v58 = vadd.f32 %v1915_v20, %v1755_v39  ;;  %v1757_v8 = vadd.f32 %v11611_v7, %v1581_v62  ;;  %v11613_v21 = vld [vmem:[#allocation123_spill] sm:$0xff]  ;;  %v2104_v0 = vadd.f32 %v2017_v12, %v1927_v51  ;;  %v11625_v7 = vld [vmem:[#allocation16_spill] sm:$0xff] }
 0x124   : > { %v2021_v44 = vpop.f32.mrf.mxu0  ;;  %v2098_v45 = vpop.f32.mrf.mxu1  ;;  %v1759_v30 = vadd.f32 %v11612_v56, %v1583_v43  ;;  %v1758_v20 = vadd.f32 %v11613_v21, %v1582_v33  ;;  %v1760_v60 = vadd.f32 %v11614_v18, %v1584_v52  ;;  %v2106_v36 = vadd.f32 %v2094_v26, %v1929_v15  ;;  %v11615_v23 = vld [vmem:[#allocation125_spill] sm:$0xff]  ;;  %v11616_v19 = vld [vmem:[#allocation126_spill] sm:$0xff]  ;;  %v11618_v62 = vld [vmem:[#allocation11_spill] sm:$0xff] }
 0x125   : > { %v2103_v63 = vadd.f32 %v2015_v16, %v1926_v61  ;;  %v2105_v46 = vadd.f32 %v2092_v31, %v1928_v58  ;;  %v1930_v13 = vadd.f32 %v11615_v23, %v1757_v8  ;;  %v11617_v58 = vld [vmem:[#allocation10_spill] sm:$0xff]  ;;  %v11621_v51 = vmov 0.0   ;;  %v11622_v15 = vld [vmem:[#allocation32_spill] sm:$0xff]  ;;  %v11626_v8 = vld [vmem:[#allocation17_spill] sm:$0xff] }
 0x126   : > { %v2023_v9 = vpop.f32.mrf.mxu0  ;;  %v2100_v24 = vpop.f32.mrf.mxu1  ;;  %v1932_v32 = vadd.f32 %v11616_v19, %v1759_v30  ;;  %v1931_v17 = vadd.f32 %v9614_v27, %v1758_v20  ;;  %v1933_v16 = vadd.f32 %v9616_v28, %v1760_v60  ;;  %v11627_v56 = vld [vmem:[#allocation37_spill] sm:$0xff]  ;;  %v11628_v30 = vld [vmem:[#allocation26_spill] sm:$0xff]  ;;  %v11630_v20 = vld [vmem:[#allocation19_spill] sm:$0xff] }
 0x127   : > { %v2107_v14 = vadd.f32 %v2021_v44, %v1930_v13  ;;  %v11629_v21 = vld [vmem:[#allocation18_spill] sm:$0xff]  ;;  %v11631_v18 = vld [vmem:[#allocation20_spill] sm:$0xff]  ;;  %v11632_v60 = vld [vmem:[#allocation21_spill] sm:$0xff] }
 0x128   : > { %v2191_v25 = vpop.f32.mrf.mxu0  ;;  %v2268_v37 = vpop.f32.mrf.mxu1  ;;  %v2109_v1 = vadd.f32 %v2098_v45, %v1932_v32  ;;  %v2108_v11 = vadd.f32 %v2023_v9, %v1931_v17  ;;  %v2110_v12 = vadd.f32 %v2100_v24, %v1933_v16  ;;  %v11619_v9 = vld [vmem:[#allocation12_spill] sm:$0xff]  ;;  %v11620_v24 = vld [vmem:[#allocation13_spill] sm:$0xff]  ;;  %v11639_v23 = vld [vmem:[#allocation43_spill] sm:$0xff] }
 0x129   : > { %v2279_v2 = vadd.f32 %v2191_v25, %v2103_v63  ;;  %v2281_v10 = vadd.f32 %v2268_v37, %v2105_v46  ;;  %v11623_v63 = vld [vmem:[#allocation14_spill] sm:$0xff]  ;;  %v11624_v46 = vld [vmem:[#allocation15_spill] sm:$0xff]  ;;  %v11633_v25 = vld [vmem:[#allocation29_spill] sm:$0xff] }
 0x12a   : > { %v2193_v41 = vpop.f32.mrf.mxu0  ;;  %v2270_v47 = vpop.f32.mrf.mxu1  ;;  %v11634_v37 = vld [vmem:[#allocation38_spill] sm:$0xff]  ;;  %v11640_v13 = vld [vmem:[#allocation44_spill] sm:$0xff]  ;;  %v11641_v19 = vld [vmem:[#allocation27_spill] sm:$0xff] }
 0x12b   : > { %v2280_v31 = vadd.f32 %v2193_v41, %v2104_v0  ;;  %v2282_v6 = vadd.f32 %v2270_v47, %v2106_v36  ;;  %v2308_v29 = vadd.f32 %v9618_v34, %v2279_v2  ;;  %v2310_v35 = vadd.f32 %v9620_v5, %v2281_v10  ;;  %v11635_v0 = vld [vmem:[#allocation22_spill] sm:$0xff]  ;;  %v11636_v36 = vld [vmem:[#allocation23_spill] sm:$0xff]  ;;  %v11637_v2 = vld [vmem:[#allocation24_spill] sm:$0xff] }
 0x12c   : > { %v2197_v50 = vpop.f32.mrf.mxu0  ;;  %v2274_v55 = vpop.f32.mrf.mxu1  ;;  %v11638_v10 = vld [vmem:[#allocation25_spill] sm:$0xff]  ;;  %v11642_v32 = vld [vmem:[#allocation28_spill] sm:$0xff]  ;;  %v11643_v41 = vld [vmem:[#allocation30_spill] sm:$0xff] }
 0x12d   : > { %v2309_v26 = vadd.f32 %v9622_v22, %v2280_v31  ;;  %v2311_v38 = vadd.f32 %v9624_v48, %v2282_v6  ;;  %v2283_v40 = vadd.f32 %v2197_v50, %v2107_v14  ;;  %v2285_v27 = vadd.f32 %v2274_v55, %v2109_v1  ;;  %v11644_v47 = vld [vmem:[#allocation31_spill] sm:$0xff]  ;;  %v11646_v16 = vld [vmem:[#allocation50_spill] sm:$0xff]  ;;  %v11647_v31 = vld [vmem:[#allocation33_spill] sm:$0xff] }
 0x12e   : > { %v2199_v42 = vpop.f32.mrf.mxu0  ;;  %v2276_v28 = vpop.f32.mrf.mxu1  ;;  %v2316_v4 = vmax.f32 %v2308_v29, 0.0  ;;  %v2318_v44 = vmax.f32 %v2310_v35, 0.0  ;;  %v11645_v17 = vld [vmem:[#allocation47_spill] sm:$0xff]  ;;  %v11648_v6 = vld [vmem:[#allocation34_spill] sm:$0xff]  ;;  %v11650_v1 = vld [vmem:[#allocation36_spill] sm:$0xff] }
 0x12f   : > { %v2284_v39 = vadd.f32 %v2199_v42, %v2108_v11  ;;  %v2286_v49 = vadd.f32 %v2276_v28, %v2110_v12  ;;  %v2317_v53 = vmax.f32 %v2309_v26, 0.0  ;;  %v2319_v3 = vmax.f32 %v2311_v38, 0.0  ;;  %v11649_v14 = vld [vmem:[#allocation35_spill] sm:$0xff]  ;;  %v11651_v29 = vld [vmem:[#allocation53_spill] sm:$0xff]  ;;  %v11652_v35 = vld [vmem:[#allocation54_spill] sm:$0xff] }
 0x130   : > { %v2312_v45 = vadd.f32 %v9618_v34, %v2283_v40  ;;  %v2314_v54 = vadd.f32 %v9620_v5, %v2285_v27  ;;  %v11653_v50 = vld [vmem:[#allocation39_spill] sm:$0xff]  ;;  %v11654_v55 = vld [vmem:[#allocation40_spill] sm:$0xff]  ;;  %v11655_v11 = vld [vmem:[#allocation41_spill] sm:$0xff] }
 0x131   : > { %v2313_v59 = vadd.f32 %v9622_v22, %v2284_v39  ;;  %v2315_v61 = vadd.f32 %v9624_v48, %v2286_v49  ;;  %2394 = vmatprep.mubr.f32.mxu0 %v2317_v53  ;;  %2469 = vmatprep.mubr.f32.mxu1 %v2319_v3  ;;  %v11656_v12 = vld [vmem:[#allocation42_spill] sm:$0xff]  ;;  %v11657_v26 = vld [vmem:[#allocation55_spill] sm:$0xff]  ;;  %v11660_v27 = vld [vmem:[#allocation45_spill] sm:$0xff] }
 0x132   : > { %2395 = vmatmul.mubr.f32.vlgmr.msra.gmra.mxu0 %v2316_v4  ;;  %2470 = vmatmul.mubr.f32.vlgmr.msra.gmra.mxu1 %v2318_v44  ;;  %v2320_v57 = vmax.f32 %v2312_v45, 0.0  ;;  %v2322_v52 = vmax.f32 %v2314_v54, 0.0  ;;  %v9772_v38 = vld [vmem:[%s9761_s18] sm:$0xff]  ;;  %v9775_v40 = vld [vmem:[%s9761_s18 + $0x8] sm:$0xff]  ;;  %v645_v49 = vld [vmem:[%s9761_s18 + $0x10] sm:$0x3] }
 0x133   : > { %2535 = vmatpush1.msra.mxu0 %v11617_v58  ;;  %2612 = vmatpush1.msra.mxu1 %v11618_v62  ;;  %v2321_v43 = vmax.f32 %v2313_v59, 0.0  ;;  %v2323_v33 = vmax.f32 %v2315_v61, 0.0  ;;  %11658 = vst [vmem:[#allocation120_spill] sm:$0xff] %v9772_v38  ;;  %11659 = vst [vmem:[#allocation121_spill] sm:$0xff] %v9775_v40  ;;  %v11661_v42 = vld [vmem:[#allocation46_spill] sm:$0xff]  ;;  %v3653_v28 = vrot.slane %v9772_v38, 1 }
 0x134   : > { %2688 = vmatprep.subr.mxu0 %v11619_v9  ;;  %2765 = vmatprep.subr.mxu1 %v11620_v24  ;;  %v3654_v39 = vrot.slane %v9775_v40, 1  ;;  %v11662_v53 = vld [vmem:[#allocation48_spill] sm:$0xff]  ;;  %v11663_v3 = vld [vmem:[#allocation49_spill] sm:$0xff]  ;;  %v3656_v44 = vrot.slane %v645_v49, 1  ;;  %v11665_v45 = vld [vmem:[#allocation51_spill] sm:$0xff]  ;;  %v3828_v61 = vrot.slane %v9772_v38, 2 }
 0x135   : > { %2399 = vmatprep.mubr.f32.mxu0 %v2321_v43  ;;  %2474 = vmatprep.mubr.f32.mxu1 %v2323_v33  ;;  %v11666_v54 = vld [vmem:[#allocation52_spill] sm:$0xff]  ;;  %v3829_v58 = vrot.slane %v9775_v40, 2  ;;  %v11669_v43 = vld [vmem:[#allocation57_spill] sm:$0xff]  ;;  %v11672_v9 = vld [vmem:[#allocation58_spill] sm:$0xff] }
 0x136   : > { %2400 = vmatmul.mubr.f32.gmra.mxu0 %v2320_v57  ;;  %2475 = vmatmul.mubr.f32.gmra.mxu1 %v2322_v52  ;;  %v9797_v4 = vsel %vm735_vm0, %v3653_v28, %v3654_v39  ;;  %v9806_v59 = vsel %vm735_vm0, %v3654_v39, %v3656_v44  ;;  %v11668_v62 = vld [vmem:[#allocation56_spill] sm:$0xff]  ;;  %v3831_v57 = vrot.slane %v645_v49, 2  ;;  %v11673_v24 = vld [vmem:[#allocation59_spill] sm:$0xff]  ;;  %v11708_v28 = vld [vmem:[#allocation94_spill] sm:$0xff] }
 0x137   : > { %2568 = vmatprep.mubr.f32.mxu0 %v11621_v51  ;;  %2645 = vmatprep.mubr.f32.mxu1 %v11621_v51  ;;  %11664 = vst [vmem:[#allocation122_spill] sm:$0xff] %v9797_v4  ;;  %11667 = vst [vmem:[#allocation123_spill] sm:$0xff] %v9806_v59  ;;  %v9821_v33 = vsel %vm1063_vm2, %v3828_v61, %v3829_v58  ;;  %v11709_v39 = vld [vmem:[#allocation95_spill] sm:$0xff]  ;;  %v11710_v49 = vld [vmem:[#allocation96_spill] sm:$0xff] }
 0x138   : > { %11670 = vst [vmem:[#allocation124_spill] sm:$0xff] %v9821_v33  ;;  %v9830_v52 = vsel %vm1063_vm2, %v3829_v58, %v3831_v57  ;;  %v11713_v44 = vld [vmem:[#allocation99_spill] sm:$0xff]  ;;  %v11716_v61 = vld [vmem:[#allocation102_spill] sm:$0xff] }
 0x139   : > { %11671 = vst [vmem:[#allocation125_spill] sm:$0xff] %v9830_v52  ;;  %v11717_v58 = vld [vmem:[#allocation103_spill] sm:$0xff]  ;;  %v11720_v57 = vld [vmem:[#allocation106_spill] sm:$0xff] }
 0x13a   : > { %7864 = vmatmul.mubr.msk.f32.vlgmr.msra.gmra.mxu0 %vm741_vm1, %v11622_v15  ;;  %7866 = vmatmul.mubr.msk.f32.vlgmr.msra.gmra.mxu1 %vm741_vm1, %v11622_v15  ;;  %v11674_v15 = vld [vmem:[#allocation60_spill] sm:$0xff] }
 0x13b   : > { %2689 = vmatpush1.msra.mxu0 %v11623_v63  ;;  %2766 = vmatpush1.msra.mxu1 %v11624_v46  ;;  %v11675_v63 = vld [vmem:[#allocation61_spill] sm:$0xff]  ;;  %v11676_v46 = vld [vmem:[#allocation62_spill] sm:$0xff] }
 0x13c   : > { %2574 = vmatprep.mubr.f32.mxu0 %v11621_v51  ;;  %2651 = vmatprep.mubr.f32.mxu1 %v11621_v51 }
 0x13d   : > { %2846 = vmatprep.subr.mxu0 %v11625_v7  ;;  %2923 = vmatprep.subr.mxu1 %v11626_v8  ;;  %v11677_v7 = vld [vmem:[#allocation63_spill] sm:$0xff]  ;;  %v11678_v8 = vld [vmem:[#allocation64_spill] sm:$0xff] }
 0x13e   : > { %7865 = vmatmul.mubr.msk.f32.gmra.mxu0 %vm741_vm1, %v11627_v56  ;;  %7867 = vmatmul.mubr.msk.f32.gmra.mxu1 %vm741_vm1, %v11627_v56  ;;  %v11679_v56 = vld [vmem:[#allocation65_spill] sm:$0xff] }
 0x13f   : > { %2722 = vmatprep.mubr.f32.mxu0 %v11621_v51  ;;  %2799 = vmatprep.mubr.f32.mxu1 %v11621_v51 }
 0x142   : > { %7868 = vmatmul.mubr.msk.f32.vlgmr.msra.gmra.mxu0 %vm741_vm1, %v11628_v30  ;;  %7870 = vmatmul.mubr.msk.f32.vlgmr.msra.gmra.mxu1 %vm741_vm1, %v11628_v30  ;;  %v11680_v30 = vld [vmem:[#allocation66_spill] sm:$0xff] }
 0x143   : > { %2847 = vmatpush1.msra.mxu0 %v11629_v21  ;;  %2924 = vmatpush1.msra.mxu1 %v11630_v20  ;;  %v11681_v21 = vld [vmem:[#allocation67_spill] sm:$0xff]  ;;  %v11682_v20 = vld [vmem:[#allocation68_spill] sm:$0xff] }
 0x144   : > { %2728 = vmatprep.mubr.f32.mxu0 %v11621_v51  ;;  %2805 = vmatprep.mubr.f32.mxu1 %v11621_v51 }
 0x145   : > { %3012 = vmatprep.subr.mxu0 %v11631_v18  ;;  %3089 = vmatprep.subr.mxu1 %v11632_v60  ;;  %v11683_v18 = vld [vmem:[#allocation69_spill] sm:$0xff]  ;;  %v11684_v60 = vld [vmem:[#allocation70_spill] sm:$0xff] }
 0x146   : > { %7869 = vmatmul.mubr.msk.f32.gmra.mxu0 %vm741_vm1, %v11633_v25  ;;  %7871 = vmatmul.mubr.msk.f32.gmra.mxu1 %vm741_vm1, %v11633_v25  ;;  %v11685_v25 = vld [vmem:[#allocation71_spill] sm:$0xff] }
 0x147   : > { %2880 = vmatprep.mubr.f32.mxu0 %v11621_v51  ;;  %2957 = vmatprep.mubr.f32.mxu1 %v11621_v51 }
 0x14a   : > { %7876 = vmatmul.mubr.msk.f32.vlgmr.msra.gmra.mxu0 %vm741_vm1, %v11634_v37  ;;  %7878 = vmatmul.mubr.msk.f32.vlgmr.msra.gmra.mxu1 %vm741_vm1, %v11634_v37  ;;  %v11686_v37 = vld [vmem:[#allocation72_spill] sm:$0xff] }
 0x14b   : > { %3013 = vmatpush1.msra.mxu0 %v11635_v0  ;;  %3090 = vmatpush1.msra.mxu1 %v11636_v36  ;;  %v11687_v0 = vld [vmem:[#allocation73_spill] sm:$0xff]  ;;  %v11688_v36 = vld [vmem:[#allocation74_spill] sm:$0xff] }
 0x14c   : > { %2886 = vmatprep.mubr.f32.mxu0 %v11621_v51  ;;  %2963 = vmatprep.mubr.f32.mxu1 %v11621_v51 }
 0x14d   : > { %3178 = vmatprep.subr.mxu0 %v11637_v2  ;;  %3255 = vmatprep.subr.mxu1 %v11638_v10  ;;  %v11689_v2 = vld [vmem:[#allocation75_spill] sm:$0xff]  ;;  %v11690_v10 = vld [vmem:[#allocation76_spill] sm:$0xff] }
 0x14e   : > { %7877 = vmatmul.mubr.msk.f32.gmra.mxu0 %vm741_vm1, %v11639_v23  ;;  %7879 = vmatmul.mubr.msk.f32.gmra.mxu1 %vm741_vm1, %v11639_v23  ;;  %v11691_v23 = vld [vmem:[#allocation77_spill] sm:$0xff] }
 0x14f   : > { %3046 = vmatprep.mubr.f32.mxu0 %v11621_v51  ;;  %3123 = vmatprep.mubr.f32.mxu1 %v11621_v51 }
 0x152   : > { %7884 = vmatmul.mubr.msk.f32.vlgmr.msra.gmra.mxu0 %vm741_vm1, %v11640_v13  ;;  %7886 = vmatmul.mubr.msk.f32.vlgmr.msra.gmra.mxu1 %vm741_vm1, %v11640_v13  ;;  %v11692_v13 = vld [vmem:[#allocation78_spill] sm:$0xff] }
 0x153   : > { %3179 = vmatpush1.msra.mxu0 %v11641_v19  ;;  %3256 = vmatpush1.msra.mxu1 %v11642_v32  ;;  %v11693_v19 = vld [vmem:[#allocation79_spill] sm:$0xff]  ;;  %v11694_v32 = vld [vmem:[#allocation80_spill] sm:$0xff] }
 0x154   : > { %3052 = vmatprep.mubr.f32.mxu0 %v11621_v51  ;;  %3129 = vmatprep.mubr.f32.mxu1 %v11621_v51 }
 0x155   : > { %3344 = vmatprep.subr.mxu0 %v11643_v41  ;;  %3421 = vmatprep.subr.mxu1 %v11644_v47  ;;  %v11695_v41 = vld [vmem:[#allocation81_spill] sm:$0xff]  ;;  %v11696_v47 = vld [vmem:[#allocation82_spill] sm:$0xff] }
 0x156   : > { %7885 = vmatmul.mubr.msk.f32.gmra.mxu0 %vm741_vm1, %v11645_v17  ;;  %7887 = vmatmul.mubr.msk.f32.gmra.mxu1 %vm741_vm1, %v11645_v17  ;;  %v11697_v17 = vld [vmem:[#allocation83_spill] sm:$0xff] }
 0x157   : > { %3212 = vmatprep.mubr.f32.mxu0 %v11621_v51  ;;  %3289 = vmatprep.mubr.f32.mxu1 %v11621_v51 }
 0x15a   : > { %7892 = vmatmul.mubr.msk.f32.vlgmr.msra.gmra.mxu0 %vm741_vm1, %v11646_v16  ;;  %7894 = vmatmul.mubr.msk.f32.vlgmr.msra.gmra.mxu1 %vm741_vm1, %v11646_v16 }
 0x15b   : > { %3345 = vmatpush1.msra.mxu0 %v11647_v31  ;;  %3422 = vmatpush1.msra.mxu1 %v11648_v6  ;;  %v11698_v31 = vld [vmem:[#allocation84_spill] sm:$0xff]  ;;  %v11699_v6 = vld [vmem:[#allocation85_spill] sm:$0xff] }
 0x15c   : > { %3218 = vmatprep.mubr.f32.mxu0 %v11621_v51  ;;  %3295 = vmatprep.mubr.f32.mxu1 %v11621_v51 }
 0x15d   : > { %3516 = vmatprep.subr.mxu0 %v11649_v14  ;;  %3593 = vmatprep.subr.mxu1 %v11650_v1  ;;  %v11700_v14 = vld [vmem:[#allocation86_spill] sm:$0xff]  ;;  %v11701_v1 = vld [vmem:[#allocation87_spill] sm:$0xff] }
 0x15e   : > { %7893 = vmatmul.mubr.msk.f32.gmra.mxu0 %vm741_vm1, %v11651_v29  ;;  %7895 = vmatmul.mubr.msk.f32.gmra.mxu1 %vm741_vm1, %v11651_v29 }
 0x15f   : > { %3378 = vmatprep.mubr.f32.mxu0 %v11621_v51  ;;  %3455 = vmatprep.mubr.f32.mxu1 %v11621_v51 }
 0x162   : > { %7900 = vmatmul.mubr.msk.f32.vlgmr.msra.gmra.mxu0 %vm741_vm1, %v11652_v35  ;;  %7902 = vmatmul.mubr.msk.f32.vlgmr.msra.gmra.mxu1 %vm741_vm1, %v11652_v35 }
 0x163   : > { %3517 = vmatpush1.msra.mxu0 %v11653_v50  ;;  %3594 = vmatpush1.msra.mxu1 %v11654_v55  ;;  %v11702_v50 = vld [vmem:[#allocation88_spill] sm:$0xff]  ;;  %v11703_v55 = vld [vmem:[#allocation89_spill] sm:$0xff] }
 0x164   : > { %3384 = vmatprep.mubr.f32.mxu0 %v11621_v51  ;;  %3461 = vmatprep.mubr.f32.mxu1 %v11621_v51 }
 0x165   : > { %3692 = vmatprep.subr.mxu0 %v11655_v11  ;;  %3769 = vmatprep.subr.mxu1 %v11656_v12  ;;  %v11704_v11 = vld [vmem:[#allocation90_spill] sm:$0xff]  ;;  %v11705_v12 = vld [vmem:[#allocation91_spill] sm:$0xff] }
 0x166   : > { %7901 = vmatmul.mubr.msk.f32.gmra.mxu0 %vm741_vm1, %v11657_v26  ;;  %7903 = vmatmul.mubr.msk.f32.gmra.mxu1 %vm741_vm1, %v11657_v26 }
 0x167   : > { %3550 = vmatprep.mubr.f32.mxu0 %v11621_v51  ;;  %3627 = vmatprep.mubr.f32.mxu1 %v11621_v51 }
 0x16a   : > { %7908 = vmatmul.mubr.msk.f32.vlgmr.msra.gmra.mxu0 %vm741_vm1, %v9772_v38  ;;  %7910 = vmatmul.mubr.msk.f32.vlgmr.msra.gmra.mxu1 %vm741_vm1, %v9772_v38 }
 0x16b   : > { %3693 = vmatpush1.msra.mxu0 %v11660_v27  ;;  %3770 = vmatpush1.msra.mxu1 %v11661_v42  ;;  %v11706_v27 = vld [vmem:[#allocation92_spill] sm:$0xff]  ;;  %v11707_v42 = vld [vmem:[#allocation93_spill] sm:$0xff] }
 0x16c   : > { %3556 = vmatprep.mubr.f32.mxu0 %v11621_v51  ;;  %3633 = vmatprep.mubr.f32.mxu1 %v11621_v51 }
 0x16d   : > { %3867 = vmatprep.subr.mxu0 %v11662_v53  ;;  %3944 = vmatprep.subr.mxu1 %v11663_v3  ;;  %v11711_v53 = vld [vmem:[#allocation97_spill] sm:$0xff]  ;;  %v11712_v3 = vld [vmem:[#allocation98_spill] sm:$0xff] }
 0x16e   : > { %7909 = vmatmul.mubr.msk.f32.gmra.mxu0 %vm741_vm1, %v9775_v40  ;;  %7911 = vmatmul.mubr.msk.f32.gmra.mxu1 %vm741_vm1, %v9775_v40 }
 0x16f   : > { %3726 = vmatprep.mubr.f32.mxu0 %v11621_v51  ;;  %3803 = vmatprep.mubr.f32.mxu1 %v11621_v51 }
 0x172   : > { %7916 = vmatmul.mubr.msk.f32.vlgmr.msra.gmra.mxu0 %vm741_vm1, %v9797_v4  ;;  %7918 = vmatmul.mubr.msk.f32.vlgmr.msra.gmra.mxu1 %vm741_vm1, %v9797_v4 }
 0x173   : > { %3868 = vmatpush1.msra.mxu0 %v11665_v45  ;;  %3945 = vmatpush1.msra.mxu1 %v11666_v54  ;;  %v11714_v45 = vld [vmem:[#allocation100_spill] sm:$0xff]  ;;  %v11715_v54 = vld [vmem:[#allocation101_spill] sm:$0xff] }
 0x174   : > { %3732 = vmatprep.mubr.f32.mxu0 %v11621_v51  ;;  %3809 = vmatprep.mubr.f32.mxu1 %v11621_v51 }
 0x175   : > { %8154 = vmatprep.subr.mxu0 %v11668_v62  ;;  %8192 = vmatprep.subr.mxu1 %v11669_v43  ;;  %v11718_v62 = vld [vmem:[#allocation104_spill] sm:$0xff]  ;;  %v11719_v43 = vld [vmem:[#allocation105_spill] sm:$0xff] }
 0x176   : > { %7917 = vmatmul.mubr.msk.f32.gmra.mxu0 %vm741_vm1, %v9806_v59  ;;  %7919 = vmatmul.mubr.msk.f32.gmra.mxu1 %vm741_vm1, %v9806_v59 }
 0x177   : > { %3901 = vmatprep.mubr.f32.mxu0 %v11621_v51  ;;  %3978 = vmatprep.mubr.f32.mxu1 %v11621_v51 }
 0x17a   : > { %7924 = vmatmul.mubr.msk.f32.vlgmr.msra.gmra.mxu0 %vm741_vm1, %v9821_v33  ;;  %7926 = vmatmul.mubr.msk.f32.vlgmr.msra.gmra.mxu1 %vm741_vm1, %v9821_v33 }
 0x17b   : > { %3907 = vmatprep.mubr.f32.mxu0 %v11621_v51  ;;  %3984 = vmatprep.mubr.f32.mxu1 %v11621_v51 }
 0x17c   : > { %8155 = vmatpush3.msra.mxu0 %v11672_v9  ;;  %8193 = vmatpush3.msra.mxu1 %v11673_v24  ;;  %v11721_v9 = vld [vmem:[#allocation107_spill] sm:$0xff]  ;;  %v11722_v24 = vld [vmem:[#allocation108_spill] sm:$0xff] }
 0x17d   : > { %8156 = vmatprep.subr.mxu0 %v11674_v15  ;;  %8194 = vmatprep.subr.mxu1 %v11675_v63  ;;  %v11723_v15 = vld [vmem:[#allocation109_spill] sm:$0xff]  ;;  %v11724_v63 = vld [vmem:[#allocation110_spill] sm:$0xff] }
 0x17e   : > { %7925 = vmatmul.mubr.msk.f32.gmra.mxu0 %vm741_vm1, %v9830_v52  ;;  %7927 = vmatmul.mubr.msk.f32.gmra.mxu1 %vm741_vm1, %v9830_v52 }
 0x17f   : > { %8157 = vmatpush3.msra.mxu0 %v11676_v46  ;;  %8195 = vmatpush3.msra.mxu1 %v11677_v7  ;;  %v11725_v46 = vld [vmem:[#allocation111_spill] sm:$0xff]  ;;  %v11726_v7 = vld [vmem:[#allocation112_spill] sm:$0xff] }
 0x180   : > { %8158 = vmatprep.subr.mxu0 %v11678_v8  ;;  %8196 = vmatprep.subr.mxu1 %v11679_v56  ;;  %v11727_v8 = vld [vmem:[#allocation113_spill] sm:$0xff]  ;;  %v11728_v56 = vld [vmem:[#allocation114_spill] sm:$0xff] }
 0x181   : > { %8159 = vmatpush3.msra.mxu0 %v11680_v30  ;;  %8197 = vmatpush3.msra.mxu1 %v11681_v21  ;;  %v11729_v30 = vld [vmem:[#allocation115_spill] sm:$0xff]  ;;  %v11730_v21 = vld [vmem:[#allocation116_spill] sm:$0xff] }
 0x182   : > { %8160 = vmatprep.subr.mxu0 %v11682_v20  ;;  %8198 = vmatprep.subr.mxu1 %v11683_v18  ;;  %v11731_v20 = vld [vmem:[#allocation117_spill] sm:$0xff]  ;;  %v11732_v18 = vld [vmem:[#allocation118_spill] sm:$0xff] }
 0x183   : > { %8161 = vmatpush3.msra.mxu0 %v11684_v60  ;;  %8199 = vmatpush3.msra.mxu1 %v11685_v25  ;;  %v11733_v60 = vld [vmem:[#allocation119_spill] sm:$0xff] }
 0x184   : > { %8162 = vmatprep.subr.mxu0 %v11686_v37  ;;  %8200 = vmatprep.subr.mxu1 %v11687_v0  ;;  %v9901_v25 = vld [vmem:[%s11187_s6 + $0x28] sm:$0xff]  ;;  %v9906_v37 = vld [vmem:[%s11187_s6 + $0x38] sm:$0xff] }
 0x185   : > { %8163 = vmatpush3.msra.mxu0 %v11688_v36  ;;  %8201 = vmatpush3.msra.mxu1 %v11689_v2  ;;  %11734 = vst [vmem:[#allocation126_spill] sm:$0xff] %v9901_v25  ;;  %11735 = vst [vmem:[#allocation10_spill] sm:$0xff] %v9906_v37  ;;  %v9913_v2 = vld [vmem:[%s11190_s9] ss:$0 sm:$0xff] }
 0x186   : > { %8164 = vmatprep.subr.mxu0 %v11690_v10  ;;  %8202 = vmatprep.subr.mxu1 %v11691_v23  ;;  %11736 = vst [vmem:[#allocation11_spill] sm:$0xff] %v9913_v2 }
 0x187   : > { %8165 = vmatpush3.msra.mxu0 %v11692_v13  ;;  %8203 = vmatpush3.msra.mxu1 %v11693_v19 }
 0x188   : > { %8166 = vmatprep.subr.mxu0 %v11694_v32  ;;  %8204 = vmatprep.subr.mxu1 %v11695_v41 }
 0x189   : > { %8167 = vmatpush3.msra.mxu0 %v11696_v47  ;;  %8205 = vmatpush3.msra.mxu1 %v11697_v17 }
 0x18a   : > { %8168 = vmatprep.subr.mxu0 %v11698_v31  ;;  %8206 = vmatprep.subr.mxu1 %v11699_v6 }
 0x18b   : > { %8169 = vmatpush3.msra.mxu0 %v11700_v14  ;;  %8207 = vmatpush3.msra.mxu1 %v11701_v1 }
 0x18c   : > { %8170 = vmatprep.subr.mxu0 %v11702_v50  ;;  %8208 = vmatprep.subr.mxu1 %v11703_v55 }
 0x18d   : > { %8171 = vmatpush3.msra.mxu0 %v11704_v11  ;;  %8209 = vmatpush3.msra.mxu1 %v11705_v12 }
 0x18e   : > { %8172 = vmatprep.subr.mxu0 %v11706_v27  ;;  %8210 = vmatprep.subr.mxu1 %v11707_v42 }
 0x18f   : > { %8173 = vmatpush3.msra.mxu0 %v11708_v28  ;;  %8211 = vmatpush3.msra.mxu1 %v11709_v39 }
 0x190   : > { %8174 = vmatprep.subr.mxu0 %v11710_v49  ;;  %8212 = vmatprep.subr.mxu1 %v11711_v53 }
 0x191   : > { %8175 = vmatpush3.msra.mxu0 %v11712_v3  ;;  %8213 = vmatpush3.msra.mxu1 %v11713_v44 }
 0x192   : > { %8176 = vmatprep.subr.mxu0 %v11714_v45  ;;  %8214 = vmatprep.subr.mxu1 %v11715_v54 }
 0x193   : > { %8177 = vmatpush3.msra.mxu0 %v11716_v61  ;;  %8215 = vmatpush3.msra.mxu1 %v11717_v58 }
 0x194   : > { %8178 = vmatprep.subr.mxu0 %v11718_v62  ;;  %8216 = vmatprep.subr.mxu1 %v11719_v43 }
 0x195   : > { %8179 = vmatpush3.msra.mxu0 %v11720_v57  ;;  %8217 = vmatpush3.msra.mxu1 %v11721_v9 }
 0x196   : > { %8180 = vmatprep.subr.mxu0 %v11722_v24  ;;  %8218 = vmatprep.subr.mxu1 %v11723_v15 }
 0x197   : > { %8181 = vmatpush3.msra.mxu0 %v11724_v63  ;;  %8219 = vmatpush3.msra.mxu1 %v11725_v46 }
 0x198   : > { %8182 = vmatprep.subr.mxu0 %v11726_v7  ;;  %8220 = vmatprep.subr.mxu1 %v11727_v8 }
 0x199   : > { %8183 = vmatpush3.msra.mxu0 %v11728_v56  ;;  %8221 = vmatpush3.msra.mxu1 %v11729_v30 }
 0x19a   : > { %8184 = vmatprep.subr.mxu0 %v11730_v21  ;;  %8222 = vmatprep.subr.mxu1 %v11731_v20 }
 0x19b   : > { %8185 = vmatpush3.msra.mxu0 %v11732_v18  ;;  %8223 = vmatpush3.msra.mxu1 %v11733_v60 }
 0x19c   : > { %4220 = vmatprep.subr.mxu0 %v9901_v25  ;;  %4297 = vmatprep.subr.mxu1 %v9906_v37 }
 0x1f2   : > { %v8110_v0 = vpop.f32.mrf.mxu0  ;;  %v8148_v36 = vpop.f32.mrf.mxu1 }
 0x1f4   : > { %v8111_v10 = vpop.f32.mrf.mxu0  ;;  %v8149_v23 = vpop.f32.mrf.mxu1 }
 0x1f5   : > { %v8112_v13 = vadd.f32 %v8111_v10, %v8110_v0  ;;  %v8150_v47 = vadd.f32 %v8149_v23, %v8148_v36 }
 0x1f6   : > { %v8113_v19 = vpop.f32.mrf.mxu0  ;;  %v8151_v32 = vpop.f32.mrf.mxu1 }
 0x1f7   : > { %v2397_v41 = vadd.f32 %v8112_v13, %v9913_v2  ;;  %v11737_v13 = vlaneseq }
 0x1f8   : > { %v8114_v17 = vpop.f32.mrf.mxu0  ;;  %v8152_v31 = vpop.f32.mrf.mxu1 }
 0x1f9   : > { %v2472_v6 = vadd.f32 %v8150_v47, %v2397_v41  ;;  %v8115_v14 = vadd.f32 %v8114_v17, %v8113_v19  ;;  %v8153_v12 = vadd.f32 %v8152_v31, %v8151_v32  ;;  %v719_v19 = vand.u32 127, %v11737_v13 }
 0x1fa   : > { %v9916_v1 = vpop.f32.mrf.mxu0  ;;  %v9918_v50 = vpop.f32.mrf.mxu1 }
 0x1fb   : > { %v2480_v55 = vsub.f32 0.0, %v2472_v6  ;;  %v2402_v11 = vadd.f32 %v8115_v14, %v9913_v2  ;;  %vm720_vm3 = vcmp.ge.s32.totalorder %v719_v19, 6  ;;  %vm721_vm4 = vcmp.lt.s32.totalorder %v719_v19, 12 }
 0x1fc   : > { %v9921_v27 = vpop.f32.mrf.mxu0  ;;  %v9923_v42 = vpop.f32.mrf.mxu1  ;;  %vm9969_vm5 = vmand %vm720_vm3, %vm721_vm4 }
 0x1fd   : > { %v2482_v28 = vmul.f32 1.442695, %v2480_v55  ;;  %v2477_v39 = vadd.f32 %v8153_v12, %v2402_v11  ;;  %v11738_v55 = vmov 0 }
 0x1fe   : > { %v9925_v49 = vpop.f32.mrf.mxu0  ;;  %v9927_v53 = vpop.f32.mrf.mxu1  ;;  %v11739_v55 = vsel %vm9969_vm5, 4294967295, %v11738_v55 }
 0x1ff   : > { %8463 = vpow2.f32 %v2482_v28  ;;  %v2481_v3 = vsub.f32 0.0, %v2477_v39  ;;  %11740 = vst [vmem:[#allocation12_spill] sm:$0xff] %v11739_v55 }
 0x200   : > { %v9929_v44 = vpop.f32.mrf.mxu0  ;;  %v9931_v45 = vpop.f32.mrf.mxu1 }
 0x201   : > { %v2484_v54 = vmul.f32 1.442695, %v2481_v3 }
 0x202   : > { %v9933_v61 = vpop.f32.mrf.mxu0  ;;  %v9935_v58 = vpop.f32.mrf.mxu1 }
 0x203   : > { %8465 = vpow2.f32 %v2484_v54  ;;  %v2725_v35 = vadd.f32 %v9933_v61, %v9916_v1  ;;  %v2802_v55 = vadd.f32 %v9935_v58, %v9918_v50 }
 0x204   : > { %v9937_v62 = vpop.f32.mrf.mxu0  ;;  %v9939_v43 = vpop.f32.mrf.mxu1 }
 0x205   : > { %v2804_v29 = vadd.f32 %v9939_v43, %v9923_v42 }
 0x206   : > { %v9941_v57 = vpop.f32.mrf.mxu0  ;;  %v9943_v9 = vpop.f32.mrf.mxu1 }
 0x207   : > { %v2731_v1 = vadd.f32 %v9941_v57, %v9925_v49  ;;  %v2808_v50 = vadd.f32 %v9943_v9, %v9927_v53 }
 0x208   : > { %v9945_v24 = vpop.f32.mrf.mxu0  ;;  %v9947_v15 = vpop.f32.mrf.mxu1 }
 0x209   : > { %v2810_v42 = vadd.f32 %v9947_v15, %v9931_v45 }
 0x20a   : > { %v2882_v63 = vpop.f32.mrf.mxu0  ;;  %v2959_v46 = vpop.f32.mrf.mxu1 }
 0x20b   : > { %v2970_v16 = vadd.f32 %v2882_v63, %v2725_v35  ;;  %v2972_v51 = vadd.f32 %v2959_v46, %v2802_v55 }
 0x20c   : > { %v8464_v7 = vpop.eup %8463  ;;  %v2884_v8 = vpop.f32.mrf.mxu0 }
 0x20d   : > { %v2961_v56 = vpop.f32.mrf.mxu1  ;;  %v2486_v30 = vadd.f32 1.0, %v8464_v7 }
 0x20e   : > { %v9949_v21 = vpop.f32.mrf.mxu0  ;;  %v2973_v34 = vadd.f32 %v2961_v56, %v2804_v29 }
 0x20f   : > { %v9951_v20 = vpop.f32.mrf.mxu1  ;;  %8467 = vrcp.f32 %v2486_v30 }
 0x210   : > { %v8466_v18 = vpop.eup %8465  ;;  %v9953_v60 = vpop.f32.mrf.mxu0 }
 0x211   : > { %v9955_v0 = vpop.f32.mrf.mxu1  ;;  %v2487_v36 = vadd.f32 1.0, %v8466_v18 }
 0x212   : > { %v3048_v10 = vpop.f32.mrf.mxu0  ;;  %v2977_v53 = vadd.f32 %v9955_v0, %v2810_v42 }
 0x213   : > { %v3125_v23 = vpop.f32.mrf.mxu1  ;;  %8469 = vrcp.f32 %v2487_v36 }
 0x214   : > { %v3050_v32 = vpop.f32.mrf.mxu0 }
 0x215   : > { %v3127_v41 = vpop.f32.mrf.mxu1 }
 0x216   : > { %v9959_v47 = vpop.f32.mrf.mxu0 }
 0x217   : > { %v9961_v17 = vpop.f32.mrf.mxu1 }
 0x218   : > { %v9965_v31 = vpop.f32.mrf.mxu0 }
 0x219   : > { %v9967_v14 = vpop.f32.mrf.mxu1 }
 0x21a   : > { %v3214_v11 = vpop.f32.mrf.mxu0  ;;  %v3143_v46 = vadd.f32 %v9967_v14, %v2977_v53 }
 0x21b   : > { %v3291_v12 = vpop.f32.mrf.mxu1 }
 0x21c   : > { %v8468_v28 = vpop.eup %8467  ;;  %v3216_v3 = vpop.f32.mrf.mxu0 }
 0x21d   : > { %v3293_v54 = vpop.f32.mrf.mxu1  ;;  %v2492_v7 = vsel %vm9969_vm5, %v8468_v28, %v2472_v6 }
 0x21e   : > { %2494 = vst [vmem:[%s9975_s24] sm:$0xff] %v2492_v7  ;;  %v9978_v30 = vpop.f32.mrf.mxu0 }
 0x21f   : > { %11741 = vst [vmem:[#allocation13_spill] sm:$0xff] %v9978_v30  ;;  %v9980_v18 = vpop.f32.mrf.mxu1  ;;  %v3138_v30 = vadd.f32 %v3125_v23, %v2972_v51  ;;  %v2974_v51 = vadd.f32 %v9949_v21, %v2731_v1 }
 0x220   : > { %11742 = vst [vmem:[#allocation32_spill] sm:$0xff] %v9980_v18  ;;  %v8470_v36 = vpop.eup %8469  ;;  %v3222_v13 = vpop.f32.mrf.mxu0  ;;  %v3136_v18 = vadd.f32 %v3048_v10, %v2970_v16  ;;  %v2976_v16 = vadd.f32 %v9951_v20, %v2808_v50 }
 0x221   : > { %v3299_v19 = vpop.f32.mrf.mxu1  ;;  %v2493_v2 = vsel %vm9969_vm5, %v8470_v36, %v2477_v39  ;;  %v2727_v36 = vadd.f32 %v9937_v62, %v9921_v27  ;;  %v2733_v27 = vadd.f32 %v9945_v24, %v9929_v44  ;;  %v3139_v62 = vadd.f32 %v3127_v41, %v2973_v34 }
 0x222   : > { %2495 = vst [vmem:[%s9975_s24 + $0x8] sm:$0xff] %v2493_v2  ;;  %v3380_v37 = vpop.f32.mrf.mxu0  ;;  %v3302_v43 = vadd.f32 %v3214_v11, %v3136_v18  ;;  %v3304_v29 = vadd.f32 %v3291_v12, %v3138_v30  ;;  %v3140_v15 = vadd.f32 %v9959_v47, %v2974_v51  ;;  %v3142_v34 = vadd.f32 %v9961_v17, %v2976_v16  ;;  %v11747_v51 = vld [vmem:[#allocation129_spill] sm:$0xff] }
 0x223   : > { %v3457_v25 = vpop.f32.mrf.mxu1  ;;  %v2971_v5 = vadd.f32 %v2884_v8, %v2727_v36  ;;  %v2975_v49 = vadd.f32 %v9953_v60, %v2733_v27  ;;  %v3305_v24 = vadd.f32 %v3293_v54, %v3139_v62 }
 0x224   : > { %v3382_v52 = vpop.f32.mrf.mxu0  ;;  %v3468_v63 = vadd.f32 %v3380_v37, %v3302_v43  ;;  %v3470_v45 = vadd.f32 %v3457_v25, %v3304_v29  ;;  %v3309_v25 = vadd.f32 %v3299_v19, %v3143_v46  ;;  %v10025_v46 = vld [vmem:[%s11187_s6 + $0x30] sm:$0xff] }
 0x225   : > { %v3459_v6 = vpop.f32.mrf.mxu1  ;;  %v3137_v58 = vadd.f32 %v3050_v32, %v2971_v5  ;;  %v3141_v5 = vadd.f32 %v9965_v31, %v2975_v49  ;;  %11750 = vst [vmem:[#allocation15_spill] sm:$0xff] %v10025_v46 }
 0x226   : > { %v3386_v28 = vpop.f32.mrf.mxu0  ;;  %v3471_v20 = vadd.f32 %v3459_v6, %v3305_v24  ;;  %v11743_v10 = vld [vmem:[#allocation13_spill] sm:$0xff] }
 0x227   : > { %v3463_v33 = vpop.f32.mrf.mxu1  ;;  %v3303_v44 = vadd.f32 %v3216_v3, %v3137_v58  ;;  %v3306_v23 = vadd.f32 %v11743_v10, %v3140_v15  ;;  %v11744_v32 = vld [vmem:[#allocation32_spill] sm:$0xff]  ;;  %v3307_v37 = vadd.f32 %v3222_v13, %v3141_v5  ;;  %v10020_v5 = vld [vmem:[%s11187_s6 + $0x20] sm:$0xff] }
 0x228   : > { %v3388_v59 = vpop.f32.mrf.mxu0  ;;  %v3308_v41 = vadd.f32 %v11744_v32, %v3142_v34  ;;  %11749 = vst [vmem:[#allocation14_spill] sm:$0xff] %v10020_v5  ;;  %v11753_v32 = vmov 0.0  }
 0x229   : > { %v3465_v4 = vpop.f32.mrf.mxu1  ;;  %v3469_v21 = vadd.f32 %v3382_v52, %v3303_v44  ;;  %v3472_v3 = vadd.f32 %v3386_v28, %v3306_v23  ;;  %v3473_v54 = vadd.f32 %v3388_v59, %v3307_v37  ;;  %v11745_v28 = vld [vmem:[#allocation127_spill] sm:$0xff]  ;;  %v11746_v59 = vld [vmem:[#allocation128_spill] sm:$0xff] }
 0x22a   : > { %v3552_v7 = vpop.f32.mrf.mxu0  ;;  %v3474_v14 = vadd.f32 %v3463_v33, %v3308_v41  ;;  %v3475_v30 = vadd.f32 %v3465_v4, %v3309_v25  ;;  %v10048_v41 = vld [vmem:[%s11187_s6] sm:$0xff]  ;;  %v10053_v37 = vld [vmem:[%s11187_s6 + $0x10] sm:$0xff] }
 0x22b   : > { %v3629_v40 = vpop.f32.mrf.mxu1  ;;  %v3640_v60 = vadd.f32 %v3552_v7, %v3468_v63  ;;  %11754 = vst [vmem:[#allocation37_spill] sm:$0xff] %v10048_v41  ;;  %11755 = vst [vmem:[#allocation26_spill] sm:$0xff] %v10053_v37  ;;  %v11756_v25 = vld [vmem:[#allocation50_spill] sm:$0xff] }
 0x22c   : > { %v3554_v38 = vpop.f32.mrf.mxu0  ;;  %v3642_v0 = vadd.f32 %v3629_v40, %v3470_v45 }
 0x22d   : > { %v3631_v26 = vpop.f32.mrf.mxu1  ;;  %v3641_v11 = vadd.f32 %v3554_v38, %v3469_v21  ;;  %v10032_v21 = vld [vmem:[%s11187_s6 + $0x8] sm:$0xff] }
 0x22e   : > { %v3558_v39 = vpop.f32.mrf.mxu0  ;;  %v3643_v17 = vadd.f32 %v3631_v26, %v3471_v20  ;;  %11751 = vst [vmem:[#allocation16_spill] sm:$0xff] %v10032_v21  ;;  %v10037_v20 = vld [vmem:[%s11187_s6 + $0x18] sm:$0xff] }
 0x22f   : > { %v3635_v2 = vpop.f32.mrf.mxu1  ;;  %v3644_v1 = vadd.f32 %v3558_v39, %v3472_v3  ;;  %v11748_v39 = vld [vmem:[#allocation130_spill] sm:$0xff]  ;;  %11752 = vst [vmem:[#allocation17_spill] sm:$0xff] %v10037_v20  ;;  %v10097_v3 = vld [vmem:[%s11187_s6 + $0x68] sm:$0xff] }
 0x230   : > { %v3560_v48 = vpop.f32.mrf.mxu0  ;;  %v3646_v50 = vadd.f32 %v3635_v2, %v3474_v14  ;;  %11762 = vst [vmem:[#allocation29_spill] sm:$0xff] %v10097_v3  ;;  %v10102_v14 = vld [vmem:[%s11187_s6 + $0x78] sm:$0xff] }
 0x231   : > { %v3637_v22 = vpop.f32.mrf.mxu1  ;;  %v3645_v27 = vadd.f32 %v3560_v48, %v3473_v54  ;;  %11763 = vst [vmem:[#allocation38_spill] sm:$0xff] %v10102_v14  ;;  %v8496_v54 = vld [vmem:[%s9069_s25 + $0x8] sm:$0xff] }
 0x232   : > { %v3728_v35 = vpop.f32.mrf.mxu0  ;;  %v3647_v42 = vadd.f32 %v3637_v22, %v3475_v30  ;;  %v10118_v30 = vld [vmem:[%s11187_s6 + $0x60] sm:$0xff] }
 0x233   : > { %v3805_v61 = vpop.f32.mrf.mxu1  ;;  %v3816_v12 = vadd.f32 %v3728_v35, %v3640_v60  ;;  %11764 = vst [vmem:[#allocation22_spill] sm:$0xff] %v10118_v30 }
 0x234   : > { %v3730_v57 = vpop.f32.mrf.mxu0  ;;  %v3818_v31 = vadd.f32 %v3805_v61, %v3642_v0 }
 0x235   : > { %v3807_v9 = vpop.f32.mrf.mxu1  ;;  %v3817_v6 = vadd.f32 %v3730_v57, %v3641_v11  ;;  %v11759_v11 = vld [vmem:[#allocation53_spill] sm:$0xff] }
 0x236   : > { %v3734_v8 = vpop.f32.mrf.mxu0  ;;  %v3819_v40 = vadd.f32 %v3807_v9, %v3643_v17  ;;  %v10084_v17 = vld [vmem:[%s11187_s6 + $0x40] sm:$0xff] }
 0x237   : > { %v3811_v56 = vpop.f32.mrf.mxu1  ;;  %v3820_v35 = vadd.f32 %v3734_v8, %v3644_v1  ;;  %11760 = vst [vmem:[#allocation20_spill] sm:$0xff] %v10084_v17  ;;  %v10160_v1 = vld [vmem:[%s11187_s6 + $0x90] sm:$0xff] }
 0x238   : > { %v3736_v55 = vpop.f32.mrf.mxu0  ;;  %v3822_v61 = vadd.f32 %v3811_v56, %v3646_v50  ;;  %11771 = vst [vmem:[#allocation44_spill] sm:$0xff] %v10160_v1  ;;  %v11772_v50 = vld [vmem:[#allocation120_spill] sm:$0xff] }
 0x239   : > { %v3813_v47 = vpop.f32.mrf.mxu1  ;;  %v3821_v43 = vadd.f32 %v3736_v55, %v3645_v27  ;;  %v10062_v55 = vld [vmem:[%s11187_s6 + $0x48] sm:$0xff]  ;;  %v11775_v27 = vld [vmem:[#allocation121_spill] sm:$0xff] }
 0x23a   : > { %v3903_v52 = vpop.f32.mrf.mxu0  ;;  %v3823_v29 = vadd.f32 %v3813_v47, %v3647_v42  ;;  %11757 = vst [vmem:[#allocation18_spill] sm:$0xff] %v10062_v55  ;;  %v10067_v47 = vld [vmem:[%s11187_s6 + $0x58] sm:$0xff]  ;;  %v10191_v42 = vld [vmem:[%s11187_s6 + $0xa0] sm:$0xff] }
 0x23b   : > { %v3980_v18 = vpop.f32.mrf.mxu1  ;;  %v3991_v7 = vadd.f32 %v3903_v52, %v3816_v12  ;;  %11758 = vst [vmem:[#allocation19_spill] sm:$0xff] %v10067_v47  ;;  %v10089_v12 = vld [vmem:[%s11187_s6 + $0x50] sm:$0xff]  ;;  %11776 = vst [vmem:[#allocation30_spill] sm:$0xff] %v10191_v42 }
 0x23c   : > { %v3993_v36 = vadd.f32 %v3980_v18, %v3818_v31  ;;  %v3905_v13 = vpop.f32.mrf.mxu0  ;;  %11761 = vst [vmem:[#allocation21_spill] sm:$0xff] %v10089_v12  ;;  %v8495_v31 = vld [vmem:[%s9069_s25] sm:$0xff]  ;;  %v10123_v52 = vld [vmem:[%s11187_s6 + $0x70] sm:$0xff] }
 0x23d   : > { %v3982_v19 = vpop.f32.mrf.mxu1  ;;  %v3992_v38 = vadd.f32 %v3905_v13, %v3817_v6  ;;  %v3999_v33 = vadd.f32 %v3991_v7, %v11745_v28  ;;  %11765 = vst [vmem:[#allocation23_spill] sm:$0xff] %v10123_v52  ;;  %v11766_v18 = vld [vmem:[#allocation54_spill] sm:$0xff]  ;;  %v10132_v6 = vld [vmem:[%s11187_s6 + $0x88] sm:$0xff] }
 0x23e   : > { %v3994_v26 = vadd.f32 %v3982_v19, %v3819_v40  ;;  %v4001_v4 = vadd.f32 %v3993_v36, %v11746_v59  ;;  %v3909_v58 = vpop.f32.mrf.mxu0  ;;  %11767 = vst [vmem:[#allocation24_spill] sm:$0xff] %v10132_v6  ;;  %v10137_v40 = vld [vmem:[%s11187_s6 + $0x98] sm:$0xff]  ;;  %v11769_v7 = vld [vmem:[#allocation55_spill] sm:$0xff]  ;;  %v10155_v36 = vld [vmem:[%s11187_s6 + $0x80] sm:$0xff] }
 0x23f   : > { %v3986_v62 = vpop.f32.mrf.mxu1  ;;  %v4000_v16 = vadd.f32 %v3992_v38, %v11747_v51  ;;  %v3995_v49 = vadd.f32 %v3909_v58, %v3820_v35  ;;  %v4007_v63 = vmax.f32 %v3999_v33, 0.0  ;;  %11768 = vst [vmem:[#allocation25_spill] sm:$0xff] %v10137_v40  ;;  %11770 = vst [vmem:[#allocation43_spill] sm:$0xff] %v10155_v36  ;;  %v10169_v13 = vld [vmem:[%s11187_s6 + $0xa8] sm:$0xff]  ;;  %v10174_v19 = vld [vmem:[%s11187_s6 + $0xb8] sm:$0xff] }
 0x240   : > { %v4002_v2 = vadd.f32 %v3994_v26, %v11748_v39  ;;  %v3997_v53 = vadd.f32 %v3986_v62, %v3822_v61  ;;  %v3911_v48 = vpop.f32.mrf.mxu0  ;;  %v4009_v45 = vmax.f32 %v4001_v4, 0.0  ;;  %11773 = vst [vmem:[#allocation27_spill] sm:$0xff] %v10169_v13  ;;  %11774 = vst [vmem:[#allocation28_spill] sm:$0xff] %v10174_v19  ;;  %v10196_v38 = vld [vmem:[%s11187_s6 + $0xb0] sm:$0xff]  ;;  %v11778_v26 = vld [vmem:[#allocation122_spill] sm:$0xff] }
 0x241   : > { %v3988_v22 = vpop.f32.mrf.mxu1  ;;  %v4008_v57 = vmax.f32 %v4000_v16, 0.0  ;;  %v3996_v44 = vadd.f32 %v3911_v48, %v3821_v43  ;;  %v4003_v15 = vadd.f32 %v3995_v49, %v11745_v28  ;;  %11777 = vst [vmem:[#allocation31_spill] sm:$0xff] %v10196_v38  ;;  %v10205_v35 = vld [vmem:[%s11187_s6 + $0xc8] sm:$0xff]  ;;  %v10210_v61 = vld [vmem:[%s11187_s6 + $0xd8] sm:$0xff]  ;;  %v10228_v4 = vld [vmem:[%s11187_s6 + $0xc0] sm:$0xff] }
 0x242   : > { %v4010_v9 = vmax.f32 %v4002_v2, 0.0  ;;  %v3998_v24 = vadd.f32 %v3988_v22, %v3823_v29  ;;  %v4005_v34 = vadd.f32 %v3997_v53, %v11746_v59  ;;  %11779 = vst [vmem:[#allocation47_spill] sm:$0xff] %v10205_v35  ;;  %11780 = vst [vmem:[#allocation33_spill] sm:$0xff] %v10210_v61  ;;  %v11781_v33 = vld [vmem:[#allocation123_spill] sm:$0xff]  ;;  %v10233_v58 = vld [vmem:[%s11187_s6 + $0xd0] sm:$0xff] }
 0x243   : > { %v4004_v8 = vadd.f32 %v3996_v44, %v11747_v51  ;;  %4079 = vmatprep.mubr.f32.mxu0 %v4008_v57  ;;  %v4011_v10 = vmax.f32 %v4003_v15, 0.0  ;;  %11782 = vst [vmem:[#allocation34_spill] sm:$0xff] %v10228_v4  ;;  %11783 = vst [vmem:[#allocation35_spill] sm:$0xff] %v10233_v58  ;;  %v11784_v62 = vld [vmem:[#allocation124_spill] sm:$0xff]  ;;  %v10242_v43 = vld [vmem:[%s11187_s6 + $0xe8] sm:$0xff] }
 0x244   : > { %v4006_v56 = vadd.f32 %v3998_v24, %v11748_v39  ;;  %4154 = vmatprep.mubr.f32.mxu1 %v4010_v9  ;;  %4080 = vmatmul.mubr.f32.vlgmr.msra.gmra.mxu0 %v4007_v63  ;;  %v4013_v23 = vmax.f32 %v4005_v34, 0.0  ;;  %11785 = vst [vmem:[#allocation36_spill] sm:$0xff] %v10242_v43  ;;  %v10247_v29 = vld [vmem:[%s11187_s6 + $0xf8] sm:$0xff]  ;;  %v10264_v2 = vld [vmem:[%s617_s19] sm:$0xff]  ;;  %v10274_v53 = vld [vmem:[%s11187_s6 + $0xf0] sm:$0xff] }
 0x245   : > { %4155 = vmatmul.mubr.f32.vlgmr.msra.gmra.mxu1 %v4009_v45  ;;  %v4012_v60 = vmax.f32 %v4004_v8, 0.0  ;;  %4221 = vmatpush1.msra.mxu0 %v10020_v5  ;;  %11786 = vst [vmem:[#allocation39_spill] sm:$0xff] %v10247_v29  ;;  %v11787_v16 = vld [vmem:[#allocation125_spill] sm:$0xff]  ;;  %11788 = vst [vmem:[#allocation40_spill] sm:$0xff] %v10264_v2  ;;  %v10269_v49 = vld [vmem:[%s11187_s6 + $0xe0] sm:$0xff]  ;;  %v5339_v9 = vrot.slane %v10264_v2, 1 }
 0x246   : > { %v4014_v0 = vmax.f32 %v4006_v56, 0.0  ;;  %4298 = vmatpush1.msra.mxu1 %v10025_v46  ;;  %4374 = vmatprep.subr.mxu0 %v10032_v21  ;;  %11789 = vst [vmem:[#allocation41_spill] sm:$0xff] %v10269_v49  ;;  %11790 = vst [vmem:[#allocation42_spill] sm:$0xff] %v10274_v53  ;;  %v10276_v48 = vld [vmem:[%s617_s19 + $0x8] sm:$0xff]  ;;  %v10290_v57 = vld [vmem:[%s11187_s6 + $0x118] sm:$0xff]  ;;  %v5514_v56 = vrot.slane %v10264_v2, 2 }
 0x247   : > { %4451 = vmatprep.subr.mxu1 %v10037_v20  ;;  %4084 = vmatprep.mubr.f32.mxu0 %v4012_v60  ;;  %11791 = vst [vmem:[#allocation45_spill] sm:$0xff] %v10276_v48  ;;  %v10285_v22 = vld [vmem:[%s11187_s6 + $0x108] sm:$0xff]  ;;  %11793 = vst [vmem:[#allocation48_spill] sm:$0xff] %v10290_v57  ;;  %v5340_v44 = vrot.slane %v10276_v48, 1  ;;  %v648_v24 = vld [vmem:[%s617_s19 + $0x10] sm:$0x3] }
 0x248   : > { %4159 = vmatprep.mubr.f32.mxu1 %v4014_v0  ;;  %4085 = vmatmul.mubr.f32.gmra.mxu0 %v4011_v10  ;;  %11792 = vst [vmem:[#allocation46_spill] sm:$0xff] %v10285_v22  ;;  %v5342_v45 = vrot.slane %v648_v24, 1  ;;  %v10312_v15 = vld [vmem:[%s11187_s6 + $0x100] sm:$0xff]  ;;  %v10317_v34 = vld [vmem:[%s11187_s6 + $0x110] sm:$0xff]  ;;  %v5515_v60 = vrot.slane %v10276_v48, 2  ;;  %v10335_v0 = vld [vmem:[%s11189_s8 + $0xf8] sm:$0xff] }
 0x249   : > { %4160 = vmatmul.mubr.f32.gmra.mxu1 %v4013_v23  ;;  %4254 = vmatprep.mubr.f32.mxu0 %v11753_v32  ;;  %v10307_v63 = vsel %vm735_vm0, %v5339_v9, %v5340_v44  ;;  %11795 = vst [vmem:[#allocation51_spill] sm:$0xff] %v10312_v15  ;;  %11796 = vst [vmem:[#allocation52_spill] sm:$0xff] %v10317_v34  ;;  %v10341_v10 = vld [vmem:[%s11189_s8 + $0x1f8] sm:$0xff]  ;;  %v5517_v23 = vrot.slane %v648_v24, 2  ;;  %v10405_v9 = vld [vmem:[%s11189_s8 + $0xe8] sm:$0xff] }
 0x24a   : > { %4331 = vmatprep.mubr.f32.mxu1 %v11753_v32  ;;  %11794 = vst [vmem:[#allocation49_spill] sm:$0xff] %v10307_v63  ;;  %v10326_v8 = vsel %vm735_vm0, %v5340_v44, %v5342_v45  ;;  %11798 = vst [vmem:[#allocation57_spill] sm:$0xff] %v10335_v0  ;;  %v10411_v44 = vld [vmem:[%s11189_s8 + $0x1e8] sm:$0xff] }
 0x24b   : > { %11797 = vst [vmem:[#allocation56_spill] sm:$0xff] %v10326_v8  ;;  %11799 = vst [vmem:[#allocation58_spill] sm:$0xff] %v10341_v10  ;;  %v10417_v24 = vld [vmem:[%s11189_s8 + $0x68] sm:$0xff] }
 0x24c   : > { %7934 = vmatmul.mubr.msk.f32.vlgmr.msra.gmra.mxu0 %vm741_vm1, %v11756_v25  ;;  %11808 = vst [vmem:[#allocation67_spill] sm:$0xff] %v10405_v9  ;;  %11809 = vst [vmem:[#allocation68_spill] sm:$0xff] %v10411_v44  ;;  %v10423_v45 = vld [vmem:[%s11189_s8 + $0x168] sm:$0xff] }
 0x24d   : > { %7936 = vmatmul.mubr.msk.f32.vlgmr.msra.gmra.mxu1 %vm741_vm1, %v11756_v25  ;;  %4375 = vmatpush1.msra.mxu0 %v10048_v41  ;;  %v10351_v25 = vsel %vm1063_vm2, %v5514_v56, %v5515_v60  ;;  %11810 = vst [vmem:[#allocation69_spill] sm:$0xff] %v10417_v24  ;;  %11811 = vst [vmem:[#allocation70_spill] sm:$0xff] %v10423_v45  ;;  %v10429_v56 = vld [vmem:[%s11189_s8 + $0xe0] sm:$0xff] }
 0x24e   : > { %4452 = vmatpush1.msra.mxu1 %v10053_v37  ;;  %4260 = vmatprep.mubr.f32.mxu0 %v11753_v32  ;;  %11800 = vst [vmem:[#allocation59_spill] sm:$0xff] %v10351_v25  ;;  %11812 = vst [vmem:[#allocation71_spill] sm:$0xff] %v10429_v56 }
 0x24f   : > { %4337 = vmatprep.mubr.f32.mxu1 %v11753_v32  ;;  %4532 = vmatprep.subr.mxu0 %v10062_v55 }
 0x250   : > { %4609 = vmatprep.subr.mxu1 %v10067_v47  ;;  %7935 = vmatmul.mubr.msk.f32.gmra.mxu0 %vm741_vm1, %v11759_v11 }
 0x251   : > { %7937 = vmatmul.mubr.msk.f32.gmra.mxu1 %vm741_vm1, %v11759_v11  ;;  %4408 = vmatprep.mubr.f32.mxu0 %v11753_v32  ;;  %v10360_v11 = vsel %vm1063_vm2, %v5515_v60, %v5517_v23  ;;  %v10435_v60 = vld [vmem:[%s11189_s8 + $0x1e0] sm:$0xff] }
 0x252   : > { %4485 = vmatprep.mubr.f32.mxu1 %v11753_v32  ;;  %11801 = vst [vmem:[#allocation60_spill] sm:$0xff] %v10360_v11  ;;  %11813 = vst [vmem:[#allocation72_spill] sm:$0xff] %v10435_v60  ;;  %v10441_v23 = vld [vmem:[%s11189_s8 + $0x60] sm:$0xff] }
 0x253   : > { %11814 = vst [vmem:[#allocation73_spill] sm:$0xff] %v10441_v23 }
 0x254   : > { %7938 = vmatmul.mubr.msk.f32.vlgmr.msra.gmra.mxu0 %vm741_vm1, %v8495_v31 }
 0x255   : > { %7940 = vmatmul.mubr.msk.f32.vlgmr.msra.gmra.mxu1 %vm741_vm1, %v8495_v31  ;;  %4533 = vmatpush1.msra.mxu0 %v10084_v17  ;;  %v10365_v31 = vld [vmem:[%s11189_s8 + $0x78] sm:$0xff] }
 0x256   : > { %4610 = vmatpush1.msra.mxu1 %v10089_v12  ;;  %4414 = vmatprep.mubr.f32.mxu0 %v11753_v32  ;;  %11802 = vst [vmem:[#allocation61_spill] sm:$0xff] %v10365_v31 }
 0x257   : > { %4491 = vmatprep.mubr.f32.mxu1 %v11753_v32  ;;  %4698 = vmatprep.subr.mxu0 %v10097_v3 }
 0x258   : > { %4775 = vmatprep.subr.mxu1 %v10102_v14  ;;  %7939 = vmatmul.mubr.msk.f32.gmra.mxu0 %vm741_vm1, %v8496_v54 }
 0x259   : > { %7941 = vmatmul.mubr.msk.f32.gmra.mxu1 %vm741_vm1, %v8496_v54  ;;  %4566 = vmatprep.mubr.f32.mxu0 %v11753_v32  ;;  %v10371_v54 = vld [vmem:[%s11189_s8 + $0x178] sm:$0xff] }
 0x25a   : > { %4643 = vmatprep.mubr.f32.mxu1 %v11753_v32  ;;  %11803 = vst [vmem:[#allocation62_spill] sm:$0xff] %v10371_v54 }
 0x25c   : > { %7946 = vmatmul.mubr.msk.f32.vlgmr.msra.gmra.mxu0 %vm741_vm1, %v11766_v18 }
 0x25d   : > { %7948 = vmatmul.mubr.msk.f32.vlgmr.msra.gmra.mxu1 %vm741_vm1, %v11766_v18  ;;  %4699 = vmatpush1.msra.mxu0 %v10118_v30  ;;  %v10377_v18 = vld [vmem:[%s11189_s8 + $0xf0] sm:$0xff] }
 0x25e   : > { %4776 = vmatpush1.msra.mxu1 %v10123_v52  ;;  %4572 = vmatprep.mubr.f32.mxu0 %v11753_v32  ;;  %11804 = vst [vmem:[#allocation63_spill] sm:$0xff] %v10377_v18 }
 0x25f   : > { %4649 = vmatprep.mubr.f32.mxu1 %v11753_v32  ;;  %4864 = vmatprep.subr.mxu0 %v10132_v6 }
 0x260   : > { %4941 = vmatprep.subr.mxu1 %v10137_v40  ;;  %7947 = vmatmul.mubr.msk.f32.gmra.mxu0 %vm741_vm1, %v11769_v7 }
 0x261   : > { %7949 = vmatmul.mubr.msk.f32.gmra.mxu1 %vm741_vm1, %v11769_v7  ;;  %4732 = vmatprep.mubr.f32.mxu0 %v11753_v32  ;;  %v10383_v7 = vld [vmem:[%s11189_s8 + $0x1f0] sm:$0xff] }
 0x262   : > { %4809 = vmatprep.mubr.f32.mxu1 %v11753_v32  ;;  %11805 = vst [vmem:[#allocation64_spill] sm:$0xff] %v10383_v7 }
 0x264   : > { %7954 = vmatmul.mubr.msk.f32.vlgmr.msra.gmra.mxu0 %vm741_vm1, %v11772_v50 }
 0x265   : > { %7956 = vmatmul.mubr.msk.f32.vlgmr.msra.gmra.mxu1 %vm741_vm1, %v11772_v50  ;;  %4865 = vmatpush1.msra.mxu0 %v10155_v36  ;;  %v10393_v50 = vld [vmem:[%s11189_s8 + $0x70] sm:$0xff] }
 0x266   : > { %4942 = vmatpush1.msra.mxu1 %v10160_v1  ;;  %4738 = vmatprep.mubr.f32.mxu0 %v11753_v32  ;;  %11806 = vst [vmem:[#allocation65_spill] sm:$0xff] %v10393_v50 }
 0x267   : > { %4815 = vmatprep.mubr.f32.mxu1 %v11753_v32  ;;  %5030 = vmatprep.subr.mxu0 %v10169_v13 }
 0x268   : > { %5107 = vmatprep.subr.mxu1 %v10174_v19  ;;  %7955 = vmatmul.mubr.msk.f32.gmra.mxu0 %vm741_vm1, %v11775_v27 }
 0x269   : > { %7957 = vmatmul.mubr.msk.f32.gmra.mxu1 %vm741_vm1, %v11775_v27  ;;  %4898 = vmatprep.mubr.f32.mxu0 %v11753_v32  ;;  %v10399_v27 = vld [vmem:[%s11189_s8 + $0x170] sm:$0xff] }
 0x26a   : > { %4975 = vmatprep.mubr.f32.mxu1 %v11753_v32  ;;  %11807 = vst [vmem:[#allocation66_spill] sm:$0xff] %v10399_v27 }
 0x26c   : > { %7962 = vmatmul.mubr.msk.f32.vlgmr.msra.gmra.mxu0 %vm741_vm1, %v11778_v26 }
 0x26d   : > { %7964 = vmatmul.mubr.msk.f32.vlgmr.msra.gmra.mxu1 %vm741_vm1, %v11778_v26  ;;  %5031 = vmatpush1.msra.mxu0 %v10191_v42 }
 0x26e   : > { %5108 = vmatpush1.msra.mxu1 %v10196_v38  ;;  %4904 = vmatprep.mubr.f32.mxu0 %v11753_v32 }
 0x26f   : > { %4981 = vmatprep.mubr.f32.mxu1 %v11753_v32  ;;  %5202 = vmatprep.subr.mxu0 %v10205_v35 }
 0x270   : > { %5279 = vmatprep.subr.mxu1 %v10210_v61  ;;  %7963 = vmatmul.mubr.msk.f32.gmra.mxu0 %vm741_vm1, %v11781_v33 }
 0x271   : > { %7965 = vmatmul.mubr.msk.f32.gmra.mxu1 %vm741_vm1, %v11781_v33  ;;  %5064 = vmatprep.mubr.f32.mxu0 %v11753_v32 }
 0x272   : > { %5141 = vmatprep.mubr.f32.mxu1 %v11753_v32 }
 0x274   : > { %7970 = vmatmul.mubr.msk.f32.vlgmr.msra.gmra.mxu0 %vm741_vm1, %v11784_v62 }
 0x275   : > { %7972 = vmatmul.mubr.msk.f32.vlgmr.msra.gmra.mxu1 %vm741_vm1, %v11784_v62  ;;  %5203 = vmatpush1.msra.mxu0 %v10228_v4 }
 0x276   : > { %5280 = vmatpush1.msra.mxu1 %v10233_v58  ;;  %5070 = vmatprep.mubr.f32.mxu0 %v11753_v32 }
 0x277   : > { %5147 = vmatprep.mubr.f32.mxu1 %v11753_v32  ;;  %5378 = vmatprep.subr.mxu0 %v10242_v43 }
 0x278   : > { %5455 = vmatprep.subr.mxu1 %v10247_v29  ;;  %7971 = vmatmul.mubr.msk.f32.gmra.mxu0 %vm741_vm1, %v11787_v16 }
 0x279   : > { %7973 = vmatmul.mubr.msk.f32.gmra.mxu1 %vm741_vm1, %v11787_v16  ;;  %5236 = vmatprep.mubr.f32.mxu0 %v11753_v32 }
 0x27a   : > { %5313 = vmatprep.mubr.f32.mxu1 %v11753_v32 }
 0x27c   : > { %7978 = vmatmul.mubr.msk.f32.vlgmr.msra.gmra.mxu0 %vm741_vm1, %v10264_v2 }
 0x27d   : > { %7980 = vmatmul.mubr.msk.f32.vlgmr.msra.gmra.mxu1 %vm741_vm1, %v10264_v2  ;;  %5379 = vmatpush1.msra.mxu0 %v10269_v49 }
 0x27e   : > { %5456 = vmatpush1.msra.mxu1 %v10274_v53  ;;  %5242 = vmatprep.mubr.f32.mxu0 %v11753_v32 }
 0x27f   : > { %5319 = vmatprep.mubr.f32.mxu1 %v11753_v32  ;;  %5553 = vmatprep.subr.mxu0 %v10285_v22 }
 0x280   : > { %5630 = vmatprep.subr.mxu1 %v10290_v57  ;;  %7979 = vmatmul.mubr.msk.f32.gmra.mxu0 %vm741_vm1, %v10276_v48 }
 0x281   : > { %7981 = vmatmul.mubr.msk.f32.gmra.mxu1 %vm741_vm1, %v10276_v48  ;;  %5412 = vmatprep.mubr.f32.mxu0 %v11753_v32 }
 0x282   : > { %5489 = vmatprep.mubr.f32.mxu1 %v11753_v32 }
 0x284   : > { %7986 = vmatmul.mubr.msk.f32.vlgmr.msra.gmra.mxu0 %vm741_vm1, %v10307_v63 }
 0x285   : > { %7988 = vmatmul.mubr.msk.f32.vlgmr.msra.gmra.mxu1 %vm741_vm1, %v10307_v63  ;;  %5554 = vmatpush1.msra.mxu0 %v10312_v15 }
 0x286   : > { %5631 = vmatpush1.msra.mxu1 %v10317_v34  ;;  %5418 = vmatprep.mubr.f32.mxu0 %v11753_v32 }
 0x287   : > { %5495 = vmatprep.mubr.f32.mxu1 %v11753_v32  ;;  %8230 = vmatprep.subr.mxu0 %v10335_v0 }
 0x288   : > { %8268 = vmatprep.subr.mxu1 %v10341_v10  ;;  %7987 = vmatmul.mubr.msk.f32.gmra.mxu0 %vm741_vm1, %v10326_v8 }
 0x289   : > { %7989 = vmatmul.mubr.msk.f32.gmra.mxu1 %vm741_vm1, %v10326_v8  ;;  %5587 = vmatprep.mubr.f32.mxu0 %v11753_v32 }
 0x28a   : > { %5664 = vmatprep.mubr.f32.mxu1 %v11753_v32 }
 0x28c   : > { %7994 = vmatmul.mubr.msk.f32.vlgmr.msra.gmra.mxu0 %vm741_vm1, %v10351_v25 }
 0x28d   : > { %7996 = vmatmul.mubr.msk.f32.vlgmr.msra.gmra.mxu1 %vm741_vm1, %v10351_v25  ;;  %5593 = vmatprep.mubr.f32.mxu0 %v11753_v32 }
 0x28e   : > { %5670 = vmatprep.mubr.f32.mxu1 %v11753_v32  ;;  %8231 = vmatpush3.msra.mxu0 %v10365_v31 }
 0x28f   : > { %8269 = vmatpush3.msra.mxu1 %v10371_v54  ;;  %8232 = vmatprep.subr.mxu0 %v10377_v18  ;;  %v11866_v54 = vld [vmem:[#allocation11_spill] sm:$0xff] }
 0x290   : > { %8270 = vmatprep.subr.mxu1 %v10383_v7  ;;  %7995 = vmatmul.mubr.msk.f32.gmra.mxu0 %vm741_vm1, %v10360_v11 }
 0x291   : > { %7997 = vmatmul.mubr.msk.f32.gmra.mxu1 %vm741_vm1, %v10360_v11  ;;  %8233 = vmatpush3.msra.mxu0 %v10393_v50 }
 0x292   : > { %8271 = vmatpush3.msra.mxu1 %v10399_v27  ;;  %8234 = vmatprep.subr.mxu0 %v10405_v9 }
 0x293   : > { %8272 = vmatprep.subr.mxu1 %v10411_v44  ;;  %8235 = vmatpush3.msra.mxu0 %v10417_v24  ;;  %v11865_v24 = vld [vmem:[#allocation10_spill] sm:$0xff] }
 0x294   : > { %8273 = vmatpush3.msra.mxu1 %v10423_v45  ;;  %8236 = vmatprep.subr.mxu0 %v10429_v56  ;;  %v10447_v45 = vld [vmem:[%s11189_s8 + $0x160] sm:$0xff]  ;;  %v10453_v56 = vld [vmem:[%s11189_s8 + $0xd8] sm:$0xff] }
 0x295   : > { %8274 = vmatprep.subr.mxu1 %v10435_v60  ;;  %8237 = vmatpush3.msra.mxu0 %v10441_v23  ;;  %11815 = vst [vmem:[#allocation74_spill] sm:$0xff] %v10447_v45  ;;  %11816 = vst [vmem:[#allocation75_spill] sm:$0xff] %v10453_v56  ;;  %v10459_v60 = vld [vmem:[%s11189_s8 + $0x1d8] sm:$0xff] }
 0x296   : > { %8275 = vmatpush3.msra.mxu1 %v10447_v45  ;;  %8238 = vmatprep.subr.mxu0 %v10453_v56  ;;  %11817 = vst [vmem:[#allocation76_spill] sm:$0xff] %v10459_v60  ;;  %v10465_v23 = vld [vmem:[%s11189_s8 + $0x58] sm:$0xff]  ;;  %v10477_v56 = vld [vmem:[%s11189_s8 + $0xd0] sm:$0xff] }
 0x297   : > { %8276 = vmatprep.subr.mxu1 %v10459_v60  ;;  %11818 = vst [vmem:[#allocation77_spill] sm:$0xff] %v10465_v23  ;;  %8239 = vmatpush3.msra.mxu0 %v10465_v23  ;;  %v10471_v45 = vld [vmem:[%s11189_s8 + $0x158] sm:$0xff]  ;;  %11820 = vst [vmem:[#allocation79_spill] sm:$0xff] %v10477_v56  ;;  %v10483_v60 = vld [vmem:[%s11189_s8 + $0x1d0] sm:$0xff] }
 0x298   : > { %11819 = vst [vmem:[#allocation78_spill] sm:$0xff] %v10471_v45  ;;  %8277 = vmatpush3.msra.mxu1 %v10471_v45  ;;  %8240 = vmatprep.subr.mxu0 %v10477_v56  ;;  %11821 = vst [vmem:[#allocation80_spill] sm:$0xff] %v10483_v60  ;;  %v10489_v23 = vld [vmem:[%s11189_s8 + $0x50] sm:$0xff]  ;;  %v10501_v56 = vld [vmem:[%s11189_s8 + $0xc8] sm:$0xff] }
 0x299   : > { %8278 = vmatprep.subr.mxu1 %v10483_v60  ;;  %11822 = vst [vmem:[#allocation81_spill] sm:$0xff] %v10489_v23  ;;  %8241 = vmatpush3.msra.mxu0 %v10489_v23  ;;  %v10495_v45 = vld [vmem:[%s11189_s8 + $0x150] sm:$0xff]  ;;  %11824 = vst [vmem:[#allocation83_spill] sm:$0xff] %v10501_v56  ;;  %v10507_v60 = vld [vmem:[%s11189_s8 + $0x1c8] sm:$0xff] }
 0x29a   : > { %11823 = vst [vmem:[#allocation82_spill] sm:$0xff] %v10495_v45  ;;  %8279 = vmatpush3.msra.mxu1 %v10495_v45  ;;  %8242 = vmatprep.subr.mxu0 %v10501_v56  ;;  %11825 = vst [vmem:[#allocation84_spill] sm:$0xff] %v10507_v60  ;;  %v10513_v23 = vld [vmem:[%s11189_s8 + $0x48] sm:$0xff]  ;;  %v10525_v56 = vld [vmem:[%s11189_s8 + $0xc0] sm:$0xff] }
 0x29b   : > { %8280 = vmatprep.subr.mxu1 %v10507_v60  ;;  %11826 = vst [vmem:[#allocation85_spill] sm:$0xff] %v10513_v23  ;;  %8243 = vmatpush3.msra.mxu0 %v10513_v23  ;;  %v10519_v45 = vld [vmem:[%s11189_s8 + $0x148] sm:$0xff]  ;;  %11828 = vst [vmem:[#allocation87_spill] sm:$0xff] %v10525_v56  ;;  %v10531_v60 = vld [vmem:[%s11189_s8 + $0x1c0] sm:$0xff] }
 0x29c   : > { %11827 = vst [vmem:[#allocation86_spill] sm:$0xff] %v10519_v45  ;;  %8281 = vmatpush3.msra.mxu1 %v10519_v45  ;;  %8244 = vmatprep.subr.mxu0 %v10525_v56  ;;  %11829 = vst [vmem:[#allocation88_spill] sm:$0xff] %v10531_v60  ;;  %v10537_v23 = vld [vmem:[%s11189_s8 + $0x40] sm:$0xff]  ;;  %v10549_v56 = vld [vmem:[%s11189_s8 + $0xb8] sm:$0xff] }
 0x29d   : > { %8282 = vmatprep.subr.mxu1 %v10531_v60  ;;  %11830 = vst [vmem:[#allocation89_spill] sm:$0xff] %v10537_v23  ;;  %8245 = vmatpush3.msra.mxu0 %v10537_v23  ;;  %v10543_v45 = vld [vmem:[%s11189_s8 + $0x140] sm:$0xff]  ;;  %11832 = vst [vmem:[#allocation91_spill] sm:$0xff] %v10549_v56  ;;  %v10555_v60 = vld [vmem:[%s11189_s8 + $0x1b8] sm:$0xff] }
 0x29e   : > { %11831 = vst [vmem:[#allocation90_spill] sm:$0xff] %v10543_v45  ;;  %8283 = vmatpush3.msra.mxu1 %v10543_v45  ;;  %8246 = vmatprep.subr.mxu0 %v10549_v56  ;;  %11833 = vst [vmem:[#allocation92_spill] sm:$0xff] %v10555_v60  ;;  %v10561_v23 = vld [vmem:[%s11189_s8 + $0x38] sm:$0xff]  ;;  %v10573_v56 = vld [vmem:[%s11189_s8 + $0xb0] sm:$0xff] }
 0x29f   : > { %8284 = vmatprep.subr.mxu1 %v10555_v60  ;;  %11834 = vst [vmem:[#allocation93_spill] sm:$0xff] %v10561_v23  ;;  %8247 = vmatpush3.msra.mxu0 %v10561_v23  ;;  %v10567_v45 = vld [vmem:[%s11189_s8 + $0x138] sm:$0xff]  ;;  %11836 = vst [vmem:[#allocation95_spill] sm:$0xff] %v10573_v56  ;;  %v10579_v60 = vld [vmem:[%s11189_s8 + $0x1b0] sm:$0xff] }
 0x2a0   : > { %11835 = vst [vmem:[#allocation94_spill] sm:$0xff] %v10567_v45  ;;  %8285 = vmatpush3.msra.mxu1 %v10567_v45  ;;  %8248 = vmatprep.subr.mxu0 %v10573_v56  ;;  %11837 = vst [vmem:[#allocation96_spill] sm:$0xff] %v10579_v60  ;;  %v10585_v23 = vld [vmem:[%s11189_s8 + $0x30] sm:$0xff]  ;;  %v10597_v56 = vld [vmem:[%s11189_s8 + $0xa8] sm:$0xff] }
 0x2a1   : > { %8286 = vmatprep.subr.mxu1 %v10579_v60  ;;  %11838 = vst [vmem:[#allocation97_spill] sm:$0xff] %v10585_v23  ;;  %8249 = vmatpush3.msra.mxu0 %v10585_v23  ;;  %v10591_v45 = vld [vmem:[%s11189_s8 + $0x130] sm:$0xff]  ;;  %11840 = vst [vmem:[#allocation99_spill] sm:$0xff] %v10597_v56  ;;  %v10603_v60 = vld [vmem:[%s11189_s8 + $0x1a8] sm:$0xff] }
 0x2a2   : > { %11839 = vst [vmem:[#allocation98_spill] sm:$0xff] %v10591_v45  ;;  %8287 = vmatpush3.msra.mxu1 %v10591_v45  ;;  %8250 = vmatprep.subr.mxu0 %v10597_v56  ;;  %11841 = vst [vmem:[#allocation100_spill] sm:$0xff] %v10603_v60  ;;  %v10609_v23 = vld [vmem:[%s11189_s8 + $0x28] sm:$0xff]  ;;  %v10621_v56 = vld [vmem:[%s11189_s8 + $0xa0] sm:$0xff] }
 0x2a3   : > { %8288 = vmatprep.subr.mxu1 %v10603_v60  ;;  %11842 = vst [vmem:[#allocation101_spill] sm:$0xff] %v10609_v23  ;;  %8251 = vmatpush3.msra.mxu0 %v10609_v23  ;;  %v10615_v45 = vld [vmem:[%s11189_s8 + $0x128] sm:$0xff]  ;;  %11844 = vst [vmem:[#allocation103_spill] sm:$0xff] %v10621_v56  ;;  %v10627_v60 = vld [vmem:[%s11189_s8 + $0x1a0] sm:$0xff] }
 0x2a4   : > { %11843 = vst [vmem:[#allocation102_spill] sm:$0xff] %v10615_v45  ;;  %8289 = vmatpush3.msra.mxu1 %v10615_v45  ;;  %8252 = vmatprep.subr.mxu0 %v10621_v56  ;;  %11845 = vst [vmem:[#allocation104_spill] sm:$0xff] %v10627_v60  ;;  %v10633_v23 = vld [vmem:[%s11189_s8 + $0x20] sm:$0xff]  ;;  %v10645_v56 = vld [vmem:[%s11189_s8 + $0x98] sm:$0xff] }
 0x2a5   : > { %8290 = vmatprep.subr.mxu1 %v10627_v60  ;;  %11846 = vst [vmem:[#allocation105_spill] sm:$0xff] %v10633_v23  ;;  %8253 = vmatpush3.msra.mxu0 %v10633_v23  ;;  %v10639_v45 = vld [vmem:[%s11189_s8 + $0x120] sm:$0xff]  ;;  %11848 = vst [vmem:[#allocation107_spill] sm:$0xff] %v10645_v56  ;;  %v10651_v60 = vld [vmem:[%s11189_s8 + $0x198] sm:$0xff] }
 0x2a6   : > { %11847 = vst [vmem:[#allocation106_spill] sm:$0xff] %v10639_v45  ;;  %8291 = vmatpush3.msra.mxu1 %v10639_v45  ;;  %8254 = vmatprep.subr.mxu0 %v10645_v56  ;;  %11849 = vst [vmem:[#allocation108_spill] sm:$0xff] %v10651_v60  ;;  %v10657_v23 = vld [vmem:[%s11189_s8 + $0x18] sm:$0xff]  ;;  %v10669_v56 = vld [vmem:[%s11189_s8 + $0x90] sm:$0xff] }
 0x2a7   : > { %8292 = vmatprep.subr.mxu1 %v10651_v60  ;;  %11850 = vst [vmem:[#allocation109_spill] sm:$0xff] %v10657_v23  ;;  %8255 = vmatpush3.msra.mxu0 %v10657_v23  ;;  %v10663_v45 = vld [vmem:[%s11189_s8 + $0x118] sm:$0xff]  ;;  %11852 = vst [vmem:[#allocation111_spill] sm:$0xff] %v10669_v56  ;;  %v10675_v60 = vld [vmem:[%s11189_s8 + $0x190] sm:$0xff] }
 0x2a8   : > { %11851 = vst [vmem:[#allocation110_spill] sm:$0xff] %v10663_v45  ;;  %8293 = vmatpush3.msra.mxu1 %v10663_v45  ;;  %8256 = vmatprep.subr.mxu0 %v10669_v56  ;;  %11853 = vst [vmem:[#allocation112_spill] sm:$0xff] %v10675_v60  ;;  %v10681_v23 = vld [vmem:[%s11189_s8 + $0x10] sm:$0xff]  ;;  %v10693_v56 = vld [vmem:[%s11189_s8 + $0x88] sm:$0xff] }
 0x2a9   : > { %8294 = vmatprep.subr.mxu1 %v10675_v60  ;;  %11854 = vst [vmem:[#allocation113_spill] sm:$0xff] %v10681_v23  ;;  %8257 = vmatpush3.msra.mxu0 %v10681_v23  ;;  %v10687_v45 = vld [vmem:[%s11189_s8 + $0x110] sm:$0xff]  ;;  %11856 = vst [vmem:[#allocation115_spill] sm:$0xff] %v10693_v56  ;;  %v10699_v60 = vld [vmem:[%s11189_s8 + $0x188] sm:$0xff] }
 0x2aa   : > { %11855 = vst [vmem:[#allocation114_spill] sm:$0xff] %v10687_v45  ;;  %8295 = vmatpush3.msra.mxu1 %v10687_v45  ;;  %8258 = vmatprep.subr.mxu0 %v10693_v56  ;;  %11857 = vst [vmem:[#allocation116_spill] sm:$0xff] %v10699_v60  ;;  %v10705_v23 = vld [vmem:[%s11189_s8 + $0x8] sm:$0xff]  ;;  %v10717_v56 = vld [vmem:[%s11189_s8 + $0x80] sm:$0xff] }
 0x2ab   : > { %8296 = vmatprep.subr.mxu1 %v10699_v60  ;;  %11858 = vst [vmem:[#allocation117_spill] sm:$0xff] %v10705_v23  ;;  %8259 = vmatpush3.msra.mxu0 %v10705_v23  ;;  %v10711_v45 = vld [vmem:[%s11189_s8 + $0x108] sm:$0xff]  ;;  %11860 = vst [vmem:[#allocation119_spill] sm:$0xff] %v10717_v56  ;;  %v10723_v60 = vld [vmem:[%s11189_s8 + $0x180] sm:$0xff] }
 0x2ac   : > { %11859 = vst [vmem:[#allocation118_spill] sm:$0xff] %v10711_v45  ;;  %8297 = vmatpush3.msra.mxu1 %v10711_v45  ;;  %8260 = vmatprep.subr.mxu0 %v10717_v56  ;;  %11861 = vst [vmem:[#allocation13_spill] sm:$0xff] %v10723_v60  ;;  %v10729_v23 = vld [vmem:[%s11189_s8] sm:$0xff] }
 0x2ad   : > { %8298 = vmatprep.subr.mxu1 %v10723_v60  ;;  %11862 = vst [vmem:[#allocation32_spill] sm:$0xff] %v10729_v23  ;;  %8261 = vmatpush3.msra.mxu0 %v10729_v23  ;;  %v10735_v45 = vld [vmem:[%s11189_s8 + $0x100] sm:$0xff] }
 0x2ae   : > { %11863 = vst [vmem:[#allocation50_spill] sm:$0xff] %v10735_v45  ;;  %8299 = vmatpush3.msra.mxu1 %v10735_v45  ;;  %v11864_v56 = vld [vmem:[#allocation126_spill] sm:$0xff] }
 0x2af   : > { %5906 = vmatprep.subr.mxu0 %v11864_v56  ;;  %5983 = vmatprep.subr.mxu1 %v11865_v24 }
 0x304   : > { %v8186_v44 = vpop.f32.mrf.mxu0 }
 0x305   : > { %v8224_v60 = vpop.f32.mrf.mxu1 }
 0x306   : > { %v8187_v9 = vpop.f32.mrf.mxu0 }
 0x307   : > { %v8225_v27 = vpop.f32.mrf.mxu1  ;;  %v8188_v50 = vadd.f32 %v8187_v9, %v8186_v44 }
 0x308   : > { %v8189_v7 = vpop.f32.mrf.mxu0  ;;  %v8226_v31 = vadd.f32 %v8225_v27, %v8224_v60 }
 0x309   : > { %v8227_v18 = vpop.f32.mrf.mxu1  ;;  %v4082_v23 = vadd.f32 %v8188_v50, %v11866_v54 }
 0x30a   : > { %v8190_v10 = vpop.f32.mrf.mxu0 }
 0x30b   : > { %v8228_v0 = vpop.f32.mrf.mxu1  ;;  %v4157_v34 = vadd.f32 %v8226_v31, %v4082_v23  ;;  %v8191_v15 = vadd.f32 %v8190_v10, %v8189_v7 }
 0x30c   : > { %v10741_v57 = vpop.f32.mrf.mxu0  ;;  %v8229_v22 = vadd.f32 %v8228_v0, %v8227_v18 }
 0x30d   : > { %v10743_v45 = vpop.f32.mrf.mxu1  ;;  %v4165_v56 = vsub.f32 0.0, %v4157_v34  ;;  %v4087_v24 = vadd.f32 %v8191_v15, %v11866_v54 }
 0x30e   : > { %v10746_v53 = vpop.f32.mrf.mxu0 }
 0x30f   : > { %v10748_v9 = vpop.f32.mrf.mxu1  ;;  %v4167_v44 = vmul.f32 1.442695, %v4165_v56  ;;  %v4162_v49 = vadd.f32 %v8229_v22, %v4087_v24 }
 0x310   : > { %v10750_v50 = vpop.f32.mrf.mxu0 }
 0x311   : > { %v10752_v27 = vpop.f32.mrf.mxu1  ;;  %8471 = vpow2.f32 %v4167_v44  ;;  %v4166_v10 = vsub.f32 0.0, %v4162_v49 }
 0x312   : > { %v10754_v31 = vpop.f32.mrf.mxu0 }
 0x313   : > { %v10756_v7 = vpop.f32.mrf.mxu1  ;;  %v4169_v60 = vmul.f32 1.442695, %v4166_v10 }
 0x314   : > { %v4410_v23 = vpop.f32.mrf.mxu0 }
 0x315   : > { %v4487_v15 = vpop.f32.mrf.mxu1  ;;  %8473 = vpow2.f32 %v4169_v60  ;;  %v4411_v20 = vadd.f32 %v4410_v23, %v10741_v57 }
 0x316   : > { %v4412_v0 = vpop.f32.mrf.mxu0  ;;  %v4488_v21 = vadd.f32 %v4487_v15, %v10743_v45 }
 0x317   : > { %v4489_v54 = vpop.f32.mrf.mxu1 }
 0x318   : > { %v10758_v18 = vpop.f32.mrf.mxu0 }
 0x319   : > { %v10760_v56 = vpop.f32.mrf.mxu1 }
 0x31a   : > { %v10762_v22 = vpop.f32.mrf.mxu0  ;;  %v4494_v57 = vadd.f32 %v10760_v56, %v10752_v27 }
 0x31b   : > { %v10764_v24 = vpop.f32.mrf.mxu1  ;;  %v4419_v45 = vadd.f32 %v10762_v22, %v10754_v31 }
 0x31c   : > { %v4568_v44 = vpop.f32.mrf.mxu0 }
 0x31d   : > { %v4645_v11 = vpop.f32.mrf.mxu1 }
 0x31e   : > { %v8472_v29 = vpop.eup %8471  ;;  %v4570_v43 = vpop.f32.mrf.mxu0  ;;  %v4658_v5 = vadd.f32 %v4645_v11, %v4488_v21 }
 0x31f   : > { %v4647_v58 = vpop.f32.mrf.mxu1  ;;  %v4171_v4 = vadd.f32 1.0, %v8472_v29 }
 0x320   : > { %v10766_v10 = vpop.f32.mrf.mxu0 }
 0x321   : > { %v10768_v25 = vpop.f32.mrf.mxu1  ;;  %8475 = vrcp.f32 %v4171_v4 }
 0x322   : > { %v8474_v60 = vpop.eup %8473  ;;  %v10770_v8 = vpop.f32.mrf.mxu0 }
 0x323   : > { %v10772_v61 = vpop.f32.mrf.mxu1  ;;  %v4172_v35 = vadd.f32 1.0, %v8474_v60 }
 0x324   : > { %v4734_v38 = vpop.f32.mrf.mxu0 }
 0x325   : > { %v4811_v42 = vpop.f32.mrf.mxu1  ;;  %8477 = vrcp.f32 %v4172_v35 }
 0x326   : > { %v4736_v63 = vpop.f32.mrf.mxu0 }
 0x327   : > { %v4813_v48 = vpop.f32.mrf.mxu1 }
 0x328   : > { %v10774_v19 = vpop.f32.mrf.mxu0 }
 0x329   : > { %v10776_v29 = vpop.f32.mrf.mxu1 }
 0x32a   : > { %v10778_v13 = vpop.f32.mrf.mxu0 }
 0x32b   : > { %v10780_v4 = vpop.f32.mrf.mxu1 }
 0x32c   : > { %11867 = vst [vmem:[#allocation53_spill] sm:$0xff] %v10780_v4  ;;  %v4900_v1 = vpop.f32.mrf.mxu0  ;;  %v4417_v4 = vadd.f32 %v10758_v18, %v10750_v50 }
 0x32d   : > { %v4977_v36 = vpop.f32.mrf.mxu1 }
 0x32e   : > { %v8476_v2 = vpop.eup %8475  ;;  %v4902_v16 = vpop.f32.mrf.mxu0 }
 0x32f   : > { %v4979_v60 = vpop.f32.mrf.mxu1  ;;  %v4177_v6 = vsel %vm9969_vm5, %v8476_v2, %v4157_v34 }
 0x330   : > { %7928 = vst [vmem:[%s9975_s24 + $0x10] sm:$0xff] %v4177_v6  ;;  %v10785_v35 = vpop.f32.mrf.mxu0 }
 0x331   : > { %11869 = vst [vmem:[#allocation54_spill] sm:$0xff] %v10785_v35  ;;  %v10787_v52 = vpop.f32.mrf.mxu1  ;;  %v4824_v35 = vadd.f32 %v4811_v42, %v4658_v5  ;;  %v4660_v5 = vadd.f32 %v10766_v10, %v4417_v4  ;;  %v4662_v42 = vadd.f32 %v10768_v25, %v4494_v57 }
 0x332   : > { %11870 = vst [vmem:[#allocation55_spill] sm:$0xff] %v10787_v52  ;;  %v8478_v30 = vpop.eup %8477  ;;  %v4908_v62 = vpop.f32.mrf.mxu0 }
 0x333   : > { %v4985_v14 = vpop.f32.mrf.mxu1  ;;  %v4178_v3 = vsel %vm9969_vm5, %v8478_v30, %v4162_v49  ;;  %v4490_v30 = vadd.f32 %v4489_v54, %v10748_v9  ;;  %v4656_v49 = vadd.f32 %v4568_v44, %v4411_v20  ;;  %v4826_v54 = vadd.f32 %v10774_v19, %v4660_v5 }
 0x334   : > { %7929 = vst [vmem:[%s9975_s24 + $0x18] sm:$0xff] %v4178_v3  ;;  %v5066_v12 = vpop.f32.mrf.mxu0  ;;  %v4413_v3 = vadd.f32 %v4412_v0, %v10746_v53  ;;  %v4496_v53 = vadd.f32 %v10764_v24, %v10756_v7 }
 0x335   : > { %v5143_v17 = vpop.f32.mrf.mxu1  ;;  %v4659_v28 = vadd.f32 %v4647_v58, %v4490_v30  ;;  %v4822_v52 = vadd.f32 %v4734_v38, %v4656_v49  ;;  %v4990_v58 = vadd.f32 %v4977_v36, %v4824_v35  ;;  %v4661_v38 = vadd.f32 %v10770_v8, %v4419_v45 }
 0x336   : > { %v5068_v33 = vpop.f32.mrf.mxu0  ;;  %v4657_v59 = vadd.f32 %v4570_v43, %v4413_v3  ;;  %v4663_v50 = vadd.f32 %v10772_v61, %v4496_v53 }
 0x337   : > { %v5145_v47 = vpop.f32.mrf.mxu1  ;;  %v4825_v9 = vadd.f32 %v4813_v48, %v4659_v28  ;;  %v4988_v43 = vadd.f32 %v4900_v1, %v4822_v52  ;;  %v5156_v7 = vadd.f32 %v5143_v17, %v4990_v58  ;;  %v4828_v28 = vadd.f32 %v10776_v29, %v4662_v42  ;;  %v11871_v52 = vld [vmem:[#allocation53_spill] sm:$0xff] }
 0x338   : > { %v5072_v55 = vpop.f32.mrf.mxu0  ;;  %v4823_v11 = vadd.f32 %v4736_v63, %v4657_v59  ;;  %v4827_v59 = vadd.f32 %v10778_v13, %v4661_v38  ;;  %v4829_v36 = vadd.f32 %v11871_v52, %v4663_v50  ;;  %v11872_v18 = vld [vmem:[#allocation54_spill] sm:$0xff]  ;;  %v11876_v42 = vld [vmem:[#allocation129_spill] sm:$0xff] }
 0x339   : > { %v5149_v37 = vpop.f32.mrf.mxu1  ;;  %v4991_v15 = vadd.f32 %v4979_v60, %v4825_v9  ;;  %v5154_v0 = vadd.f32 %v5066_v12, %v4988_v43  ;;  %v4992_v56 = vadd.f32 %v11872_v18, %v4826_v54  ;;  %v11880_v18 = vld [vmem:[#allocation16_spill] sm:$0xff] }
 0x33a   : > { %v5074_v41 = vpop.f32.mrf.mxu0  ;;  %v4989_v31 = vadd.f32 %v4902_v16, %v4823_v11  ;;  %v11873_v16 = vld [vmem:[#allocation55_spill] sm:$0xff]  ;;  %v4993_v12 = vadd.f32 %v4908_v62, %v4827_v59  ;;  %v4995_v17 = vadd.f32 %v4985_v14, %v4829_v36 }
 0x33b   : > { %v5151_v2 = vpop.f32.mrf.mxu1  ;;  %v5157_v8 = vadd.f32 %v5145_v47, %v4991_v15  ;;  %v4994_v22 = vadd.f32 %v11873_v16, %v4828_v28  ;;  %v5158_v4 = vadd.f32 %v5072_v55, %v4992_v56  ;;  %v11874_v55 = vld [vmem:[#allocation127_spill] sm:$0xff]  ;;  %v11881_v56 = vld [vmem:[#allocation17_spill] sm:$0xff]  ;;  %v11882_v16 = vmov 0.0  }
 0x33c   : > { %v5238_v6 = vpop.f32.mrf.mxu0  ;;  %v5155_v63 = vadd.f32 %v5068_v33, %v4989_v31  ;;  %v5159_v35 = vadd.f32 %v5074_v41, %v4993_v12  ;;  %v5161_v3 = vadd.f32 %v5151_v2, %v4995_v17  ;;  %v11875_v41 = vld [vmem:[#allocation128_spill] sm:$0xff]  ;;  %v11884_v12 = vld [vmem:[#allocation37_spill] sm:$0xff]  ;;  %v11885_v17 = vld [vmem:[#allocation26_spill] sm:$0xff] }
 0x33d   : > { %v5315_v34 = vpop.f32.mrf.mxu1  ;;  %v5326_v25 = vadd.f32 %v5238_v6, %v5154_v0  ;;  %v5160_v60 = vadd.f32 %v5149_v37, %v4994_v22  ;;  %v11883_v22 = vld [vmem:[#allocation122_spill] sm:$0xff] }
 0x33e   : > { %v5240_v26 = vpop.f32.mrf.mxu0  ;;  %v5328_v61 = vadd.f32 %v5315_v34, %v5156_v7 }
 0x33f   : > { %v5317_v32 = vpop.f32.mrf.mxu1  ;;  %v5327_v44 = vadd.f32 %v5240_v26, %v5155_v63  ;;  %v11878_v63 = vld [vmem:[#allocation14_spill] sm:$0xff] }
 0x340   : > { %v5244_v46 = vpop.f32.mrf.mxu0  ;;  %v5329_v10 = vadd.f32 %v5317_v32, %v5157_v8  ;;  %v11879_v8 = vld [vmem:[#allocation15_spill] sm:$0xff] }
 0x341   : > { %v5321_v40 = vpop.f32.mrf.mxu1  ;;  %v5330_v57 = vadd.f32 %v5244_v46, %v5158_v4  ;;  %v11877_v46 = vld [vmem:[#allocation130_spill] sm:$0xff]  ;;  %v11891_v4 = vld [vmem:[#allocation29_spill] sm:$0xff] }
 0x342   : > { %v5246_v39 = vpop.f32.mrf.mxu0  ;;  %v5332_v45 = vadd.f32 %v5321_v40, %v5160_v60  ;;  %v11892_v60 = vld [vmem:[#allocation38_spill] sm:$0xff] }
 0x343   : > { %v5323_v51 = vpop.f32.mrf.mxu1  ;;  %v5331_v53 = vadd.f32 %v5246_v39, %v5159_v35  ;;  %v8562_v35 = vld [vmem:[%s9761_s18 + $0x8] sm:$0xff] }
 0x344   : > { %v5414_v20 = vpop.f32.mrf.mxu0  ;;  %v5333_v11 = vadd.f32 %v5323_v51, %v5161_v3  ;;  %v11893_v3 = vld [vmem:[#allocation124_spill] sm:$0xff] }
 0x345   : > { %v5491_v21 = vpop.f32.mrf.mxu1  ;;  %v5502_v29 = vadd.f32 %v5414_v20, %v5326_v25 }
 0x346   : > { %v5416_v27 = vpop.f32.mrf.mxu0  ;;  %v5504_v13 = vadd.f32 %v5491_v21, %v5328_v61 }
 0x347   : > { %v5493_v23 = vpop.f32.mrf.mxu1  ;;  %v5503_v6 = vadd.f32 %v5416_v27, %v5327_v44  ;;  %v11888_v44 = vld [vmem:[#allocation123_spill] sm:$0xff] }
 0x348   : > { %v5420_v1 = vpop.f32.mrf.mxu0  ;;  %v5505_v34 = vadd.f32 %v5493_v23, %v5329_v10  ;;  %v8561_v10 = vld [vmem:[%s9761_s18] sm:$0xff]  ;;  %s621_s18 = sadd.s32 5, %s8804_s28 }
 0x349   : > { %v5497_v48 = vpop.f32.mrf.mxu1  ;;  %v5506_v20 = vadd.f32 %v5420_v1, %v5330_v57  ;;  %p624_p5 = scmp.lt.s32.totalorder %s621_s18, 17  ;;  %v11900_v57 = vld [vmem:[#allocation43_spill] sm:$0xff] }
 0x34a   : > { %v5422_v24 = vpop.f32.mrf.mxu0  ;;  %v5508_v21 = vadd.f32 %v5497_v48, %v5332_v45  ;;  %v11901_v45 = vld [vmem:[#allocation44_spill] sm:$0xff] }
 0x34b   : > { %v5499_v19 = vpop.f32.mrf.mxu1  ;;  %v5507_v58 = vadd.f32 %v5422_v24, %v5331_v53  ;;  %v11886_v24 = vld [vmem:[#allocation18_spill] sm:$0xff]  ;;  %v11904_v53 = vld [vmem:[#allocation45_spill] sm:$0xff]  ;;  %s12026_s18 = smov (!%p624_p5, %s621_s18), 17 }
 0x34c   : > { %v5589_v33 = vpop.f32.mrf.mxu0  ;;  %v5509_v5 = vadd.f32 %v5499_v19, %v5333_v11  ;;  %v11887_v19 = vld [vmem:[#allocation19_spill] sm:$0xff]  ;;  %v11905_v11 = vld [vmem:[#allocation49_spill] sm:$0xff]  ;;  %s8388_s28 = smul.u32 3, %s12026_s18  ;;  %s8074_s18 = sshll.u32 %s7568_s0, 7 }
 0x34d   : > { %v5666_v47 = vpop.f32.mrf.mxu1  ;;  %v5677_v30 = vadd.f32 %v5589_v33, %v5502_v29  ;;  %v11889_v29 = vld [vmem:[#allocation20_spill] sm:$0xff]  ;;  %v11894_v33 = vld [vmem:[#allocation22_spill] sm:$0xff] }
 0x34e   : > { %v5679_v49 = vadd.f32 %v5666_v47, %v5504_v13  ;;  %v5591_v62 = vpop.f32.mrf.mxu0  ;;  %v11890_v13 = vld [vmem:[#allocation21_spill] sm:$0xff]  ;;  %v11895_v47 = vld [vmem:[#allocation23_spill] sm:$0xff]  ;;  %s628_s23 = sadd.s32 %s8388_s28, %s8832_s29  ;;  %s7571_s28 = sshll.u32 %s9975_s24, 4  ;;  %s11123_s28 = int_to_ptr.vmem [resolvable:$true] %s7571_s28 }
 0x34f   : > { %v5668_v14 = vpop.f32.mrf.mxu1  ;;  %v5678_v26 = vadd.f32 %v5591_v62, %v5503_v6  ;;  %v5685_v37 = vadd.f32 %v5677_v30, %v11874_v55  ;;  %v11896_v6 = vld [vmem:[#allocation24_spill] sm:$0xff]  ;;  %v11898_v30 = vld [vmem:[#allocation125_spill] sm:$0xff]  ;;  %v11902_v62 = vld [vmem:[#allocation27_spill] sm:$0xff]  ;;  %s7790_s22 = sshll.u32 %s628_s23, 3  ;;  %s11121_s29 = scalar_lea.hbm %s11191_s10, %s8074_s18 }
 0x350   : > { %v5680_v32 = vadd.f32 %v5668_v14, %v5505_v34  ;;  %v5687_v2 = vadd.f32 %v5679_v49, %v11875_v41  ;;  %v5595_v9 = vpop.f32.mrf.mxu0  ;;  %v11897_v34 = vld [vmem:[#allocation25_spill] sm:$0xff]  ;;  %v11899_v49 = vld [vmem:[#allocation40_spill] sm:$0xff]  ;;  %s630_s25 = scalar_lea.vmem %s11186_s5, %s7790_s22  ;;  %s8564_s21 = scalar_lea.vmem %s11123_s28, 1024 }
 0x351   : > { %v5672_v43 = vpop.f32.mrf.mxu1  ;;  %v5686_v38 = vadd.f32 %v5678_v26, %v11876_v42  ;;  %v5681_v50 = vadd.f32 %v5595_v9, %v5506_v20  ;;  %v5693_v7 = vmax.f32 %v5685_v37, 0.0  ;;  %v11903_v14 = vld [vmem:[#allocation28_spill] sm:$0xff]  ;;  %v11906_v26 = vld [vmem:[#allocation30_spill] sm:$0xff]  ;;  %v11908_v20 = vld [vmem:[#allocation47_spill] sm:$0xff]  ;;  %p8565_p6 = scmp.ne.s32.totalorder %s11123_s28, %s8564_s21 }
 0x352   : > { %v5688_v40 = vadd.f32 %v5680_v32, %v11877_v46  ;;  %v5683_v27 = vadd.f32 %v5672_v43, %v5508_v21  ;;  %v5597_v39 = vpop.f32.mrf.mxu0  ;;  %v5695_v54 = vmax.f32 %v5687_v2, 0.0  ;;  %v11907_v32 = vld [vmem:[#allocation31_spill] sm:$0xff]  ;;  %v11909_v21 = vld [vmem:[#allocation33_spill] sm:$0xff]  ;;  %v11910_v37 = vld [vmem:[#allocation56_spill] sm:$0xff] }
 0x353   : > { %v5674_v51 = vpop.f32.mrf.mxu1  ;;  %v5694_v23 = vmax.f32 %v5686_v38, 0.0  ;;  %v5682_v15 = vadd.f32 %v5597_v39, %v5507_v58  ;;  %v5689_v28 = vadd.f32 %v5681_v50, %v11874_v55  ;;  %v11911_v2 = vld [vmem:[#allocation59_spill] sm:$0xff]  ;;  %v11912_v9 = vld [vmem:[#allocation34_spill] sm:$0xff]  ;;  %v11914_v58 = vld [vmem:[#allocation36_spill] sm:$0xff]  ;;  %p8566_p7 = pnand %p8565_p6, %p8768_p3 }
 0x354   : > { %v5696_v31 = vmax.f32 %v5688_v40, 0.0  ;;  %v5684_v0 = vadd.f32 %v5674_v51, %v5509_v5  ;;  %v5691_v59 = vadd.f32 %v5683_v27, %v11875_v41  ;;  %v11913_v43 = vld [vmem:[#allocation35_spill] sm:$0xff]  ;;  %v11916_v38 = vld [vmem:[#allocation60_spill] sm:$0xff]  ;;  %v649_v40 = vld [vmem:[%s630_s25] sm:$0xff] }
 0x355   : > { %v5690_v52 = vadd.f32 %v5682_v15, %v11876_v42  ;;  %5765 = vmatprep.mubr.f32.mxu0 %v5694_v23  ;;  %v5697_v25 = vmax.f32 %v5689_v28, 0.0  ;;  %v11915_v5 = vld [vmem:[#allocation39_spill] sm:$0xff]  ;;  %v7025_v27 = vrot.slane %v649_v40, 1  ;;  %v11917_v39 = vld [vmem:[#allocation41_spill] sm:$0xff]  ;;  %v11918_v51 = vld [vmem:[#allocation42_spill] sm:$0xff]  ;;  %v7200_v28 = vrot.slane %v649_v40, 2  ;;  %p8567_p9 = pneg %p8566_p7 }
 0x356   : > { %v5692_v36 = vadd.f32 %v5684_v0, %v11877_v46  ;;  %5840 = vmatprep.mubr.f32.mxu1 %v5696_v31  ;;  %5766 = vmatmul.mubr.f32.vlgmr.msra.gmra.mxu0 %v5693_v7  ;;  %v5699_v61 = vmax.f32 %v5691_v59, 0.0  ;;  %v650_v50 = vld [vmem:[%s630_s25 + $0x8] sm:$0xff]  ;;  %v651_v31 = vld [vmem:[%s630_s25 + $0x10] sm:$0x3]  ;;  %v11919_v15 = vld [vmem:[#allocation46_spill] sm:$0xff]  ;;  %s8659_s25 = smov [#allocation2]  }
 0x357   : > { %5841 = vmatmul.mubr.f32.vlgmr.msra.gmra.mxu1 %v5695_v54  ;;  %v5698_v1 = vmax.f32 %v5690_v52, 0.0  ;;  %5907 = vmatpush1.msra.mxu0 %v11878_v63  ;;  %v7026_v23 = vrot.slane %v650_v50, 1  ;;  %v11920_v0 = vld [vmem:[#allocation48_spill] sm:$0xff]  ;;  %v7028_v54 = vrot.slane %v651_v31, 1  ;;  %v7201_v59 = vrot.slane %v650_v50, 2  ;;  %v11921_v52 = vld [vmem:[#allocation51_spill] sm:$0xff] }
 0x358   : > { %v5700_v48 = vmax.f32 %v5692_v36, 0.0  ;;  %5984 = vmatpush1.msra.mxu1 %v11879_v8  ;;  %6060 = vmatprep.subr.mxu0 %v11880_v18  ;;  %v11922_v36 = vld [vmem:[#allocation52_spill] sm:$0xff]  ;;  %v11924_v63 = vld [vmem:[#allocation58_spill] sm:$0xff]  ;;  %v11925_v18 = vld [vmem:[#allocation61_spill] sm:$0xff]  ;;  %s8568_s19 = sshll.u32 %s8659_s25, 4  ;;  %s8569_s19 = int_to_ptr.vmem [resolvable:$false] %s8568_s19 }
 0x359   : > { %6137 = vmatprep.subr.mxu1 %v11881_v56  ;;  %5770 = vmatprep.mubr.f32.mxu0 %v5698_v1  ;;  %v7027_v7 = vsel %vm735_vm0, %v7025_v27, %v7026_v23  ;;  %v7029_v1 = vsel %vm735_vm0, %v7026_v23, %v7028_v54  ;;  %v7202_v8 = vsel %vm1063_vm2, %v7200_v28, %v7201_v59  ;;  %v11926_v56 = vld [vmem:[#allocation62_spill] sm:$0xff]  ;;  %v11969_v23 = vld [vmem:[#allocation105_spill] sm:$0xff]  ;;  %v11975_v28 = vld [vmem:[#allocation111_spill] sm:$0xff]  ;;  %s8570_s12 = scalar_lea.vmem %s8569_s19, 2048  ;;  %p8571_p10 = scmp.lt.s32.totalorder %s11123_s28, %s8569_s19 }
 0x35a   : > { %5845 = vmatprep.mubr.f32.mxu1 %v5700_v48  ;;  %5771 = vmatmul.mubr.f32.gmra.mxu0 %v5697_v25  ;;  %v11923_v48 = vld [vmem:[#allocation57_spill] sm:$0xff]  ;;  %v7203_v25 = vrot.slane %v651_v31, 2  ;;  %v11966_v27 = vld [vmem:[#allocation102_spill] sm:$0xff]  ;;  %p8572_p11 = scmp.lt.s32.totalorder %s8570_s12, %s8564_s21 }
 0x35b   : > { %5846 = vmatmul.mubr.f32.gmra.mxu1 %v5699_v61  ;;  %5940 = vmatprep.mubr.f32.mxu0 %v11882_v16  ;;  %v11970_v31 = vld [vmem:[#allocation106_spill] sm:$0xff] }
 0x35c   : > { %6017 = vmatprep.mubr.f32.mxu1 %v11882_v16  ;;  %v7204_v61 = vsel %vm1063_vm2, %v7201_v59, %v7203_v25  ;;  %v11974_v54 = vld [vmem:[#allocation110_spill] sm:$0xff]  ;;  %v11976_v59 = vld [vmem:[#allocation112_spill] sm:$0xff]  ;;  %v11983_v25 = vld [vmem:[#allocation119_spill] sm:$0xff]  ;;  %p8573_p12 = por %p8572_p11, %p8571_p10 }
 0x35e   : > { %8004 = vmatmul.mubr.msk.f32.vlgmr.msra.gmra.mxu0 %vm741_vm1, %v11883_v22  ;;  %p8574_p13 = pnand %p8573_p12, %p8567_p9 }
 0x35f   : > { %8006 = vmatmul.mubr.msk.f32.vlgmr.msra.gmra.mxu1 %vm741_vm1, %v11883_v22  ;;  %6061 = vmatpush1.msra.mxu0 %v11884_v12  ;;  %v11927_v22 = vld [vmem:[#allocation63_spill] sm:$0xff]  ;;  %v11928_v12 = vld [vmem:[#allocation64_spill] sm:$0xff] }
 0x360   : > { %6138 = vmatpush1.msra.mxu1 %v11885_v17  ;;  %5946 = vmatprep.mubr.f32.mxu0 %v11882_v16  ;;  %v11929_v17 = vld [vmem:[#allocation65_spill] sm:$0xff] }
 0x361   : > { %6023 = vmatprep.mubr.f32.mxu1 %v11882_v16  ;;  %6218 = vmatprep.subr.mxu0 %v11886_v24  ;;  %v11930_v24 = vld [vmem:[#allocation66_spill] sm:$0xff] }
 0x362   : > { %6295 = vmatprep.subr.mxu1 %v11887_v19  ;;  %8005 = vmatmul.mubr.msk.f32.gmra.mxu0 %vm741_vm1, %v11888_v44  ;;  %v11931_v19 = vld [vmem:[#allocation67_spill] sm:$0xff] }
 0x363   : > { %8007 = vmatmul.mubr.msk.f32.gmra.mxu1 %vm741_vm1, %v11888_v44  ;;  %6094 = vmatprep.mubr.f32.mxu0 %v11882_v16  ;;  %v11933_v44 = vld [vmem:[#allocation69_spill] sm:$0xff] }
 0x364   : > { %6171 = vmatprep.mubr.f32.mxu1 %v11882_v16 }
 0x366   : > { %8008 = vmatmul.mubr.msk.f32.vlgmr.msra.gmra.mxu0 %vm741_vm1, %v8561_v10 }
 0x367   : > { %8010 = vmatmul.mubr.msk.f32.vlgmr.msra.gmra.mxu1 %vm741_vm1, %v8561_v10  ;;  %6219 = vmatpush1.msra.mxu0 %v11889_v29  ;;  %v11934_v10 = vld [vmem:[#allocation70_spill] sm:$0xff]  ;;  %v11935_v29 = vld [vmem:[#allocation71_spill] sm:$0xff] }
 0x368   : > { %6296 = vmatpush1.msra.mxu1 %v11890_v13  ;;  %6100 = vmatprep.mubr.f32.mxu0 %v11882_v16  ;;  %v11936_v13 = vld [vmem:[#allocation72_spill] sm:$0xff] }
 0x369   : > { %6177 = vmatprep.mubr.f32.mxu1 %v11882_v16  ;;  %6384 = vmatprep.subr.mxu0 %v11891_v4  ;;  %v11937_v4 = vld [vmem:[#allocation73_spill] sm:$0xff] }
 0x36a   : > { %6461 = vmatprep.subr.mxu1 %v11892_v60  ;;  %8009 = vmatmul.mubr.msk.f32.gmra.mxu0 %vm741_vm1, %v8562_v35  ;;  %v11938_v60 = vld [vmem:[#allocation74_spill] sm:$0xff] }
 0x36b   : > { %8011 = vmatmul.mubr.msk.f32.gmra.mxu1 %vm741_vm1, %v8562_v35  ;;  %6252 = vmatprep.mubr.f32.mxu0 %v11882_v16  ;;  %v11939_v35 = vld [vmem:[#allocation75_spill] sm:$0xff] }
 0x36c   : > { %6329 = vmatprep.mubr.f32.mxu1 %v11882_v16 }
 0x36e   : > { %8016 = vmatmul.mubr.msk.f32.vlgmr.msra.gmra.mxu0 %vm741_vm1, %v11893_v3 }
 0x36f   : > { %8018 = vmatmul.mubr.msk.f32.vlgmr.msra.gmra.mxu1 %vm741_vm1, %v11893_v3  ;;  %6385 = vmatpush1.msra.mxu0 %v11894_v33  ;;  %v11940_v3 = vld [vmem:[#allocation76_spill] sm:$0xff]  ;;  %v11941_v33 = vld [vmem:[#allocation77_spill] sm:$0xff] }
 0x370   : > { %6462 = vmatpush1.msra.mxu1 %v11895_v47  ;;  %6258 = vmatprep.mubr.f32.mxu0 %v11882_v16  ;;  %v11942_v47 = vld [vmem:[#allocation78_spill] sm:$0xff] }
 0x371   : > { %6335 = vmatprep.mubr.f32.mxu1 %v11882_v16  ;;  %6550 = vmatprep.subr.mxu0 %v11896_v6  ;;  %v11943_v6 = vld [vmem:[#allocation79_spill] sm:$0xff] }
 0x372   : > { %6627 = vmatprep.subr.mxu1 %v11897_v34  ;;  %8017 = vmatmul.mubr.msk.f32.gmra.mxu0 %vm741_vm1, %v11898_v30  ;;  %v11944_v34 = vld [vmem:[#allocation80_spill] sm:$0xff] }
 0x373   : > { %8019 = vmatmul.mubr.msk.f32.gmra.mxu1 %vm741_vm1, %v11898_v30  ;;  %6418 = vmatprep.mubr.f32.mxu0 %v11882_v16  ;;  %v11945_v30 = vld [vmem:[#allocation81_spill] sm:$0xff] }
 0x374   : > { %6495 = vmatprep.mubr.f32.mxu1 %v11882_v16 }
 0x376   : > { %8024 = vmatmul.mubr.msk.f32.vlgmr.msra.gmra.mxu0 %vm741_vm1, %v11899_v49 }
 0x377   : > { %8026 = vmatmul.mubr.msk.f32.vlgmr.msra.gmra.mxu1 %vm741_vm1, %v11899_v49  ;;  %6551 = vmatpush1.msra.mxu0 %v11900_v57  ;;  %v11946_v49 = vld [vmem:[#allocation82_spill] sm:$0xff]  ;;  %v11947_v57 = vld [vmem:[#allocation83_spill] sm:$0xff] }
 0x378   : > { %6628 = vmatpush1.msra.mxu1 %v11901_v45  ;;  %6424 = vmatprep.mubr.f32.mxu0 %v11882_v16  ;;  %v11948_v45 = vld [vmem:[#allocation84_spill] sm:$0xff] }
 0x379   : > { %6501 = vmatprep.mubr.f32.mxu1 %v11882_v16  ;;  %6716 = vmatprep.subr.mxu0 %v11902_v62  ;;  %v11949_v62 = vld [vmem:[#allocation85_spill] sm:$0xff] }
 0x37a   : > { %6793 = vmatprep.subr.mxu1 %v11903_v14  ;;  %8025 = vmatmul.mubr.msk.f32.gmra.mxu0 %vm741_vm1, %v11904_v53  ;;  %v11950_v14 = vld [vmem:[#allocation86_spill] sm:$0xff] }
 0x37b   : > { %8027 = vmatmul.mubr.msk.f32.gmra.mxu1 %vm741_vm1, %v11904_v53  ;;  %6584 = vmatprep.mubr.f32.mxu0 %v11882_v16  ;;  %v11951_v53 = vld [vmem:[#allocation87_spill] sm:$0xff] }
 0x37c   : > { %6661 = vmatprep.mubr.f32.mxu1 %v11882_v16 }
 0x37e   : > { %8032 = vmatmul.mubr.msk.f32.vlgmr.msra.gmra.mxu0 %vm741_vm1, %v11905_v11 }
 0x37f   : > { %8034 = vmatmul.mubr.msk.f32.vlgmr.msra.gmra.mxu1 %vm741_vm1, %v11905_v11  ;;  %6717 = vmatpush1.msra.mxu0 %v11906_v26  ;;  %v11952_v11 = vld [vmem:[#allocation88_spill] sm:$0xff]  ;;  %v11953_v26 = vld [vmem:[#allocation89_spill] sm:$0xff] }
 0x380   : > { %6794 = vmatpush1.msra.mxu1 %v11907_v32  ;;  %6590 = vmatprep.mubr.f32.mxu0 %v11882_v16  ;;  %v11954_v32 = vld [vmem:[#allocation90_spill] sm:$0xff] }
 0x381   : > { %6667 = vmatprep.mubr.f32.mxu1 %v11882_v16  ;;  %6888 = vmatprep.subr.mxu0 %v11908_v20  ;;  %v11955_v20 = vld [vmem:[#allocation91_spill] sm:$0xff] }
 0x382   : > { %6965 = vmatprep.subr.mxu1 %v11909_v21  ;;  %8033 = vmatmul.mubr.msk.f32.gmra.mxu0 %vm741_vm1, %v11910_v37  ;;  %v11956_v21 = vld [vmem:[#allocation92_spill] sm:$0xff] }
 0x383   : > { %8035 = vmatmul.mubr.msk.f32.gmra.mxu1 %vm741_vm1, %v11910_v37  ;;  %6750 = vmatprep.mubr.f32.mxu0 %v11882_v16  ;;  %v11957_v37 = vld [vmem:[#allocation93_spill] sm:$0xff] }
 0x384   : > { %6827 = vmatprep.mubr.f32.mxu1 %v11882_v16 }
 0x386   : > { %8040 = vmatmul.mubr.msk.f32.vlgmr.msra.gmra.mxu0 %vm741_vm1, %v11911_v2 }
 0x387   : > { %8042 = vmatmul.mubr.msk.f32.vlgmr.msra.gmra.mxu1 %vm741_vm1, %v11911_v2  ;;  %6889 = vmatpush1.msra.mxu0 %v11912_v9  ;;  %v11958_v2 = vld [vmem:[#allocation94_spill] sm:$0xff]  ;;  %v11959_v9 = vld [vmem:[#allocation95_spill] sm:$0xff] }
 0x388   : > { %6966 = vmatpush1.msra.mxu1 %v11913_v43  ;;  %6756 = vmatprep.mubr.f32.mxu0 %v11882_v16  ;;  %v11960_v43 = vld [vmem:[#allocation96_spill] sm:$0xff] }
 0x389   : > { %6833 = vmatprep.mubr.f32.mxu1 %v11882_v16  ;;  %7064 = vmatprep.subr.mxu0 %v11914_v58  ;;  %v11961_v58 = vld [vmem:[#allocation97_spill] sm:$0xff] }
 0x38a   : > { %7141 = vmatprep.subr.mxu1 %v11915_v5  ;;  %8041 = vmatmul.mubr.msk.f32.gmra.mxu0 %vm741_vm1, %v11916_v38  ;;  %v11962_v5 = vld [vmem:[#allocation98_spill] sm:$0xff] }
 0x38b   : > { %8043 = vmatmul.mubr.msk.f32.gmra.mxu1 %vm741_vm1, %v11916_v38  ;;  %6922 = vmatprep.mubr.f32.mxu0 %v11882_v16  ;;  %v11963_v38 = vld [vmem:[#allocation99_spill] sm:$0xff] }
 0x38c   : > { %6999 = vmatprep.mubr.f32.mxu1 %v11882_v16 }
 0x38e   : > { %8048 = vmatmul.mubr.msk.f32.vlgmr.msra.gmra.mxu0 %vm741_vm1, %v649_v40 }
 0x38f   : > { %8050 = vmatmul.mubr.msk.f32.vlgmr.msra.gmra.mxu1 %vm741_vm1, %v649_v40  ;;  %7065 = vmatpush1.msra.mxu0 %v11917_v39  ;;  %v11964_v40 = vld [vmem:[#allocation100_spill] sm:$0xff]  ;;  %v11967_v39 = vld [vmem:[#allocation103_spill] sm:$0xff] }
 0x390   : > { %7142 = vmatpush1.msra.mxu1 %v11918_v51  ;;  %6928 = vmatprep.mubr.f32.mxu0 %v11882_v16  ;;  %v11968_v51 = vld [vmem:[#allocation104_spill] sm:$0xff] }
 0x391   : > { %7005 = vmatprep.mubr.f32.mxu1 %v11882_v16  ;;  %7239 = vmatprep.subr.mxu0 %v11919_v15  ;;  %v11971_v15 = vld [vmem:[#allocation107_spill] sm:$0xff] }
 0x392   : > { %7316 = vmatprep.subr.mxu1 %v11920_v0  ;;  %8049 = vmatmul.mubr.msk.f32.gmra.mxu0 %vm741_vm1, %v650_v50  ;;  %v11972_v0 = vld [vmem:[#allocation108_spill] sm:$0xff] }
 0x393   : > { %8051 = vmatmul.mubr.msk.f32.gmra.mxu1 %vm741_vm1, %v650_v50  ;;  %7098 = vmatprep.mubr.f32.mxu0 %v11882_v16  ;;  %v11965_v50 = vld [vmem:[#allocation101_spill] sm:$0xff] }
 0x394   : > { %7175 = vmatprep.mubr.f32.mxu1 %v11882_v16 }
 0x396   : > { %8056 = vmatmul.mubr.msk.f32.vlgmr.msra.gmra.mxu0 %vm741_vm1, %v7027_v7 }
 0x397   : > { %8058 = vmatmul.mubr.msk.f32.vlgmr.msra.gmra.mxu1 %vm741_vm1, %v7027_v7  ;;  %7240 = vmatpush1.msra.mxu0 %v11921_v52  ;;  %v11973_v7 = vld [vmem:[#allocation109_spill] sm:$0xff] }
 0x398   : > { %7317 = vmatpush1.msra.mxu1 %v11922_v36  ;;  %7104 = vmatprep.mubr.f32.mxu0 %v11882_v16  ;;  %v11977_v52 = vld [vmem:[#allocation113_spill] sm:$0xff]  ;;  %v11978_v36 = vld [vmem:[#allocation114_spill] sm:$0xff] }
 0x399   : > { %7181 = vmatprep.mubr.f32.mxu1 %v11882_v16  ;;  %8306 = vmatprep.subr.mxu0 %v11923_v48  ;;  %v11980_v48 = vld [vmem:[#allocation116_spill] sm:$0xff] }
 0x39a   : > { %8344 = vmatprep.subr.mxu1 %v11924_v63  ;;  %8057 = vmatmul.mubr.msk.f32.gmra.mxu0 %vm741_vm1, %v7029_v1  ;;  %v11981_v63 = vld [vmem:[#allocation117_spill] sm:$0xff] }
 0x39b   : > { %8059 = vmatmul.mubr.msk.f32.gmra.mxu1 %vm741_vm1, %v7029_v1  ;;  %7273 = vmatprep.mubr.f32.mxu0 %v11882_v16  ;;  %v11979_v1 = vld [vmem:[#allocation115_spill] sm:$0xff] }
 0x39c   : > { %7350 = vmatprep.mubr.f32.mxu1 %v11882_v16 }
 0x39e   : > { %8064 = vmatmul.mubr.msk.f32.vlgmr.msra.gmra.mxu0 %vm741_vm1, %v7202_v8 }
 0x39f   : > { %8066 = vmatmul.mubr.msk.f32.vlgmr.msra.gmra.mxu1 %vm741_vm1, %v7202_v8  ;;  %7279 = vmatprep.mubr.f32.mxu0 %v11882_v16  ;;  %v11982_v8 = vld [vmem:[#allocation118_spill] sm:$0xff] }
 0x3a0   : > { %7356 = vmatprep.mubr.f32.mxu1 %v11882_v16  ;;  %8307 = vmatpush3.msra.mxu0 %v11925_v18  ;;  %v11932_v16 = vld [vmem:[#allocation68_spill] sm:$0xff] }
 0x3a1   : > { %8345 = vmatpush3.msra.mxu1 %v11926_v56  ;;  %8308 = vmatprep.subr.mxu0 %v11927_v22  ;;  %v11985_v18 = vld [vmem:[#allocation32_spill] sm:$0xff]  ;;  %v11986_v56 = vld [vmem:[#allocation50_spill] sm:$0xff] }
 0x3a2   : > { %8346 = vmatprep.subr.mxu1 %v11928_v12  ;;  %8065 = vmatmul.mubr.msk.f32.gmra.mxu0 %vm741_vm1, %v7204_v61 }
 0x3a3   : > { %8067 = vmatmul.mubr.msk.f32.gmra.mxu1 %vm741_vm1, %v7204_v61  ;;  %8309 = vmatpush3.msra.mxu0 %v11929_v17  ;;  %v11984_v61 = vld [vmem:[#allocation13_spill] sm:$0xff] }
 0x3a4   : > { %8347 = vmatpush3.msra.mxu1 %v11930_v24  ;;  %8310 = vmatprep.subr.mxu0 %v11931_v19 }
 0x3a5   : > { %8348 = vmatprep.subr.mxu1 %v11932_v16  ;;  %8311 = vmatpush3.msra.mxu0 %v11933_v44 }
 0x3a6   : > { %8349 = vmatpush3.msra.mxu1 %v11934_v10  ;;  %8312 = vmatprep.subr.mxu0 %v11935_v29  ;;  %v11026_v10 = vld [vmem:[%s11190_s9] ss:$0 sm:$0xff] }
 0x3a7   : > { %8350 = vmatprep.subr.mxu1 %v11936_v13  ;;  %8313 = vmatpush3.msra.mxu0 %v11937_v4  ;;  %11987 = vst [vmem:[#allocation120_spill] sm:$0xff] %v11026_v10 }
 0x3a8   : > { %8351 = vmatpush3.msra.mxu1 %v11938_v60  ;;  %8314 = vmatprep.subr.mxu0 %v11939_v35 }
 0x3a9   : > { %8352 = vmatprep.subr.mxu1 %v11940_v3  ;;  %8315 = vmatpush3.msra.mxu0 %v11941_v33 }
 0x3aa   : > { %8353 = vmatpush3.msra.mxu1 %v11942_v47  ;;  %8316 = vmatprep.subr.mxu0 %v11943_v6 }
 0x3ab   : > { %8354 = vmatprep.subr.mxu1 %v11944_v34  ;;  %8317 = vmatpush3.msra.mxu0 %v11945_v30 }
 0x3ac   : > { %8355 = vmatpush3.msra.mxu1 %v11946_v49  ;;  %8318 = vmatprep.subr.mxu0 %v11947_v57 }
 0x3ad   : > { %8356 = vmatprep.subr.mxu1 %v11948_v45  ;;  %8319 = vmatpush3.msra.mxu0 %v11949_v62 }
 0x3ae   : > { %8357 = vmatpush3.msra.mxu1 %v11950_v14  ;;  %8320 = vmatprep.subr.mxu0 %v11951_v53 }
 0x3af   : > { %8358 = vmatprep.subr.mxu1 %v11952_v11  ;;  %8321 = vmatpush3.msra.mxu0 %v11953_v26 }
 0x3b0   : > { %8359 = vmatpush3.msra.mxu1 %v11954_v32  ;;  %8322 = vmatprep.subr.mxu0 %v11955_v20 }
 0x3b1   : > { %8360 = vmatprep.subr.mxu1 %v11956_v21  ;;  %8323 = vmatpush3.msra.mxu0 %v11957_v37 }
 0x3b2   : > { %8361 = vmatpush3.msra.mxu1 %v11958_v2  ;;  %8324 = vmatprep.subr.mxu0 %v11959_v9 }
 0x3b3   : > { %8362 = vmatprep.subr.mxu1 %v11960_v43  ;;  %8325 = vmatpush3.msra.mxu0 %v11961_v58 }
 0x3b4   : > { %8363 = vmatpush3.msra.mxu1 %v11962_v5  ;;  %8326 = vmatprep.subr.mxu0 %v11963_v38 }
 0x3b5   : > { %8364 = vmatprep.subr.mxu1 %v11964_v40  ;;  %8327 = vmatpush3.msra.mxu0 %v11965_v50 }
 0x3b6   : > { %8365 = vmatpush3.msra.mxu1 %v11966_v27  ;;  %8328 = vmatprep.subr.mxu0 %v11967_v39 }
 0x3b7   : > { %8366 = vmatprep.subr.mxu1 %v11968_v51  ;;  %8329 = vmatpush3.msra.mxu0 %v11969_v23 }
 0x3b8   : > { %8367 = vmatpush3.msra.mxu1 %v11970_v31  ;;  %8330 = vmatprep.subr.mxu0 %v11971_v15 }
 0x3b9   : > { %8368 = vmatprep.subr.mxu1 %v11972_v0  ;;  %8331 = vmatpush3.msra.mxu0 %v11973_v7 }
 0x3ba   : > { %8369 = vmatpush3.msra.mxu1 %v11974_v54  ;;  %8332 = vmatprep.subr.mxu0 %v11975_v28 }
 0x3bb   : > { %8370 = vmatprep.subr.mxu1 %v11976_v59  ;;  %8333 = vmatpush3.msra.mxu0 %v11977_v52 }
 0x3bc   : > { %8371 = vmatpush3.msra.mxu1 %v11978_v36  ;;  %8334 = vmatprep.subr.mxu0 %v11979_v1 }
 0x3bd   : > { %8372 = vmatprep.subr.mxu1 %v11980_v48  ;;  %8335 = vmatpush3.msra.mxu0 %v11981_v63 }
 0x3be   : > { %8373 = vmatpush3.msra.mxu1 %v11982_v8  ;;  %8336 = vmatprep.subr.mxu0 %v11983_v25 }
 0x3bf   : > { %8374 = vmatprep.subr.mxu1 %v11984_v61  ;;  %8337 = vmatpush3.msra.mxu0 %v11985_v18 }
 0x3c0   : > { %8375 = vmatpush3.msra.mxu1 %v11986_v56 }
 0x416   : > { %v8262_v22 = vpop.f32.mrf.mxu0 }
 0x417   : > { %v8300_v12 = vpop.f32.mrf.mxu1 }
 0x418   : > { %v8263_v17 = vpop.f32.mrf.mxu0 }
 0x419   : > { %v8301_v24 = vpop.f32.mrf.mxu1  ;;  %v8264_v19 = vadd.f32 %v8263_v17, %v8262_v22 }
 0x41a   : > { %v8265_v16 = vpop.f32.mrf.mxu0  ;;  %v8302_v13 = vadd.f32 %v8301_v24, %v8300_v12 }
 0x41b   : > { %v8303_v44 = vpop.f32.mrf.mxu1  ;;  %v5768_v29 = vadd.f32 %v11026_v10, %v8264_v19 }
 0x41c   : > { %v8266_v4 = vpop.f32.mrf.mxu0 }
 0x41d   : > { %v8304_v60 = vpop.f32.mrf.mxu1  ;;  %v5843_v35 = vadd.f32 %v8302_v13, %v5768_v29  ;;  %v8267_v3 = vadd.f32 %v8266_v4, %v8265_v16 }
 0x41e   : > { %v11029_v33 = vpop.f32.mrf.mxu0  ;;  %v8305_v30 = vadd.f32 %v8304_v60, %v8303_v44 }
 0x41f   : > { %v11031_v47 = vpop.f32.mrf.mxu1  ;;  %v5851_v6 = vsub.f32 0.0, %v5843_v35  ;;  %v5773_v34 = vadd.f32 %v11026_v10, %v8267_v3 }
 0x420   : > { %v11034_v49 = vpop.f32.mrf.mxu0 }
 0x421   : > { %v11036_v57 = vpop.f32.mrf.mxu1  ;;  %v5853_v45 = vmul.f32 1.442695, %v5851_v6  ;;  %v5848_v62 = vadd.f32 %v8305_v30, %v5773_v34 }
 0x422   : > { %v11038_v14 = vpop.f32.mrf.mxu0 }
 0x423   : > { %v11040_v53 = vpop.f32.mrf.mxu1  ;;  %8479 = vpow2.f32 %v5853_v45  ;;  %v5852_v11 = vsub.f32 0.0, %v5848_v62 }
 0x424   : > { %v11042_v26 = vpop.f32.mrf.mxu0 }
 0x425   : > { %v11044_v32 = vpop.f32.mrf.mxu1  ;;  %v5855_v20 = vmul.f32 1.442695, %v5852_v11 }
 0x426   : > { %v6096_v21 = vpop.f32.mrf.mxu0 }
 0x427   : > { %v6173_v37 = vpop.f32.mrf.mxu1  ;;  %8481 = vpow2.f32 %v5855_v20 }
 0x428   : > { %v6098_v2 = vpop.f32.mrf.mxu0 }
 0x429   : > { %v6175_v9 = vpop.f32.mrf.mxu1 }
 0x42a   : > { %v11046_v43 = vpop.f32.mrf.mxu0 }
 0x42b   : > { %v11048_v58 = vpop.f32.mrf.mxu1 }
 0x42c   : > { %v11050_v5 = vpop.f32.mrf.mxu0 }
 0x42d   : > { %v11052_v38 = vpop.f32.mrf.mxu1 }
 0x42e   : > { %v6254_v40 = vpop.f32.mrf.mxu0 }
 0x42f   : > { %v6331_v50 = vpop.f32.mrf.mxu1 }
 0x430   : > { %v8480_v27 = vpop.eup %8479  ;;  %v6256_v39 = vpop.f32.mrf.mxu0 }
 0x431   : > { %v6333_v51 = vpop.f32.mrf.mxu1  ;;  %v5857_v23 = vadd.f32 1.0, %v8480_v27 }
 0x432   : > { %v11054_v31 = vpop.f32.mrf.mxu0 }
 0x433   : > { %v11056_v15 = vpop.f32.mrf.mxu1  ;;  %8483 = vrcp.f32 %v5857_v23 }
 0x434   : > { %v8482_v0 = vpop.eup %8481  ;;  %v11058_v7 = vpop.f32.mrf.mxu0 }
 0x435   : > { %v11060_v54 = vpop.f32.mrf.mxu1  ;;  %v5858_v28 = vadd.f32 1.0, %v8482_v0 }
 0x436   : > { %v6420_v59 = vpop.f32.mrf.mxu0 }
 0x437   : > { %v6497_v52 = vpop.f32.mrf.mxu1  ;;  %8485 = vrcp.f32 %v5858_v28  ;;  %v6097_v28 = vadd.f32 %v6096_v21, %v11029_v33  ;;  %v6180_v33 = vadd.f32 %v11048_v58, %v11040_v53 }
 0x438   : > { %v6422_v36 = vpop.f32.mrf.mxu0 }
 0x439   : > { %v6499_v1 = vpop.f32.mrf.mxu1 }
 0x43a   : > { %v11062_v48 = vpop.f32.mrf.mxu0 }
 0x43b   : > { %v11064_v63 = vpop.f32.mrf.mxu1 }
 0x43c   : > { %v11066_v8 = vpop.f32.mrf.mxu0 }
 0x43d   : > { %v11068_v25 = vpop.f32.mrf.mxu1 }
 0x43e   : > { %11988 = vst [vmem:[#allocation121_spill] sm:$0xff] %v11068_v25  ;;  %v6586_v61 = vpop.f32.mrf.mxu0  ;;  %v6103_v25 = vadd.f32 %v11046_v43, %v11038_v14 }
 0x43f   : > { %v6663_v18 = vpop.f32.mrf.mxu1 }
 0x440   : > { %v8484_v56 = vpop.eup %8483  ;;  %v6588_v22 = vpop.f32.mrf.mxu0 }
 0x441   : > { %v6665_v12 = vpop.f32.mrf.mxu1  ;;  %v5863_v24 = vsel %vm9969_vm5, %v8484_v56, %v5843_v35  ;;  %v6174_v56 = vadd.f32 %v6173_v37, %v11031_v47  ;;  %v6105_v47 = vadd.f32 %v11050_v5, %v11042_v26 }
 0x442   : > { %7998 = vst [vmem:[%s9975_s24 + $0x20] sm:$0xff] %v5863_v24  ;;  %v11073_v19 = vpop.f32.mrf.mxu0 }
 0x443   : > { %11990 = vst [vmem:[#allocation126_spill] sm:$0xff] %v11073_v19  ;;  %v11075_v16 = vpop.f32.mrf.mxu1  ;;  %v6344_v10 = vadd.f32 %v6331_v50, %v6174_v56  ;;  %v6348_v50 = vadd.f32 %v11056_v15, %v6180_v33  ;;  %v6347_v14 = vadd.f32 %v11058_v7, %v6105_v47 }
 0x444   : > { %11991 = vst [vmem:[#allocation10_spill] sm:$0xff] %v11075_v16  ;;  %v8486_v44 = vpop.eup %8485  ;;  %v6594_v29 = vpop.f32.mrf.mxu0 }
 0x445   : > { %v6671_v13 = vpop.f32.mrf.mxu1  ;;  %v5864_v4 = vsel %vm9969_vm5, %v8486_v44, %v5848_v62  ;;  %v6099_v62 = vadd.f32 %v6098_v2, %v11034_v49  ;;  %v6176_v44 = vadd.f32 %v6175_v9, %v11036_v57  ;;  %v6510_v19 = vadd.f32 %v6497_v52, %v6344_v10 }
 0x446   : > { %7999 = vst [vmem:[%s9975_s24 + $0x28] sm:$0xff] %v5864_v4  ;;  %v6752_v60 = vpop.f32.mrf.mxu0  ;;  %v6342_v4 = vadd.f32 %v6254_v40, %v6097_v28  ;;  %v6182_v49 = vadd.f32 %v11052_v38, %v11044_v32  ;;  %v6346_v10 = vadd.f32 %v11054_v31, %v6103_v25 }
 0x447   : > { %v6829_v3 = vpop.f32.mrf.mxu1  ;;  %v6343_v41 = vadd.f32 %v6256_v39, %v6099_v62  ;;  %v6345_v55 = vadd.f32 %v6333_v51, %v6176_v44  ;;  %v6676_v40 = vadd.f32 %v6663_v18, %v6510_v19  ;;  %v11992_v51 = vld [vmem:[#allocation121_spill] sm:$0xff] }
 0x448   : > { %v6754_v6 = vpop.f32.mrf.mxu0  ;;  %v6508_v16 = vadd.f32 %v6420_v59, %v6342_v4  ;;  %v6349_v53 = vadd.f32 %v11060_v54, %v6182_v49  ;;  %v6512_v38 = vadd.f32 %v11062_v48, %v6346_v10 }
 0x449   : > { %v6831_v34 = vpop.f32.mrf.mxu1  ;;  %v6509_v37 = vadd.f32 %v6422_v36, %v6343_v41  ;;  %v6511_v2 = vadd.f32 %v6499_v1, %v6345_v55  ;;  %v6842_v32 = vadd.f32 %v6829_v3, %v6676_v40  ;;  %v6514_v55 = vadd.f32 %v11064_v63, %v6348_v50  ;;  %v11997_v50 = vld [vmem:[#allocation129_spill] sm:$0xff] }
 0x44a   : > { %v6758_v30 = vpop.f32.mrf.mxu0  ;;  %v6674_v9 = vadd.f32 %v6586_v61, %v6508_v16  ;;  %v6513_v41 = vadd.f32 %v11066_v8, %v6347_v14  ;;  %v6515_v31 = vadd.f32 %v11992_v51, %v6349_v53  ;;  %v11993_v1 = vld [vmem:[#allocation126_spill] sm:$0xff] }
 0x44b   : > { %v6835_v45 = vpop.f32.mrf.mxu1  ;;  %v6675_v26 = vadd.f32 %v6588_v22, %v6509_v37  ;;  %v6677_v5 = vadd.f32 %v6665_v12, %v6511_v2  ;;  %v6678_v25 = vadd.f32 %v11993_v1, %v6512_v38  ;;  %v11994_v61 = vld [vmem:[#allocation10_spill] sm:$0xff] }
 0x44c   : > { %v6760_v11 = vpop.f32.mrf.mxu0  ;;  %v6840_v39 = vadd.f32 %v6752_v60, %v6674_v9  ;;  %v6680_v18 = vadd.f32 %v11994_v61, %v6514_v55  ;;  %v6679_v22 = vadd.f32 %v6594_v29, %v6513_v41  ;;  %v6681_v12 = vadd.f32 %v6671_v13, %v6515_v31 }
 0x44d   : > { %v6837_v35 = vpop.f32.mrf.mxu1  ;;  %v6841_v52 = vadd.f32 %v6754_v6, %v6675_v26  ;;  %v6843_v7 = vadd.f32 %v6831_v34, %v6677_v5  ;;  %v6844_v3 = vadd.f32 %v6758_v30, %v6678_v25  ;;  %v11995_v30 = vld [vmem:[#allocation127_spill] sm:$0xff] }
 0x44e   : > { %v6924_v20 = vpop.f32.mrf.mxu0  ;;  %v6846_v28 = vadd.f32 %v6835_v45, %v6680_v18  ;;  %v6845_v56 = vadd.f32 %v6760_v11, %v6679_v22  ;;  %v6847_v62 = vadd.f32 %v6837_v35, %v6681_v12  ;;  %v11996_v11 = vld [vmem:[#allocation128_spill] sm:$0xff] }
 0x44f   : > { %v7001_v27 = vpop.f32.mrf.mxu1  ;;  %v7012_v36 = vadd.f32 %v6924_v20, %v6840_v39  ;;  %v11999_v12 = vld [vmem:[#allocation120_spill] sm:$0xff] }
 0x450   : > { %v6926_v23 = vpop.f32.mrf.mxu0  ;;  %v7014_v54 = vadd.f32 %v7001_v27, %v6842_v32 }
 0x451   : > { %v7003_v0 = vpop.f32.mrf.mxu1  ;;  %v7013_v16 = vadd.f32 %v6926_v23, %v6841_v52 }
 0x452   : > { %v6930_v24 = vpop.f32.mrf.mxu0  ;;  %v7015_v63 = vadd.f32 %v7003_v0, %v6843_v7 }
 0x453   : > { %v7007_v17 = vpop.f32.mrf.mxu1  ;;  %v7016_v33 = vadd.f32 %v6930_v24, %v6844_v3  ;;  %v11998_v24 = vld [vmem:[#allocation130_spill] sm:$0xff] }
 0x454   : > { %v6932_v46 = vpop.f32.mrf.mxu0  ;;  %v7018_v47 = vadd.f32 %v7007_v17, %v6846_v28 }
 0x455   : > { %v7009_v42 = vpop.f32.mrf.mxu1  ;;  %v7017_v49 = vadd.f32 %v6932_v46, %v6845_v56 }
 0x456   : > { %v7100_v57 = vpop.f32.mrf.mxu0  ;;  %v7019_v37 = vadd.f32 %v7009_v42, %v6847_v62 }
 0x457   : > { %v7177_v21 = vpop.f32.mrf.mxu1  ;;  %v7188_v60 = vadd.f32 %v7100_v57, %v7012_v36 }
 0x458   : > { %v7102_v43 = vpop.f32.mrf.mxu0  ;;  %v7190_v8 = vadd.f32 %v7177_v21, %v7014_v54 }
 0x459   : > { %v7179_v58 = vpop.f32.mrf.mxu1  ;;  %v7189_v20 = vadd.f32 %v7102_v43, %v7013_v16 }
 0x45a   : > { %v7106_v59 = vpop.f32.mrf.mxu0  ;;  %v7191_v27 = vadd.f32 %v7179_v58, %v7015_v63 }
 0x45b   : > { %v7183_v15 = vpop.f32.mrf.mxu1  ;;  %v7192_v57 = vadd.f32 %v7106_v59, %v7016_v33 }
 0x45c   : > { %v7108_v19 = vpop.f32.mrf.mxu0  ;;  %v7194_v21 = vadd.f32 %v7183_v15, %v7018_v47 }
 0x45d   : > { %v7185_v48 = vpop.f32.mrf.mxu1  ;;  %v7193_v40 = vadd.f32 %v7108_v19, %v7017_v49 }
 0x45e   : > { %v7275_v6 = vpop.f32.mrf.mxu0  ;;  %v7195_v10 = vadd.f32 %v7185_v48, %v7019_v37 }
 0x45f   : > { %v7352_v34 = vpop.f32.mrf.mxu1  ;;  %v7363_v44 = vadd.f32 %v7275_v6, %v7188_v60 }
 0x460   : > { %v7365_v4 = vadd.f32 %v7352_v34, %v7190_v8  ;;  %v7277_v29 = vpop.f32.mrf.mxu0 }
 0x461   : > { %v7354_v13 = vpop.f32.mrf.mxu1  ;;  %v7364_v23 = vadd.f32 %v7277_v29, %v7189_v20  ;;  %v7371_v45 = vadd.f32 %v7363_v44, %v11995_v30 }
 0x462   : > { %v7366_v0 = vadd.f32 %v7354_v13, %v7191_v27  ;;  %v7373_v35 = vadd.f32 %v7365_v4, %v11996_v11  ;;  %v7281_v2 = vpop.f32.mrf.mxu0 }
 0x463   : > { %v7358_v9 = vpop.f32.mrf.mxu1  ;;  %v7372_v14 = vadd.f32 %v7364_v23, %v11997_v50  ;;  %v7367_v53 = vadd.f32 %v7281_v2, %v7192_v57  ;;  %v7379_v32 = vmax.f32 %v7371_v45, 0.0 }
 0x464   : > { %v7374_v17 = vadd.f32 %v7366_v0, %v11998_v24  ;;  %v7369_v43 = vadd.f32 %v7358_v9, %v7194_v21  ;;  %v7283_v46 = vpop.f32.mrf.mxu0  ;;  %v7381_v38 = vmax.f32 %v7373_v35, 0.0 }
 0x465   : > { %v7360_v42 = vpop.f32.mrf.mxu1  ;;  %v7380_v58 = vmax.f32 %v7372_v14, 0.0  ;;  %v7368_v5 = vadd.f32 %v7283_v46, %v7193_v40  ;;  %v7375_v55 = vadd.f32 %v7367_v53, %v11995_v30 }
 0x466   : > { %v7382_v26 = vmax.f32 %v7374_v17, 0.0  ;;  %v7370_v39 = vadd.f32 %v7360_v42, %v7195_v10  ;;  %v7377_v41 = vadd.f32 %v7369_v43, %v11996_v11 }
 0x467   : > { %v7376_v51 = vadd.f32 %v7368_v5, %v11997_v50  ;;  %7451 = vmatprep.mubr.f32.mxu0 %v7380_v58  ;;  %v7383_v52 = vmax.f32 %v7375_v55, 0.0 }
 0x468   : > { %v7378_v31 = vadd.f32 %v7370_v39, %v11998_v24  ;;  %7526 = vmatprep.mubr.f32.mxu1 %v7382_v26  ;;  %7452 = vmatmul.mubr.f32.vlgmr.msra.gmra.mxu0 %v7379_v32  ;;  %v7385_v7 = vmax.f32 %v7377_v41, 0.0 }
 0x469   : > { %7527 = vmatmul.mubr.f32.vlgmr.msra.gmra.mxu1 %v7381_v38  ;;  %v7384_v59 = vmax.f32 %v7376_v51, 0.0 }
 0x46a   : > { %v7386_v15 = vmax.f32 %v7378_v31, 0.0 }
 0x46b   : > { %7456 = vmatprep.mubr.f32.mxu0 %v7384_v59 }
 0x46c   : > { %7531 = vmatprep.mubr.f32.mxu1 %v7386_v15  ;;  %7457 = vmatmul.mubr.f32.gmra.mxu0 %v7383_v52 }
 0x46d   : > { %7532 = vmatmul.mubr.f32.gmra.mxu1 %v7385_v7 }
 0x528   : > { %v8338_v36 = vpop.f32.mrf.mxu0 }
 0x529   : > { %v8376_v54 = vpop.f32.mrf.mxu1 }
 0x52a   : > { %v8339_v1 = vpop.f32.mrf.mxu0 }
 0x52b   : > { %v8377_v25 = vpop.f32.mrf.mxu1  ;;  %v8340_v61 = vadd.f32 %v8339_v1, %v8338_v36 }
 0x52c   : > { %v8341_v18 = vpop.f32.mrf.mxu0  ;;  %v8378_v48 = vadd.f32 %v8377_v25, %v8376_v54 }
 0x52d   : > { %v8379_v22 = vpop.f32.mrf.mxu1  ;;  %v7454_v19 = vadd.f32 %v11999_v12, %v8340_v61 }
 0x52e   : > { %v8342_v16 = vpop.f32.mrf.mxu0 }
 0x52f   : > { %v8380_v63 = vpop.f32.mrf.mxu1  ;;  %v7529_v60 = vadd.f32 %v8378_v48, %v7454_v19  ;;  %v8343_v8 = vadd.f32 %v8342_v16, %v8341_v18 }
 0x530   : > { %v8381_v56 = vadd.f32 %v8380_v63, %v8379_v22 }
 0x531   : > { %v7537_v3 = vsub.f32 0.0, %v7529_v60  ;;  %v7459_v28 = vadd.f32 %v11999_v12, %v8343_v8 }
 0x533   : > { %v7539_v62 = vmul.f32 1.442695, %v7537_v3  ;;  %v7534_v6 = vadd.f32 %v8381_v56, %v7459_v28 }
 0x535   : > { %8487 = vpow2.f32 %v7539_v62  ;;  %v7538_v34 = vsub.f32 0.0, %v7534_v6 }
 0x537   : > { %v7541_v20 = vmul.f32 1.442695, %v7538_v34 }
 0x539   : > { %8489 = vpow2.f32 %v7541_v20 }
 0x542   : > { %v8488_v27 = vpop.eup %8487 }
 0x543   : > { %v7543_v44 = vadd.f32 1.0, %v8488_v27 }
 0x545   : > { %8491 = vrcp.f32 %v7543_v44 }
 0x546   : > { %v8490_v4 = vpop.eup %8489 }
 0x547   : > { %v7544_v33 = vadd.f32 1.0, %v8490_v4 }
 0x549   : > { %8493 = vrcp.f32 %v7544_v33 }
 0x552   : > { %v8492_v47 = vpop.eup %8491 }
 0x553   : > { %v7549_v13 = vsel %vm9969_vm5, %v8492_v47, %v7529_v60 }
 0x554   : > { %8068 = vst [vmem:[%s9975_s24 + $0x30] sm:$0xff] %v7549_v13 }
 0x556   : > { %v8494_v49 = vpop.eup %8493 }
 0x557   : > { %v7550_v37 = vsel %vm9969_vm5, %v8494_v49, %v7534_v6 }
 0x558   : > { %8069 = vst [vmem:[%s9975_s24 + $0x38] sm:$0xff] %v7550_v37 }
 0x559   : > { %8577 = shalt.err (!%p8574_p13)
}
 0x55a   : > { %s8578_s24 = scalar_lea.hbm %s11121_s29, 1024  ;;  %s8582_s0 = scalar_lea.hbm %s11191_s10, 8192 }
 0x55b   : > { %p8579_p0 = scmp.ne.s32.totalorder %s11121_s29, %s8578_s24  ;;  %p8583_p4 = scmp.lt.s32.totalorder %s11121_s29, %s11191_s10 }
 0x55c   : > { %p8584_p5 = scmp.lt.s32.totalorder %s8582_s0, %s8578_s24 }
 0x55d   : > { %p8580_p1 = pnand %p8579_p0, %p8768_p3 }
 0x55e   : > { %p8585_p6 = por %p8584_p5, %p8583_p4 }
 0x55f   : > { %p8581_p2 = pneg %p8580_p1 }
 0x561   : > { %p8586_p7 = pnand %p8585_p6, %p8581_p2 }
 0x563   : > { %8589 = shalt.err (!%p8586_p7)
}
 0x564   : > { %s8660_s22 = smov 128   ;;  %s8661_s16 = smov 8  }
 0x565   : > { %8389 = dma.vmem_to_hbm [thread:$0]  (%p8768_p3), %s11123_s28, 1024, %s11121_s29, %s11130_s17, %s8660_s22, %s8660_s22, %s8661_s16  }
 0x566 PF: > { %p8395_p9 = scmp.ge.s32.totalorder %s8656_s20, 2  ;;  %s7586_s21 = sand.u32 1, %s8628_s13  }
 0x567   : > { %s7587_s25 = scalar_lea.sflag [#allocation3], %s7586_s21 }
 0x568   : > { %p8392_p10 = pnand %p8395_p9, %p8777_p8 }
 0x56a   : > { %p8393_p11 = pneg %p8392_p10 }
 0x56c   : > { %8623 = dma.done.wait (%p8393_p11), %s7587_s25, 1024  }
 0x56d   : > { %8625 = vsyncadd (%p8393_p11), %s7587_s25, 4294966272  ;;  %s23_s20 = sadd.s32 1, %s8656_s20   ;;  %s12002_s19 = sld [smem:[#allocation9_spill]] }
 0x56e   : > { %p20_p12 = scmp.ge.s32.totalorder %s23_s20, 10   ;;  %s12003_s16 = sld [smem:[#allocation5_spill]] }
 0x56f   : > { %s12004_s17 = sld [smem:[#allocation6_spill]]  ;;  %s12007_s13 = smov %s8632_s14 }
 0x570   : > { %s12005_s18 = sld [smem:[#allocation7_spill]]  ;;  %s12008_s14 = smov %s8636_s15 }
 0x571   : > { %s12006_s26 = sld [smem:[#allocation8_spill]] }
 0x573   : > { %s12009_s15 = smov %s12002_s19  ;;  %22 = sbr.rel (!%p20_p12) target bundleno = 7 (0x7), region = 121 }
 0x577   : > { %s12010_s19 = smov %s12006_s26 }
 0x578   :  { %7592 = vsyncpa [#allocation3], 1 }
 0x579   :  { %7594 = vsyncpa [#allocation3 + $0x1], 1 }

</bundles_post_ra>
